<compile_context>
chip_gen: v7x
topology: tpu7x:2x2x1
jax: 0.10.0
libtpu: 0.0.40
codegen_flags: <defaults>
</compile_context>

<pallas_src>
import functools
import math

import jax
import jax.numpy as jnp
from jax.experimental import pallas as pl
from jax.experimental.pallas import tpu as pltpu

LN_EPS = 1e-5
NEG_INF = -1e9
MATMUL_DTYPE = jnp.bfloat16   # MXU operand dtype (f32 accumulation everywhere)


# ----------------------------------------------------------------------------
# In-kernel helpers
# ----------------------------------------------------------------------------
def _layer_norm(y, gamma, beta):
    """Row-wise LayerNorm with f32 statistics. y: (N, E) f32."""
    mean = jnp.mean(y, axis=-1, keepdims=True)
    var = jnp.mean(jnp.square(y - mean), axis=-1, keepdims=True)
    return (y - mean) * jax.lax.rsqrt(var + LN_EPS) * gamma + beta


def _attention_add_ln(x_q, kv_b, add_mask, causal_mask,
                      wq_ref, bq_ref, wkv_ref, bkv_ref, wo_ref, bo_ref,
                      g_ref, beta_ref, ctx_ref, *, num_heads):
    """LayerNorm(x_q + MHA(x_q -> kv)) for one (block_t, E) query tile.

    x_q:  (tm, E) f32 residual stream (queries).
    kv_b: (S, E)  bf16 key/value source.
    add_mask: (tm, S) f32 additive mask or None.
    causal_mask: (tm, S) bool (True = attend) or None.
    ctx_ref: (tm, E) f32 VMEM scratch for the concatenated head contexts.
    """
    tm, E = x_q.shape
    D = E // num_heads
    scale = 1.0 / math.sqrt(D)

    # Q projection for the tile, merged K|V projection for the full KV source.
    q = jnp.dot(x_q.astype(MATMUL_DTYPE), wq_ref[...],
                preferred_element_type=jnp.float32) + bq_ref[...]
    kvp = jnp.dot(kv_b, wkv_ref[...],
                  preferred_element_type=jnp.float32) + bkv_ref[...]
    k = kvp[:, :E]
    v = kvp[:, E:]

    # q . k^T without a materialized transpose: contract last axis of both.
    dn_qkt = (((1,), (1,)), ((), ()))
    # TODO(synk): flash-style online-softmax KV loop for very long S.
    for h in range(num_heads):                       # static unroll over heads
        sl = slice(h * D, (h + 1) * D)
        s = jax.lax.dot_general(q[:, sl].astype(MATMUL_DTYPE),
                                k[:, sl].astype(MATMUL_DTYPE), dn_qkt,
                                preferred_element_type=jnp.float32) * scale
        if add_mask is not None:
            s = s + add_mask
        if causal_mask is not None:
            s = jnp.where(causal_mask, s, jnp.float32(NEG_INF))
        m = jnp.max(s, axis=-1, keepdims=True)
        p = jnp.exp(s - m)
        p = p * pl.reciprocal(jnp.sum(p, axis=-1, keepdims=True), approx=True)
        # This head's context goes straight into its lane slice of the shared
        # VMEM accumulator (no jnp.concatenate, no H live (tm, D) values).
        ctx_ref[:, sl] = jnp.dot(p.astype(MATMUL_DTYPE),
                                 v[:, sl].astype(MATMUL_DTYPE),
                                 preferred_element_type=jnp.float32)

    attn = jnp.dot(ctx_ref[...].astype(MATMUL_DTYPE), wo_ref[...],
                   preferred_element_type=jnp.float32) + bo_ref[...]
    return _layer_norm(attn + x_q, g_ref[...], beta_ref[...])


# ----------------------------------------------------------------------------
# Fused layer kernel: one (batch, query-tile) grid point per invocation
# ----------------------------------------------------------------------------
def _decoder_layer_kernel(*refs, num_heads, causal, block_t, has_mask):
    xq_ref, xkv_ref, ae_ref, ce_ref = refs[:4]
    pos = 5 if has_mask else 4
    mask_ref = refs[4] if has_mask else None
    (wq1, bq1, wkv1, bkv1, wo1, bo1, g1, be1,
     wq2, bq2, wkv2, bkv2, wo2, bo2, g2, be2,
     wq3, bq3, wkv3, bkv3, wo3, bo3, g3, be3,
     w1, b1, w2, b2, gf, bf) = refs[pos:pos + 30]
    o_ref = refs[pos + 30]
    ctx_ref = refs[pos + 31]            # (block_t, E) f32 scratch

    x0 = xq_ref[0].astype(jnp.float32)            # (tm, E) residual stream
    xkv_b = xkv_ref[0].astype(MATMUL_DTYPE)       # (T, E) self-attn K/V source
    ae_b = ae_ref[0].astype(MATMUL_DTYPE)         # (S, E)
    ce_b = ce_ref[0].astype(MATMUL_DTYPE)         # (S, E)

    add_mask = mask_ref[...] if has_mask else None   # (tm, S) f32 additive

    causal_mask = None
    if causal:
        tm = x0.shape[0]
        s_self = xkv_b.shape[0]
        q0 = pl.program_id(1) * block_t               # global query offset
        row = q0 + jax.lax.broadcasted_iota(jnp.int32, (tm, s_self), 0)
        col = jax.lax.broadcasted_iota(jnp.int32, (tm, s_self), 1)
        causal_mask = col <= row

    # masked self-attention + add & norm1
    x1 = _attention_add_ln(x0, xkv_b, add_mask, causal_mask,
                           wq1, bq1, wkv1, bkv1, wo1, bo1, g1, be1, ctx_ref,
                           num_heads=num_heads)
    # cross-attention over ae_outputs + add & norm2
    x2 = _attention_add_ln(x1, ae_b, add_mask, None,
                           wq2, bq2, wkv2, bkv2, wo2, bo2, g2, be2, ctx_ref,
                           num_heads=num_heads)
    # cross-attention over ce_outputs + add & norm3
    x3 = _attention_add_ln(x2, ce_b, add_mask, None,
                           wq3, bq3, wkv3, bkv3, wo3, bo3, g3, be3, ctx_ref,
                           num_heads=num_heads)

    # position-wise FFN + residual + LayerNorm (dropout = identity, eval mode)
    h = jnp.dot(x3.astype(MATMUL_DTYPE), w1[...],
                preferred_element_type=jnp.float32) + b1[...]
    h = jnp.maximum(h, 0.0)
    f = jnp.dot(h.astype(MATMUL_DTYPE), w2[...],
                preferred_element_type=jnp.float32) + b2[...]
    o_ref[0] = _layer_norm(x3 + f, gf[...], bf[...]).astype(o_ref.dtype)


# ----------------------------------------------------------------------------
# Wrapper
# ----------------------------------------------------------------------------
def _wspec(shape):
    """Constant (grid-invariant) block: whole array, single-buffered."""
    zeros = (0,) * len(shape)
    return pl.BlockSpec(shape, lambda b, i: zeros, pipeline_mode=pl.Buffered(1))


def _vmem_limit_bytes(T, S, E, F, H, block_t, has_mask, act_bytes):
    # double-buffered activation blocks (query tile, 3 KV blocks, mask, output)
    dbl = 2 * ((block_t * E + T * E + 2 * S * E) * act_bytes
               + block_t * E * act_bytes
               + (block_t * S * 4 if has_mask else 0))
    # single-buffered bf16 weights + small f32 vector params
    weights = 2 * (3 * 4 * E * E + 2 * E * F) + 4 * (20 * E + 3 * F)
    # in-kernel f32 intermediates: per-head scores (worst case all live),
    # merged K|V projection, FFN hidden, q/ctx/attn/x1..x3 buffers
    interm = 4 * (H * block_t * S + S * 2 * E + block_t * F + 8 * block_t * E)
    est = dbl + weights + interm + 8 * 2 ** 20        # Mosaic-internal headroom
    try:
        phys = pltpu.get_tpu_info().vmem_capacity_bytes
    except Exception:                                  # conservative fallback
        phys = 64 * 2 ** 20
    cap = phys - 16 * 2 ** 20                          # leave compiler headroom
    return int(min(cap, max(est, 32 * 2 ** 20)))


def decoder_layer_a(shifted_right_outputs, ce_outputs, ae_outputs, attn_mask,
                    params, *, heads, causal=True, block_t=None):
    """Forward pass of DecoderLayerA (dropout = identity / eval mode).

    attn_mask: bool (T, T), True = attend, or None (all-attend, skips the DMA).
    The same mask feeds all three attentions (as in the PyTorch module), so
    every key/value length must equal T.
    """
    B, T, E = shifted_right_outputs.shape
    assert E % heads == 0, "embed_size must be divisible by heads"
    assert ae_outputs.shape == (B, T, E) and ce_outputs.shape == (B, T, E), \
        "all KV lengths must match the query length (shared attn_mask)"

    has_mask = attn_mask is not None
    if has_mask:
        assert attn_mask.shape == (T, T), "attn_mask must be (T_q, T_kv)"
        add_mask = jnp.where(attn_mask, 0.0, NEG_INF).astype(jnp.float32)

    if block_t is None:
        block_t = T if T <= 256 else 256               # (8,128)-tiling safe
    n_t = pl.cdiv(T, block_t)
    F = params["ffn"]["w1"].shape[1]

    # ---- inputs & specs -----------------------------------------------------
    inputs = [shifted_right_outputs,   # query tile (residual stream)
              shifted_right_outputs,   # full self-attn K/V source
              ae_outputs, ce_outputs]
    in_specs = [
        pl.BlockSpec((1, block_t, E), lambda b, i: (b, i, 0)),
        pl.BlockSpec((1, T, E), lambda b, i: (b, 0, 0)),
        pl.BlockSpec((1, T, E), lambda b, i: (b, 0, 0)),
        pl.BlockSpec((1, T, E), lambda b, i: (b, 0, 0)),
    ]
    if has_mask:
        inputs.append(add_mask)
        in_specs.append(pl.BlockSpec((block_t, T), lambda b, i: (i, 0)))

    mha_groups = [
        (params["masked_mha"], params["norm1_g"], params["norm1_b"]),
        (params["cross_mha_1"], params["norm2_g"], params["norm2_b"]),
        (params["cross_mha_2"], params["norm3_g"], params["norm3_b"]),
    ]
    for mp, g, beta in mha_groups:
        inputs += [mp["wq"], mp["bq"], mp["wkv"], mp["bkv"],
                   mp["wo"], mp["bo"], g, beta]
        in_specs += [_wspec((E, E)), _wspec((1, E)),
                     _wspec((E, 2 * E)), _wspec((1, 2 * E)),
                     _wspec((E, E)), _wspec((1, E)),
                     _wspec((1, E)), _wspec((1, E))]
    fp = params["ffn"]
    inputs += [fp["w1"], fp["b1"], fp["w2"], fp["b2"], fp["gamma"], fp["beta"]]
    in_specs += [_wspec((E, F)), _wspec((1, F)), _wspec((F, E)),
                 _wspec((1, E)), _wspec((1, E)), _wspec((1, E))]

    kernel = functools.partial(_decoder_layer_kernel, num_heads=heads,
                               causal=causal, block_t=block_t,
                               has_mask=has_mask)
    act_bytes = jnp.dtype(shifted_right_outputs.dtype).itemsize
    return pl.pallas_call(
        kernel,
        out_shape=jax.ShapeDtypeStruct((B, T, E), shifted_right_outputs.dtype),
        grid=(B, n_t),
        in_specs=in_specs,
        out_specs=pl.BlockSpec((1, block_t, E), lambda b, i: (b, i, 0)),
        scratch_shapes=[pltpu.VMEM((block_t, E), jnp.float32)],
        compiler_params=pltpu.CompilerParams(
            dimension_semantics=("parallel", "parallel"),
            vmem_limit_bytes=_vmem_limit_bytes(T, T, E, F, heads, block_t,
                                               has_mask, act_bytes)),
    )(*inputs)


# ----------------------------------------------------------------------------
# Deterministic parameter construction (matmul weights stored in bf16)
# ----------------------------------------------------------------------------
def _init_mha_params(key, embed):
    ks = jax.random.split(key, 4)
    std = 0.02
    wk = std * jax.random.normal(ks[1], (embed, embed), jnp.float32)
    wv = std * jax.random.normal(ks[2], (embed, embed), jnp.float32)
    return {
        "wq": (std * jax.random.normal(ks[0], (embed, embed), jnp.float32)
               ).astype(MATMUL_DTYPE),
        "bq": jnp.zeros((1, embed), jnp.float32),
        "wkv": jnp.concatenate([wk, wv], axis=1).astype(MATMUL_DTYPE),  # K|V
        "bkv": jnp.zeros((1, 2 * embed), jnp.float32),
        "wo": (std * jax.random.normal(ks[3], (embed, embed), jnp.float32)
               ).astype(MATMUL_DTYPE),
        "bo": jnp.zeros((1, embed), jnp.float32),
    }


def init_decoder_params(key, embed, dim_feedforward):
    k1, k2, k3, k4, k5 = jax.random.split(key, 5)
    std = 0.02
    return {
        "masked_mha": _init_mha_params(k1, embed),
        "cross_mha_1": _init_mha_params(k2, embed),
        "cross_mha_2": _init_mha_params(k3, embed),
        "norm1_g": jnp.ones((1, embed), jnp.float32),
        "norm1_b": jnp.zeros((1, embed), jnp.float32),
        "norm2_g": jnp.ones((1, embed), jnp.float32),
        "norm2_b": jnp.zeros((1, embed), jnp.float32),
        "norm3_g": jnp.ones((1, embed), jnp.float32),
        "norm3_b": jnp.zeros((1, embed), jnp.float32),
        "ffn": {
            "w1": (std * jax.random.normal(k4, (embed, dim_feedforward),
                                           jnp.float32)).astype(MATMUL_DTYPE),
            "b1": jnp.zeros((1, dim_feedforward), jnp.float32),
            "w2": (std * jax.random.normal(k5, (dim_feedforward, embed),
                                           jnp.float32)).astype(MATMUL_DTYPE),
            "b2": jnp.zeros((1, embed), jnp.float32),
            "gamma": jnp.ones((1, embed), jnp.float32),
            "beta": jnp.zeros((1, embed), jnp.float32),
        },
    }


# ----------------------------------------------------------------------------
if __name__ == "__main__":
    B, T, E = 2, 8, 32          # batch, decoder seq, embed_size
    HEADS = 4
    DIM_FF = 64

    root = jax.random.PRNGKey(0)
    kp, kx, kce, kae = jax.random.split(root, 4)

    params = init_decoder_params(kp, E, DIM_FF)

    shifted_right_outputs = jax.random.normal(kx, (B, T, E), jnp.float32)
    ce_outputs = jax.random.normal(kce, (B, T, E), jnp.float32)
    ae_outputs = jax.random.normal(kae, (B, T, E), jnp.float32)
    attn_mask = jnp.ones((T, T), jnp.bool_)   # True = attend

    fwd = jax.jit(functools.partial(decoder_layer_a, heads=HEADS, causal=True))
    out = fwd(shifted_right_outputs, ce_outputs, ae_outputs, attn_mask, params)
    out = jax.block_until_ready(out)

    assert out.shape == (B, T, E)
    assert bool(jnp.all(jnp.isfinite(out)))
    print("KERNEL_OK")
</pallas_src>

<mosaic_0001>
module attributes {stable_mosaic.version = 11 : i64} {
  func.func @_decoder_layer_kernel(%arg0: i32, %arg1: i32, %arg2: memref<1x8x32xf32, #tpu.memory_space<vmem>>, %arg3: memref<1x8x32xf32, #tpu.memory_space<vmem>>, %arg4: memref<1x8x32xf32, #tpu.memory_space<vmem>>, %arg5: memref<1x8x32xf32, #tpu.memory_space<vmem>>, %arg6: memref<8x8xf32, #tpu.memory_space<vmem>>, %arg7: memref<32x32xbf16, #tpu.memory_space<vmem>>, %arg8: memref<1x32xf32, #tpu.memory_space<vmem>>, %arg9: memref<32x64xbf16, #tpu.memory_space<vmem>>, %arg10: memref<1x64xf32, #tpu.memory_space<vmem>>, %arg11: memref<32x32xbf16, #tpu.memory_space<vmem>>, %arg12: memref<1x32xf32, #tpu.memory_space<vmem>>, %arg13: memref<1x32xf32, #tpu.memory_space<vmem>>, %arg14: memref<1x32xf32, #tpu.memory_space<vmem>>, %arg15: memref<32x32xbf16, #tpu.memory_space<vmem>>, %arg16: memref<1x32xf32, #tpu.memory_space<vmem>>, %arg17: memref<32x64xbf16, #tpu.memory_space<vmem>>, %arg18: memref<1x64xf32, #tpu.memory_space<vmem>>, %arg19: memref<32x32xbf16, #tpu.memory_space<vmem>>, %arg20: memref<1x32xf32, #tpu.memory_space<vmem>>, %arg21: memref<1x32xf32, #tpu.memory_space<vmem>>, %arg22: memref<1x32xf32, #tpu.memory_space<vmem>>, %arg23: memref<32x32xbf16, #tpu.memory_space<vmem>>, %arg24: memref<1x32xf32, #tpu.memory_space<vmem>>, %arg25: memref<32x64xbf16, #tpu.memory_space<vmem>>, %arg26: memref<1x64xf32, #tpu.memory_space<vmem>>, %arg27: memref<32x32xbf16, #tpu.memory_space<vmem>>, %arg28: memref<1x32xf32, #tpu.memory_space<vmem>>, %arg29: memref<1x32xf32, #tpu.memory_space<vmem>>, %arg30: memref<1x32xf32, #tpu.memory_space<vmem>>, %arg31: memref<32x64xbf16, #tpu.memory_space<vmem>>, %arg32: memref<1x64xf32, #tpu.memory_space<vmem>>, %arg33: memref<64x32xbf16, #tpu.memory_space<vmem>>, %arg34: memref<1x32xf32, #tpu.memory_space<vmem>>, %arg35: memref<1x32xf32, #tpu.memory_space<vmem>>, %arg36: memref<1x32xf32, #tpu.memory_space<vmem>>, %arg37: memref<1x8x32xf32, #tpu.memory_space<vmem>>, %arg38: memref<8x32xf32, #tpu.memory_space<vmem>>) attributes {dimension_semantics = [#tpu.dimension_semantics<parallel>, #tpu.dimension_semantics<parallel>], iteration_bounds = array<i64: 2, 1>, scalar_prefetch = 0 : i64, scratch_operands = 1 : i64, tpu.core_type = #tpu.core_type<tc>, window_params = [{transform_indices = @transform_0, window_bounds = array<i64: 1, 8, 32>}, {transform_indices = @transform_1, window_bounds = array<i64: 1, 8, 32>}, {transform_indices = @transform_2, window_bounds = array<i64: 1, 8, 32>}, {transform_indices = @transform_3, window_bounds = array<i64: 1, 8, 32>}, {transform_indices = @transform_4, window_bounds = array<i64: 8, 8>}, {pipeline_mode = #tpu.pipeline_mode<synchronous>, transform_indices = @transform_5, window_bounds = array<i64: 32, 32>}, {pipeline_mode = #tpu.pipeline_mode<synchronous>, transform_indices = @transform_6, window_bounds = array<i64: 1, 32>}, {pipeline_mode = #tpu.pipeline_mode<synchronous>, transform_indices = @transform_7, window_bounds = array<i64: 32, 64>}, {pipeline_mode = #tpu.pipeline_mode<synchronous>, transform_indices = @transform_8, window_bounds = array<i64: 1, 64>}, {pipeline_mode = #tpu.pipeline_mode<synchronous>, transform_indices = @transform_9, window_bounds = array<i64: 32, 32>}, {pipeline_mode = #tpu.pipeline_mode<synchronous>, transform_indices = @transform_10, window_bounds = array<i64: 1, 32>}, {pipeline_mode = #tpu.pipeline_mode<synchronous>, transform_indices = @transform_11, window_bounds = array<i64: 1, 32>}, {pipeline_mode = #tpu.pipeline_mode<synchronous>, transform_indices = @transform_12, window_bounds = array<i64: 1, 32>}, {pipeline_mode = #tpu.pipeline_mode<synchronous>, transform_indices = @transform_13, window_bounds = array<i64: 32, 32>}, {pipeline_mode = #tpu.pipeline_mode<synchronous>, transform_indices = @transform_14, window_bounds = array<i64: 1, 32>}, {pipeline_mode = #tpu.pipeline_mode<synchronous>, transform_indices = @transform_15, window_bounds = array<i64: 32, 64>}, {pipeline_mode = #tpu.pipeline_mode<synchronous>, transform_indices = @transform_16, window_bounds = array<i64: 1, 64>}, {pipeline_mode = #tpu.pipeline_mode<synchronous>, transform_indices = @transform_17, window_bounds = array<i64: 32, 32>}, {pipeline_mode = #tpu.pipeline_mode<synchronous>, transform_indices = @transform_18, window_bounds = array<i64: 1, 32>}, {pipeline_mode = #tpu.pipeline_mode<synchronous>, transform_indices = @transform_19, window_bounds = array<i64: 1, 32>}, {pipeline_mode = #tpu.pipeline_mode<synchronous>, transform_indices = @transform_20, window_bounds = array<i64: 1, 32>}, {pipeline_mode = #tpu.pipeline_mode<synchronous>, transform_indices = @transform_21, window_bounds = array<i64: 32, 32>}, {pipeline_mode = #tpu.pipeline_mode<synchronous>, transform_indices = @transform_22, window_bounds = array<i64: 1, 32>}, {pipeline_mode = #tpu.pipeline_mode<synchronous>, transform_indices = @transform_23, window_bounds = array<i64: 32, 64>}, {pipeline_mode = #tpu.pipeline_mode<synchronous>, transform_indices = @transform_24, window_bounds = array<i64: 1, 64>}, {pipeline_mode = #tpu.pipeline_mode<synchronous>, transform_indices = @transform_25, window_bounds = array<i64: 32, 32>}, {pipeline_mode = #tpu.pipeline_mode<synchronous>, transform_indices = @transform_26, window_bounds = array<i64: 1, 32>}, {pipeline_mode = #tpu.pipeline_mode<synchronous>, transform_indices = @transform_27, window_bounds = array<i64: 1, 32>}, {pipeline_mode = #tpu.pipeline_mode<synchronous>, transform_indices = @transform_28, window_bounds = array<i64: 1, 32>}, {pipeline_mode = #tpu.pipeline_mode<synchronous>, transform_indices = @transform_29, window_bounds = array<i64: 32, 64>}, {pipeline_mode = #tpu.pipeline_mode<synchronous>, transform_indices = @transform_30, window_bounds = array<i64: 1, 64>}, {pipeline_mode = #tpu.pipeline_mode<synchronous>, transform_indices = @transform_31, window_bounds = array<i64: 64, 32>}, {pipeline_mode = #tpu.pipeline_mode<synchronous>, transform_indices = @transform_32, window_bounds = array<i64: 1, 32>}, {pipeline_mode = #tpu.pipeline_mode<synchronous>, transform_indices = @transform_33, window_bounds = array<i64: 1, 32>}, {pipeline_mode = #tpu.pipeline_mode<synchronous>, transform_indices = @transform_34, window_bounds = array<i64: 1, 32>}, {transform_indices = @transform_35, window_bounds = array<i64: 1, 8, 32>}]} {
    %c0 = arith.constant 0 : index
    %c0_0 = arith.constant 0 : index
    %c0_1 = arith.constant 0 : index
    %0 = vector.load %arg2[%c0, %c0_0, %c0_1] : memref<1x8x32xf32, #tpu.memory_space<vmem>>, vector<1x8x32xf32>
    %1 = vector.shape_cast %0 : vector<1x8x32xf32> to vector<8x32xf32>
    %c0_2 = arith.constant 0 : index
    %c0_3 = arith.constant 0 : index
    %c0_4 = arith.constant 0 : index
    %2 = vector.load %arg3[%c0_2, %c0_3, %c0_4] : memref<1x8x32xf32, #tpu.memory_space<vmem>>, vector<1x8x32xf32>
    %3 = vector.shape_cast %2 : vector<1x8x32xf32> to vector<8x32xf32>
    %4 = arith.truncf %3 : vector<8x32xf32> to vector<8x32xbf16>
    %c0_5 = arith.constant 0 : index
    %c0_6 = arith.constant 0 : index
    %c0_7 = arith.constant 0 : index
    %5 = vector.load %arg4[%c0_5, %c0_6, %c0_7] : memref<1x8x32xf32, #tpu.memory_space<vmem>>, vector<1x8x32xf32>
    %6 = vector.shape_cast %5 : vector<1x8x32xf32> to vector<8x32xf32>
    %7 = arith.truncf %6 : vector<8x32xf32> to vector<8x32xbf16>
    %c0_8 = arith.constant 0 : index
    %c0_9 = arith.constant 0 : index
    %c0_10 = arith.constant 0 : index
    %8 = vector.load %arg5[%c0_8, %c0_9, %c0_10] : memref<1x8x32xf32, #tpu.memory_space<vmem>>, vector<1x8x32xf32>
    %9 = vector.shape_cast %8 : vector<1x8x32xf32> to vector<8x32xf32>
    %10 = arith.truncf %9 : vector<8x32xf32> to vector<8x32xbf16>
    %c0_11 = arith.constant 0 : index
    %c0_12 = arith.constant 0 : index
    %11 = vector.load %arg6[%c0_11, %c0_12] : memref<8x8xf32, #tpu.memory_space<vmem>>, vector<8x8xf32>
    %c8_i32 = arith.constant 8 : i32
    %12 = arith.muli %arg1, %c8_i32 : i32
    %13 = tpu.iota {dimensions = array<i32: 0>} : vector<8x8xi32>
    %14 = vector.broadcast %12 : i32 to vector<8x8xi32>
    %15 = arith.addi %14, %13 : vector<8x8xi32>
    %16 = tpu.iota {dimensions = array<i32: 1>} : vector<8x8xi32>
    %17 = arith.cmpi sle, %16, %15 : vector<8x8xi32>
    %18 = arith.truncf %1 : vector<8x32xf32> to vector<8x32xbf16>
    %c0_13 = arith.constant 0 : index
    %c0_14 = arith.constant 0 : index
    %19 = vector.load %arg7[%c0_13, %c0_14] : memref<32x32xbf16, #tpu.memory_space<vmem>>, vector<32x32xbf16>
    %cst = arith.constant dense<0.000000e+00> : vector<8x32xf32>
    %20 = tpu.matmul %18, %19, %cst {dimension_numbers = #tpu.dot_dimension_numbers<[1], [0], [0], [1], [0, 0, 1, 1], [], []>} : vector<8x32xbf16>, vector<32x32xbf16>, vector<8x32xf32> -> vector<8x32xf32>
    %c0_15 = arith.constant 0 : index
    %c0_16 = arith.constant 0 : index
    %21 = vector.load %arg8[%c0_15, %c0_16] : memref<1x32xf32, #tpu.memory_space<vmem>>, vector<1x32xf32>
    %22 = vector.broadcast %21 : vector<1x32xf32> to vector<8x32xf32>
    %23 = arith.addf %20, %22 : vector<8x32xf32>
    %c0_17 = arith.constant 0 : index
    %c0_18 = arith.constant 0 : index
    %24 = vector.load %arg9[%c0_17, %c0_18] : memref<32x64xbf16, #tpu.memory_space<vmem>>, vector<32x64xbf16>
    %cst_19 = arith.constant dense<0.000000e+00> : vector<8x64xf32>
    %25 = tpu.matmul %4, %24, %cst_19 {dimension_numbers = #tpu.dot_dimension_numbers<[1], [0], [0], [1], [0, 0, 1, 1], [], []>} : vector<8x32xbf16>, vector<32x64xbf16>, vector<8x64xf32> -> vector<8x64xf32>
    %c0_20 = arith.constant 0 : index
    %c0_21 = arith.constant 0 : index
    %26 = vector.load %arg10[%c0_20, %c0_21] : memref<1x64xf32, #tpu.memory_space<vmem>>, vector<1x64xf32>
    %27 = vector.broadcast %26 : vector<1x64xf32> to vector<8x64xf32>
    %28 = arith.addf %25, %27 : vector<8x64xf32>
    %29 = vector.extract_strided_slice %28 {offsets = [0, 0], sizes = [8, 32], strides = [1, 1]} : vector<8x64xf32> to vector<8x32xf32>
    %30 = vector.extract_strided_slice %28 {offsets = [0, 32], sizes = [8, 32], strides = [1, 1]} : vector<8x64xf32> to vector<8x32xf32>
    %31 = vector.extract_strided_slice %23 {offsets = [0, 0], sizes = [8, 8], strides = [1, 1]} : vector<8x32xf32> to vector<8x8xf32>
    %32 = arith.truncf %31 : vector<8x8xf32> to vector<8x8xbf16>
    %33 = vector.extract_strided_slice %29 {offsets = [0, 0], sizes = [8, 8], strides = [1, 1]} : vector<8x32xf32> to vector<8x8xf32>
    %34 = arith.truncf %33 : vector<8x8xf32> to vector<8x8xbf16>
    %cst_22 = arith.constant dense<0.000000e+00> : vector<8x8xf32>
    %35 = tpu.matmul %32, %34, %cst_22 {dimension_numbers = #tpu.dot_dimension_numbers<[1], [1], [0], [0], [0, 0, 1, 0], [], []>} : vector<8x8xbf16>, vector<8x8xbf16>, vector<8x8xf32> -> vector<8x8xf32>
    %cst_23 = arith.constant 0.353553385 : f32
    %36 = vector.broadcast %cst_23 : f32 to vector<8x8xf32>
    %37 = arith.mulf %35, %36 : vector<8x8xf32>
    %38 = arith.addf %37, %11 : vector<8x8xf32>
    %cst_24 = arith.constant -1.000000e+09 : f32
    %39 = vector.broadcast %cst_24 : f32 to vector<8x8xf32>
    %40 = arith.select %17, %38, %39 : vector<8x8xi1>, vector<8x8xf32>
    %cst_25 = arith.constant dense<0xFF800000> : vector<8xf32>
    %41 = vector.multi_reduction <maximumf>, %40, %cst_25 [1] : vector<8x8xf32> to vector<8xf32>
    %42 = vector.shape_cast %41 : vector<8xf32> to vector<8x1xf32>
    %43 = vector.broadcast %42 : vector<8x1xf32> to vector<8x8xf32>
    %44 = arith.subf %40, %43 : vector<8x8xf32>
    %45 = math.exp %44 : vector<8x8xf32>
    %cst_26 = arith.constant dense<0.000000e+00> : vector<8xf32>
    %46 = vector.multi_reduction <add>, %45, %cst_26 [1] : vector<8x8xf32> to vector<8xf32>
    %47 = vector.shape_cast %46 : vector<8xf32> to vector<8x1xf32>
    %48 = tpu.reciprocal %47 {approx = true} : vector<8x1xf32> -> vector<8x1xf32>
    %49 = vector.broadcast %48 : vector<8x1xf32> to vector<8x8xf32>
    %50 = arith.mulf %45, %49 : vector<8x8xf32>
    %51 = arith.truncf %50 : vector<8x8xf32> to vector<8x8xbf16>
    %52 = vector.extract_strided_slice %30 {offsets = [0, 0], sizes = [8, 8], strides = [1, 1]} : vector<8x32xf32> to vector<8x8xf32>
    %53 = arith.truncf %52 : vector<8x8xf32> to vector<8x8xbf16>
    %cst_27 = arith.constant dense<0.000000e+00> : vector<8x8xf32>
    %54 = tpu.matmul %51, %53, %cst_27 {dimension_numbers = #tpu.dot_dimension_numbers<[1], [0], [0], [1], [0, 0, 1, 1], [], []>} : vector<8x8xbf16>, vector<8x8xbf16>, vector<8x8xf32> -> vector<8x8xf32>
    %c0_28 = arith.constant 0 : index
    %c0_29 = arith.constant 0 : index
    %55 = vector.load %arg38[%c0_28, %c0_29] : memref<8x32xf32, #tpu.memory_space<vmem>>, vector<8x8xf32>
    tpu.vector_store %arg38[%c0_28, %c0_29], %54 {strides = array<i32>} : memref<8x32xf32, #tpu.memory_space<vmem>>, vector<8x8xf32>,
    %56 = vector.extract_strided_slice %23 {offsets = [0, 8], sizes = [8, 8], strides = [1, 1]} : vector<8x32xf32> to vector<8x8xf32>
    %57 = arith.truncf %56 : vector<8x8xf32> to vector<8x8xbf16>
    %58 = vector.extract_strided_slice %29 {offsets = [0, 8], sizes = [8, 8], strides = [1, 1]} : vector<8x32xf32> to vector<8x8xf32>
    %59 = arith.truncf %58 : vector<8x8xf32> to vector<8x8xbf16>
    %cst_30 = arith.constant dense<0.000000e+00> : vector<8x8xf32>
    %60 = tpu.matmul %57, %59, %cst_30 {dimension_numbers = #tpu.dot_dimension_numbers<[1], [1], [0], [0], [0, 0, 1, 0], [], []>} : vector<8x8xbf16>, vector<8x8xbf16>, vector<8x8xf32> -> vector<8x8xf32>
    %cst_31 = arith.constant 0.353553385 : f32
    %61 = vector.broadcast %cst_31 : f32 to vector<8x8xf32>
    %62 = arith.mulf %60, %61 : vector<8x8xf32>
    %63 = arith.addf %62, %11 : vector<8x8xf32>
    %cst_32 = arith.constant -1.000000e+09 : f32
    %64 = vector.broadcast %cst_32 : f32 to vector<8x8xf32>
    %65 = arith.select %17, %63, %64 : vector<8x8xi1>, vector<8x8xf32>
    %cst_33 = arith.constant dense<0xFF800000> : vector<8xf32>
    %66 = vector.multi_reduction <maximumf>, %65, %cst_33 [1] : vector<8x8xf32> to vector<8xf32>
    %67 = vector.shape_cast %66 : vector<8xf32> to vector<8x1xf32>
    %68 = vector.broadcast %67 : vector<8x1xf32> to vector<8x8xf32>
    %69 = arith.subf %65, %68 : vector<8x8xf32>
    %70 = math.exp %69 : vector<8x8xf32>
    %cst_34 = arith.constant dense<0.000000e+00> : vector<8xf32>
    %71 = vector.multi_reduction <add>, %70, %cst_34 [1] : vector<8x8xf32> to vector<8xf32>
    %72 = vector.shape_cast %71 : vector<8xf32> to vector<8x1xf32>
    %73 = tpu.reciprocal %72 {approx = true} : vector<8x1xf32> -> vector<8x1xf32>
    %74 = vector.broadcast %73 : vector<8x1xf32> to vector<8x8xf32>
    %75 = arith.mulf %70, %74 : vector<8x8xf32>
    %76 = arith.truncf %75 : vector<8x8xf32> to vector<8x8xbf16>
    %77 = vector.extract_strided_slice %30 {offsets = [0, 8], sizes = [8, 8], strides = [1, 1]} : vector<8x32xf32> to vector<8x8xf32>
    %78 = arith.truncf %77 : vector<8x8xf32> to vector<8x8xbf16>
    %cst_35 = arith.constant dense<0.000000e+00> : vector<8x8xf32>
    %79 = tpu.matmul %76, %78, %cst_35 {dimension_numbers = #tpu.dot_dimension_numbers<[1], [0], [0], [1], [0, 0, 1, 1], [], []>} : vector<8x8xbf16>, vector<8x8xbf16>, vector<8x8xf32> -> vector<8x8xf32>
    %c0_36 = arith.constant 0 : index
    %c8 = arith.constant 8 : index
    %80 = vector.load %arg38[%c0_36, %c8] : memref<8x32xf32, #tpu.memory_space<vmem>>, vector<8x8xf32>
    tpu.vector_store %arg38[%c0_36, %c8], %79 {strides = array<i32>} : memref<8x32xf32, #tpu.memory_space<vmem>>, vector<8x8xf32>,
    %81 = vector.extract_strided_slice %23 {offsets = [0, 16], sizes = [8, 8], strides = [1, 1]} : vector<8x32xf32> to vector<8x8xf32>
    %82 = arith.truncf %81 : vector<8x8xf32> to vector<8x8xbf16>
    %83 = vector.extract_strided_slice %29 {offsets = [0, 16], sizes = [8, 8], strides = [1, 1]} : vector<8x32xf32> to vector<8x8xf32>
    %84 = arith.truncf %83 : vector<8x8xf32> to vector<8x8xbf16>
    %cst_37 = arith.constant dense<0.000000e+00> : vector<8x8xf32>
    %85 = tpu.matmul %82, %84, %cst_37 {dimension_numbers = #tpu.dot_dimension_numbers<[1], [1], [0], [0], [0, 0, 1, 0], [], []>} : vector<8x8xbf16>, vector<8x8xbf16>, vector<8x8xf32> -> vector<8x8xf32>
    %cst_38 = arith.constant 0.353553385 : f32
    %86 = vector.broadcast %cst_38 : f32 to vector<8x8xf32>
    %87 = arith.mulf %85, %86 : vector<8x8xf32>
    %88 = arith.addf %87, %11 : vector<8x8xf32>
    %cst_39 = arith.constant -1.000000e+09 : f32
    %89 = vector.broadcast %cst_39 : f32 to vector<8x8xf32>
    %90 = arith.select %17, %88, %89 : vector<8x8xi1>, vector<8x8xf32>
    %cst_40 = arith.constant dense<0xFF800000> : vector<8xf32>
    %91 = vector.multi_reduction <maximumf>, %90, %cst_40 [1] : vector<8x8xf32> to vector<8xf32>
    %92 = vector.shape_cast %91 : vector<8xf32> to vector<8x1xf32>
    %93 = vector.broadcast %92 : vector<8x1xf32> to vector<8x8xf32>
    %94 = arith.subf %90, %93 : vector<8x8xf32>
    %95 = math.exp %94 : vector<8x8xf32>
    %cst_41 = arith.constant dense<0.000000e+00> : vector<8xf32>
    %96 = vector.multi_reduction <add>, %95, %cst_41 [1] : vector<8x8xf32> to vector<8xf32>
    %97 = vector.shape_cast %96 : vector<8xf32> to vector<8x1xf32>
    %98 = tpu.reciprocal %97 {approx = true} : vector<8x1xf32> -> vector<8x1xf32>
    %99 = vector.broadcast %98 : vector<8x1xf32> to vector<8x8xf32>
    %100 = arith.mulf %95, %99 : vector<8x8xf32>
    %101 = arith.truncf %100 : vector<8x8xf32> to vector<8x8xbf16>
    %102 = vector.extract_strided_slice %30 {offsets = [0, 16], sizes = [8, 8], strides = [1, 1]} : vector<8x32xf32> to vector<8x8xf32>
    %103 = arith.truncf %102 : vector<8x8xf32> to vector<8x8xbf16>
    %cst_42 = arith.constant dense<0.000000e+00> : vector<8x8xf32>
    %104 = tpu.matmul %101, %103, %cst_42 {dimension_numbers = #tpu.dot_dimension_numbers<[1], [0], [0], [1], [0, 0, 1, 1], [], []>} : vector<8x8xbf16>, vector<8x8xbf16>, vector<8x8xf32> -> vector<8x8xf32>
    %c0_43 = arith.constant 0 : index
    %c16 = arith.constant 16 : index
    %105 = vector.load %arg38[%c0_43, %c16] : memref<8x32xf32, #tpu.memory_space<vmem>>, vector<8x8xf32>
    tpu.vector_store %arg38[%c0_43, %c16], %104 {strides = array<i32>} : memref<8x32xf32, #tpu.memory_space<vmem>>, vector<8x8xf32>,
    %106 = vector.extract_strided_slice %23 {offsets = [0, 24], sizes = [8, 8], strides = [1, 1]} : vector<8x32xf32> to vector<8x8xf32>
    %107 = arith.truncf %106 : vector<8x8xf32> to vector<8x8xbf16>
    %108 = vector.extract_strided_slice %29 {offsets = [0, 24], sizes = [8, 8], strides = [1, 1]} : vector<8x32xf32> to vector<8x8xf32>
    %109 = arith.truncf %108 : vector<8x8xf32> to vector<8x8xbf16>
    %cst_44 = arith.constant dense<0.000000e+00> : vector<8x8xf32>
    %110 = tpu.matmul %107, %109, %cst_44 {dimension_numbers = #tpu.dot_dimension_numbers<[1], [1], [0], [0], [0, 0, 1, 0], [], []>} : vector<8x8xbf16>, vector<8x8xbf16>, vector<8x8xf32> -> vector<8x8xf32>
    %cst_45 = arith.constant 0.353553385 : f32
    %111 = vector.broadcast %cst_45 : f32 to vector<8x8xf32>
    %112 = arith.mulf %110, %111 : vector<8x8xf32>
    %113 = arith.addf %112, %11 : vector<8x8xf32>
    %cst_46 = arith.constant -1.000000e+09 : f32
    %114 = vector.broadcast %cst_46 : f32 to vector<8x8xf32>
    %115 = arith.select %17, %113, %114 : vector<8x8xi1>, vector<8x8xf32>
    %cst_47 = arith.constant dense<0xFF800000> : vector<8xf32>
    %116 = vector.multi_reduction <maximumf>, %115, %cst_47 [1] : vector<8x8xf32> to vector<8xf32>
    %117 = vector.shape_cast %116 : vector<8xf32> to vector<8x1xf32>
    %118 = vector.broadcast %117 : vector<8x1xf32> to vector<8x8xf32>
    %119 = arith.subf %115, %118 : vector<8x8xf32>
    %120 = math.exp %119 : vector<8x8xf32>
    %cst_48 = arith.constant dense<0.000000e+00> : vector<8xf32>
    %121 = vector.multi_reduction <add>, %120, %cst_48 [1] : vector<8x8xf32> to vector<8xf32>
    %122 = vector.shape_cast %121 : vector<8xf32> to vector<8x1xf32>
    %123 = tpu.reciprocal %122 {approx = true} : vector<8x1xf32> -> vector<8x1xf32>
    %124 = vector.broadcast %123 : vector<8x1xf32> to vector<8x8xf32>
    %125 = arith.mulf %120, %124 : vector<8x8xf32>
    %126 = arith.truncf %125 : vector<8x8xf32> to vector<8x8xbf16>
    %127 = vector.extract_strided_slice %30 {offsets = [0, 24], sizes = [8, 8], strides = [1, 1]} : vector<8x32xf32> to vector<8x8xf32>
    %128 = arith.truncf %127 : vector<8x8xf32> to vector<8x8xbf16>
    %cst_49 = arith.constant dense<0.000000e+00> : vector<8x8xf32>
    %129 = tpu.matmul %126, %128, %cst_49 {dimension_numbers = #tpu.dot_dimension_numbers<[1], [0], [0], [1], [0, 0, 1, 1], [], []>} : vector<8x8xbf16>, vector<8x8xbf16>, vector<8x8xf32> -> vector<8x8xf32>
    %c0_50 = arith.constant 0 : index
    %c24 = arith.constant 24 : index
    %130 = vector.load %arg38[%c0_50, %c24] : memref<8x32xf32, #tpu.memory_space<vmem>>, vector<8x8xf32>
    tpu.vector_store %arg38[%c0_50, %c24], %129 {strides = array<i32>} : memref<8x32xf32, #tpu.memory_space<vmem>>, vector<8x8xf32>,
    %c0_51 = arith.constant 0 : index
    %c0_52 = arith.constant 0 : index
    %131 = vector.load %arg38[%c0_51, %c0_52] : memref<8x32xf32, #tpu.memory_space<vmem>>, vector<8x32xf32>
    %132 = arith.truncf %131 : vector<8x32xf32> to vector<8x32xbf16>
    %c0_53 = arith.constant 0 : index
    %c0_54 = arith.constant 0 : index
    %133 = vector.load %arg11[%c0_53, %c0_54] : memref<32x32xbf16, #tpu.memory_space<vmem>>, vector<32x32xbf16>
    %cst_55 = arith.constant dense<0.000000e+00> : vector<8x32xf32>
    %134 = tpu.matmul %132, %133, %cst_55 {dimension_numbers = #tpu.dot_dimension_numbers<[1], [0], [0], [1], [0, 0, 1, 1], [], []>} : vector<8x32xbf16>, vector<32x32xbf16>, vector<8x32xf32> -> vector<8x32xf32>
    %c0_56 = arith.constant 0 : index
    %c0_57 = arith.constant 0 : index
    %135 = vector.load %arg12[%c0_56, %c0_57] : memref<1x32xf32, #tpu.memory_space<vmem>>, vector<1x32xf32>
    %136 = vector.broadcast %135 : vector<1x32xf32> to vector<8x32xf32>
    %137 = arith.addf %134, %136 : vector<8x32xf32>
    %138 = arith.addf %137, %1 : vector<8x32xf32>
    %c0_58 = arith.constant 0 : index
    %c0_59 = arith.constant 0 : index
    %139 = vector.load %arg13[%c0_58, %c0_59] : memref<1x32xf32, #tpu.memory_space<vmem>>, vector<1x32xf32>
    %c0_60 = arith.constant 0 : index
    %c0_61 = arith.constant 0 : index
    %140 = vector.load %arg14[%c0_60, %c0_61] : memref<1x32xf32, #tpu.memory_space<vmem>>, vector<1x32xf32>
    %cst_62 = arith.constant dense<0.000000e+00> : vector<8xf32>
    %141 = vector.multi_reduction <add>, %138, %cst_62 [1] : vector<8x32xf32> to vector<8xf32>
    %142 = vector.shape_cast %141 : vector<8xf32> to vector<8x1xf32>
    %cst_63 = arith.constant 3.200000e+01 : f32
    %143 = vector.broadcast %cst_63 : f32 to vector<8x1xf32>
    %144 = arith.divf %142, %143 : vector<8x1xf32>
    %145 = vector.broadcast %144 : vector<8x1xf32> to vector<8x32xf32>
    %146 = arith.subf %138, %145 : vector<8x32xf32>
    %147 = arith.mulf %146, %146 : vector<8x32xf32>
    %cst_64 = arith.constant dense<0.000000e+00> : vector<8xf32>
    %148 = vector.multi_reduction <add>, %147, %cst_64 [1] : vector<8x32xf32> to vector<8xf32>
    %149 = vector.shape_cast %148 : vector<8xf32> to vector<8x1xf32>
    %cst_65 = arith.constant 3.200000e+01 : f32
    %150 = vector.broadcast %cst_65 : f32 to vector<8x1xf32>
    %151 = arith.divf %149, %150 : vector<8x1xf32>
    %152 = vector.broadcast %144 : vector<8x1xf32> to vector<8x32xf32>
    %153 = arith.subf %138, %152 : vector<8x32xf32>
    %cst_66 = arith.constant 9.99999974E-6 : f32
    %154 = vector.broadcast %cst_66 : f32 to vector<8x1xf32>
    %155 = arith.addf %151, %154 : vector<8x1xf32>
    %156 = math.rsqrt %155 : vector<8x1xf32>
    %157 = vector.broadcast %156 : vector<8x1xf32> to vector<8x32xf32>
    %158 = arith.mulf %153, %157 : vector<8x32xf32>
    %159 = vector.broadcast %139 : vector<1x32xf32> to vector<8x32xf32>
    %160 = arith.mulf %158, %159 : vector<8x32xf32>
    %161 = vector.broadcast %140 : vector<1x32xf32> to vector<8x32xf32>
    %162 = arith.addf %160, %161 : vector<8x32xf32>
    %163 = arith.truncf %162 : vector<8x32xf32> to vector<8x32xbf16>
    %c0_67 = arith.constant 0 : index
    %c0_68 = arith.constant 0 : index
    %164 = vector.load %arg15[%c0_67, %c0_68] : memref<32x32xbf16, #tpu.memory_space<vmem>>, vector<32x32xbf16>
    %cst_69 = arith.constant dense<0.000000e+00> : vector<8x32xf32>
    %165 = tpu.matmul %163, %164, %cst_69 {dimension_numbers = #tpu.dot_dimension_numbers<[1], [0], [0], [1], [0, 0, 1, 1], [], []>} : vector<8x32xbf16>, vector<32x32xbf16>, vector<8x32xf32> -> vector<8x32xf32>
    %c0_70 = arith.constant 0 : index
    %c0_71 = arith.constant 0 : index
    %166 = vector.load %arg16[%c0_70, %c0_71] : memref<1x32xf32, #tpu.memory_space<vmem>>, vector<1x32xf32>
    %167 = vector.broadcast %166 : vector<1x32xf32> to vector<8x32xf32>
    %168 = arith.addf %165, %167 : vector<8x32xf32>
    %c0_72 = arith.constant 0 : index
    %c0_73 = arith.constant 0 : index
    %169 = vector.load %arg17[%c0_72, %c0_73] : memref<32x64xbf16, #tpu.memory_space<vmem>>, vector<32x64xbf16>
    %cst_74 = arith.constant dense<0.000000e+00> : vector<8x64xf32>
    %170 = tpu.matmul %7, %169, %cst_74 {dimension_numbers = #tpu.dot_dimension_numbers<[1], [0], [0], [1], [0, 0, 1, 1], [], []>} : vector<8x32xbf16>, vector<32x64xbf16>, vector<8x64xf32> -> vector<8x64xf32>
    %c0_75 = arith.constant 0 : index
    %c0_76 = arith.constant 0 : index
    %171 = vector.load %arg18[%c0_75, %c0_76] : memref<1x64xf32, #tpu.memory_space<vmem>>, vector<1x64xf32>
    %172 = vector.broadcast %171 : vector<1x64xf32> to vector<8x64xf32>
    %173 = arith.addf %170, %172 : vector<8x64xf32>
    %174 = vector.extract_strided_slice %173 {offsets = [0, 0], sizes = [8, 32], strides = [1, 1]} : vector<8x64xf32> to vector<8x32xf32>
    %175 = vector.extract_strided_slice %173 {offsets = [0, 32], sizes = [8, 32], strides = [1, 1]} : vector<8x64xf32> to vector<8x32xf32>
    %176 = vector.extract_strided_slice %168 {offsets = [0, 0], sizes = [8, 8], strides = [1, 1]} : vector<8x32xf32> to vector<8x8xf32>
    %177 = arith.truncf %176 : vector<8x8xf32> to vector<8x8xbf16>
    %178 = vector.extract_strided_slice %174 {offsets = [0, 0], sizes = [8, 8], strides = [1, 1]} : vector<8x32xf32> to vector<8x8xf32>
    %179 = arith.truncf %178 : vector<8x8xf32> to vector<8x8xbf16>
    %cst_77 = arith.constant dense<0.000000e+00> : vector<8x8xf32>
    %180 = tpu.matmul %177, %179, %cst_77 {dimension_numbers = #tpu.dot_dimension_numbers<[1], [1], [0], [0], [0, 0, 1, 0], [], []>} : vector<8x8xbf16>, vector<8x8xbf16>, vector<8x8xf32> -> vector<8x8xf32>
    %cst_78 = arith.constant 0.353553385 : f32
    %181 = vector.broadcast %cst_78 : f32 to vector<8x8xf32>
    %182 = arith.mulf %180, %181 : vector<8x8xf32>
    %183 = arith.addf %182, %11 : vector<8x8xf32>
    %cst_79 = arith.constant dense<0xFF800000> : vector<8xf32>
    %184 = vector.multi_reduction <maximumf>, %183, %cst_79 [1] : vector<8x8xf32> to vector<8xf32>
    %185 = vector.shape_cast %184 : vector<8xf32> to vector<8x1xf32>
    %186 = vector.broadcast %185 : vector<8x1xf32> to vector<8x8xf32>
    %187 = arith.subf %183, %186 : vector<8x8xf32>
    %188 = math.exp %187 : vector<8x8xf32>
    %cst_80 = arith.constant dense<0.000000e+00> : vector<8xf32>
    %189 = vector.multi_reduction <add>, %188, %cst_80 [1] : vector<8x8xf32> to vector<8xf32>
    %190 = vector.shape_cast %189 : vector<8xf32> to vector<8x1xf32>
    %191 = tpu.reciprocal %190 {approx = true} : vector<8x1xf32> -> vector<8x1xf32>
    %192 = vector.broadcast %191 : vector<8x1xf32> to vector<8x8xf32>
    %193 = arith.mulf %188, %192 : vector<8x8xf32>
    %194 = arith.truncf %193 : vector<8x8xf32> to vector<8x8xbf16>
    %195 = vector.extract_strided_slice %175 {offsets = [0, 0], sizes = [8, 8], strides = [1, 1]} : vector<8x32xf32> to vector<8x8xf32>
    %196 = arith.truncf %195 : vector<8x8xf32> to vector<8x8xbf16>
    %cst_81 = arith.constant dense<0.000000e+00> : vector<8x8xf32>
    %197 = tpu.matmul %194, %196, %cst_81 {dimension_numbers = #tpu.dot_dimension_numbers<[1], [0], [0], [1], [0, 0, 1, 1], [], []>} : vector<8x8xbf16>, vector<8x8xbf16>, vector<8x8xf32> -> vector<8x8xf32>
    %c0_82 = arith.constant 0 : index
    %c0_83 = arith.constant 0 : index
    %198 = vector.load %arg38[%c0_82, %c0_83] : memref<8x32xf32, #tpu.memory_space<vmem>>, vector<8x8xf32>
    tpu.vector_store %arg38[%c0_82, %c0_83], %197 {strides = array<i32>} : memref<8x32xf32, #tpu.memory_space<vmem>>, vector<8x8xf32>,
    %199 = vector.extract_strided_slice %168 {offsets = [0, 8], sizes = [8, 8], strides = [1, 1]} : vector<8x32xf32> to vector<8x8xf32>
    %200 = arith.truncf %199 : vector<8x8xf32> to vector<8x8xbf16>
    %201 = vector.extract_strided_slice %174 {offsets = [0, 8], sizes = [8, 8], strides = [1, 1]} : vector<8x32xf32> to vector<8x8xf32>
    %202 = arith.truncf %201 : vector<8x8xf32> to vector<8x8xbf16>
    %cst_84 = arith.constant dense<0.000000e+00> : vector<8x8xf32>
    %203 = tpu.matmul %200, %202, %cst_84 {dimension_numbers = #tpu.dot_dimension_numbers<[1], [1], [0], [0], [0, 0, 1, 0], [], []>} : vector<8x8xbf16>, vector<8x8xbf16>, vector<8x8xf32> -> vector<8x8xf32>
    %cst_85 = arith.constant 0.353553385 : f32
    %204 = vector.broadcast %cst_85 : f32 to vector<8x8xf32>
    %205 = arith.mulf %203, %204 : vector<8x8xf32>
    %206 = arith.addf %205, %11 : vector<8x8xf32>
    %cst_86 = arith.constant dense<0xFF800000> : vector<8xf32>
    %207 = vector.multi_reduction <maximumf>, %206, %cst_86 [1] : vector<8x8xf32> to vector<8xf32>
    %208 = vector.shape_cast %207 : vector<8xf32> to vector<8x1xf32>
    %209 = vector.broadcast %208 : vector<8x1xf32> to vector<8x8xf32>
    %210 = arith.subf %206, %209 : vector<8x8xf32>
    %211 = math.exp %210 : vector<8x8xf32>
    %cst_87 = arith.constant dense<0.000000e+00> : vector<8xf32>
    %212 = vector.multi_reduction <add>, %211, %cst_87 [1] : vector<8x8xf32> to vector<8xf32>
    %213 = vector.shape_cast %212 : vector<8xf32> to vector<8x1xf32>
    %214 = tpu.reciprocal %213 {approx = true} : vector<8x1xf32> -> vector<8x1xf32>
    %215 = vector.broadcast %214 : vector<8x1xf32> to vector<8x8xf32>
    %216 = arith.mulf %211, %215 : vector<8x8xf32>
    %217 = arith.truncf %216 : vector<8x8xf32> to vector<8x8xbf16>
    %218 = vector.extract_strided_slice %175 {offsets = [0, 8], sizes = [8, 8], strides = [1, 1]} : vector<8x32xf32> to vector<8x8xf32>
    %219 = arith.truncf %218 : vector<8x8xf32> to vector<8x8xbf16>
    %cst_88 = arith.constant dense<0.000000e+00> : vector<8x8xf32>
    %220 = tpu.matmul %217, %219, %cst_88 {dimension_numbers = #tpu.dot_dimension_numbers<[1], [0], [0], [1], [0, 0, 1, 1], [], []>} : vector<8x8xbf16>, vector<8x8xbf16>, vector<8x8xf32> -> vector<8x8xf32>
    %c0_89 = arith.constant 0 : index
    %c8_90 = arith.constant 8 : index
    %221 = vector.load %arg38[%c0_89, %c8_90] : memref<8x32xf32, #tpu.memory_space<vmem>>, vector<8x8xf32>
    tpu.vector_store %arg38[%c0_89, %c8_90], %220 {strides = array<i32>} : memref<8x32xf32, #tpu.memory_space<vmem>>, vector<8x8xf32>,
    %222 = vector.extract_strided_slice %168 {offsets = [0, 16], sizes = [8, 8], strides = [1, 1]} : vector<8x32xf32> to vector<8x8xf32>
    %223 = arith.truncf %222 : vector<8x8xf32> to vector<8x8xbf16>
    %224 = vector.extract_strided_slice %174 {offsets = [0, 16], sizes = [8, 8], strides = [1, 1]} : vector<8x32xf32> to vector<8x8xf32>
    %225 = arith.truncf %224 : vector<8x8xf32> to vector<8x8xbf16>
    %cst_91 = arith.constant dense<0.000000e+00> : vector<8x8xf32>
    %226 = tpu.matmul %223, %225, %cst_91 {dimension_numbers = #tpu.dot_dimension_numbers<[1], [1], [0], [0], [0, 0, 1, 0], [], []>} : vector<8x8xbf16>, vector<8x8xbf16>, vector<8x8xf32> -> vector<8x8xf32>
    %cst_92 = arith.constant 0.353553385 : f32
    %227 = vector.broadcast %cst_92 : f32 to vector<8x8xf32>
    %228 = arith.mulf %226, %227 : vector<8x8xf32>
    %229 = arith.addf %228, %11 : vector<8x8xf32>
    %cst_93 = arith.constant dense<0xFF800000> : vector<8xf32>
    %230 = vector.multi_reduction <maximumf>, %229, %cst_93 [1] : vector<8x8xf32> to vector<8xf32>
    %231 = vector.shape_cast %230 : vector<8xf32> to vector<8x1xf32>
    %232 = vector.broadcast %231 : vector<8x1xf32> to vector<8x8xf32>
    %233 = arith.subf %229, %232 : vector<8x8xf32>
    %234 = math.exp %233 : vector<8x8xf32>
    %cst_94 = arith.constant dense<0.000000e+00> : vector<8xf32>
    %235 = vector.multi_reduction <add>, %234, %cst_94 [1] : vector<8x8xf32> to vector<8xf32>
    %236 = vector.shape_cast %235 : vector<8xf32> to vector<8x1xf32>
    %237 = tpu.reciprocal %236 {approx = true} : vector<8x1xf32> -> vector<8x1xf32>
    %238 = vector.broadcast %237 : vector<8x1xf32> to vector<8x8xf32>
    %239 = arith.mulf %234, %238 : vector<8x8xf32>
    %240 = arith.truncf %239 : vector<8x8xf32> to vector<8x8xbf16>
    %241 = vector.extract_strided_slice %175 {offsets = [0, 16], sizes = [8, 8], strides = [1, 1]} : vector<8x32xf32> to vector<8x8xf32>
    %242 = arith.truncf %241 : vector<8x8xf32> to vector<8x8xbf16>
    %cst_95 = arith.constant dense<0.000000e+00> : vector<8x8xf32>
    %243 = tpu.matmul %240, %242, %cst_95 {dimension_numbers = #tpu.dot_dimension_numbers<[1], [0], [0], [1], [0, 0, 1, 1], [], []>} : vector<8x8xbf16>, vector<8x8xbf16>, vector<8x8xf32> -> vector<8x8xf32>
    %c0_96 = arith.constant 0 : index
    %c16_97 = arith.constant 16 : index
    %244 = vector.load %arg38[%c0_96, %c16_97] : memref<8x32xf32, #tpu.memory_space<vmem>>, vector<8x8xf32>
    tpu.vector_store %arg38[%c0_96, %c16_97], %243 {strides = array<i32>} : memref<8x32xf32, #tpu.memory_space<vmem>>, vector<8x8xf32>,
    %245 = vector.extract_strided_slice %168 {offsets = [0, 24], sizes = [8, 8], strides = [1, 1]} : vector<8x32xf32> to vector<8x8xf32>
    %246 = arith.truncf %245 : vector<8x8xf32> to vector<8x8xbf16>
    %247 = vector.extract_strided_slice %174 {offsets = [0, 24], sizes = [8, 8], strides = [1, 1]} : vector<8x32xf32> to vector<8x8xf32>
    %248 = arith.truncf %247 : vector<8x8xf32> to vector<8x8xbf16>
    %cst_98 = arith.constant dense<0.000000e+00> : vector<8x8xf32>
    %249 = tpu.matmul %246, %248, %cst_98 {dimension_numbers = #tpu.dot_dimension_numbers<[1], [1], [0], [0], [0, 0, 1, 0], [], []>} : vector<8x8xbf16>, vector<8x8xbf16>, vector<8x8xf32> -> vector<8x8xf32>
    %cst_99 = arith.constant 0.353553385 : f32
    %250 = vector.broadcast %cst_99 : f32 to vector<8x8xf32>
    %251 = arith.mulf %249, %250 : vector<8x8xf32>
    %252 = arith.addf %251, %11 : vector<8x8xf32>
    %cst_100 = arith.constant dense<0xFF800000> : vector<8xf32>
    %253 = vector.multi_reduction <maximumf>, %252, %cst_100 [1] : vector<8x8xf32> to vector<8xf32>
    %254 = vector.shape_cast %253 : vector<8xf32> to vector<8x1xf32>
    %255 = vector.broadcast %254 : vector<8x1xf32> to vector<8x8xf32>
    %256 = arith.subf %252, %255 : vector<8x8xf32>
    %257 = math.exp %256 : vector<8x8xf32>
    %cst_101 = arith.constant dense<0.000000e+00> : vector<8xf32>
    %258 = vector.multi_reduction <add>, %257, %cst_101 [1] : vector<8x8xf32> to vector<8xf32>
    %259 = vector.shape_cast %258 : vector<8xf32> to vector<8x1xf32>
    %260 = tpu.reciprocal %259 {approx = true} : vector<8x1xf32> -> vector<8x1xf32>
    %261 = vector.broadcast %260 : vector<8x1xf32> to vector<8x8xf32>
    %262 = arith.mulf %257, %261 : vector<8x8xf32>
    %263 = arith.truncf %262 : vector<8x8xf32> to vector<8x8xbf16>
    %264 = vector.extract_strided_slice %175 {offsets = [0, 24], sizes = [8, 8], strides = [1, 1]} : vector<8x32xf32> to vector<8x8xf32>
    %265 = arith.truncf %264 : vector<8x8xf32> to vector<8x8xbf16>
    %cst_102 = arith.constant dense<0.000000e+00> : vector<8x8xf32>
    %266 = tpu.matmul %263, %265, %cst_102 {dimension_numbers = #tpu.dot_dimension_numbers<[1], [0], [0], [1], [0, 0, 1, 1], [], []>} : vector<8x8xbf16>, vector<8x8xbf16>, vector<8x8xf32> -> vector<8x8xf32>
    %c0_103 = arith.constant 0 : index
    %c24_104 = arith.constant 24 : index
    %267 = vector.load %arg38[%c0_103, %c24_104] : memref<8x32xf32, #tpu.memory_space<vmem>>, vector<8x8xf32>
    tpu.vector_store %arg38[%c0_103, %c24_104], %266 {strides = array<i32>} : memref<8x32xf32, #tpu.memory_space<vmem>>, vector<8x8xf32>,
    %c0_105 = arith.constant 0 : index
    %c0_106 = arith.constant 0 : index
    %268 = vector.load %arg38[%c0_105, %c0_106] : memref<8x32xf32, #tpu.memory_space<vmem>>, vector<8x32xf32>
    %269 = arith.truncf %268 : vector<8x32xf32> to vector<8x32xbf16>
    %c0_107 = arith.constant 0 : index
    %c0_108 = arith.constant 0 : index
    %270 = vector.load %arg19[%c0_107, %c0_108] : memref<32x32xbf16, #tpu.memory_space<vmem>>, vector<32x32xbf16>
    %cst_109 = arith.constant dense<0.000000e+00> : vector<8x32xf32>
    %271 = tpu.matmul %269, %270, %cst_109 {dimension_numbers = #tpu.dot_dimension_numbers<[1], [0], [0], [1], [0, 0, 1, 1], [], []>} : vector<8x32xbf16>, vector<32x32xbf16>, vector<8x32xf32> -> vector<8x32xf32>
    %c0_110 = arith.constant 0 : index
    %c0_111 = arith.constant 0 : index
    %272 = vector.load %arg20[%c0_110, %c0_111] : memref<1x32xf32, #tpu.memory_space<vmem>>, vector<1x32xf32>
    %273 = vector.broadcast %272 : vector<1x32xf32> to vector<8x32xf32>
    %274 = arith.addf %271, %273 : vector<8x32xf32>
    %275 = arith.addf %274, %162 : vector<8x32xf32>
    %c0_112 = arith.constant 0 : index
    %c0_113 = arith.constant 0 : index
    %276 = vector.load %arg21[%c0_112, %c0_113] : memref<1x32xf32, #tpu.memory_space<vmem>>, vector<1x32xf32>
    %c0_114 = arith.constant 0 : index
    %c0_115 = arith.constant 0 : index
    %277 = vector.load %arg22[%c0_114, %c0_115] : memref<1x32xf32, #tpu.memory_space<vmem>>, vector<1x32xf32>
    %cst_116 = arith.constant dense<0.000000e+00> : vector<8xf32>
    %278 = vector.multi_reduction <add>, %275, %cst_116 [1] : vector<8x32xf32> to vector<8xf32>
    %279 = vector.shape_cast %278 : vector<8xf32> to vector<8x1xf32>
    %cst_117 = arith.constant 3.200000e+01 : f32
    %280 = vector.broadcast %cst_117 : f32 to vector<8x1xf32>
    %281 = arith.divf %279, %280 : vector<8x1xf32>
    %282 = vector.broadcast %281 : vector<8x1xf32> to vector<8x32xf32>
    %283 = arith.subf %275, %282 : vector<8x32xf32>
    %284 = arith.mulf %283, %283 : vector<8x32xf32>
    %cst_118 = arith.constant dense<0.000000e+00> : vector<8xf32>
    %285 = vector.multi_reduction <add>, %284, %cst_118 [1] : vector<8x32xf32> to vector<8xf32>
    %286 = vector.shape_cast %285 : vector<8xf32> to vector<8x1xf32>
    %cst_119 = arith.constant 3.200000e+01 : f32
    %287 = vector.broadcast %cst_119 : f32 to vector<8x1xf32>
    %288 = arith.divf %286, %287 : vector<8x1xf32>
    %289 = vector.broadcast %281 : vector<8x1xf32> to vector<8x32xf32>
    %290 = arith.subf %275, %289 : vector<8x32xf32>
    %cst_120 = arith.constant 9.99999974E-6 : f32
    %291 = vector.broadcast %cst_120 : f32 to vector<8x1xf32>
    %292 = arith.addf %288, %291 : vector<8x1xf32>
    %293 = math.rsqrt %292 : vector<8x1xf32>
    %294 = vector.broadcast %293 : vector<8x1xf32> to vector<8x32xf32>
    %295 = arith.mulf %290, %294 : vector<8x32xf32>
    %296 = vector.broadcast %276 : vector<1x32xf32> to vector<8x32xf32>
    %297 = arith.mulf %295, %296 : vector<8x32xf32>
    %298 = vector.broadcast %277 : vector<1x32xf32> to vector<8x32xf32>
    %299 = arith.addf %297, %298 : vector<8x32xf32>
    %300 = arith.truncf %299 : vector<8x32xf32> to vector<8x32xbf16>
    %c0_121 = arith.constant 0 : index
    %c0_122 = arith.constant 0 : index
    %301 = vector.load %arg23[%c0_121, %c0_122] : memref<32x32xbf16, #tpu.memory_space<vmem>>, vector<32x32xbf16>
    %cst_123 = arith.constant dense<0.000000e+00> : vector<8x32xf32>
    %302 = tpu.matmul %300, %301, %cst_123 {dimension_numbers = #tpu.dot_dimension_numbers<[1], [0], [0], [1], [0, 0, 1, 1], [], []>} : vector<8x32xbf16>, vector<32x32xbf16>, vector<8x32xf32> -> vector<8x32xf32>
    %c0_124 = arith.constant 0 : index
    %c0_125 = arith.constant 0 : index
    %303 = vector.load %arg24[%c0_124, %c0_125] : memref<1x32xf32, #tpu.memory_space<vmem>>, vector<1x32xf32>
    %304 = vector.broadcast %303 : vector<1x32xf32> to vector<8x32xf32>
    %305 = arith.addf %302, %304 : vector<8x32xf32>
    %c0_126 = arith.constant 0 : index
    %c0_127 = arith.constant 0 : index
    %306 = vector.load %arg25[%c0_126, %c0_127] : memref<32x64xbf16, #tpu.memory_space<vmem>>, vector<32x64xbf16>
    %cst_128 = arith.constant dense<0.000000e+00> : vector<8x64xf32>
    %307 = tpu.matmul %10, %306, %cst_128 {dimension_numbers = #tpu.dot_dimension_numbers<[1], [0], [0], [1], [0, 0, 1, 1], [], []>} : vector<8x32xbf16>, vector<32x64xbf16>, vector<8x64xf32> -> vector<8x64xf32>
    %c0_129 = arith.constant 0 : index
    %c0_130 = arith.constant 0 : index
    %308 = vector.load %arg26[%c0_129, %c0_130] : memref<1x64xf32, #tpu.memory_space<vmem>>, vector<1x64xf32>
    %309 = vector.broadcast %308 : vector<1x64xf32> to vector<8x64xf32>
    %310 = arith.addf %307, %309 : vector<8x64xf32>
    %311 = vector.extract_strided_slice %310 {offsets = [0, 0], sizes = [8, 32], strides = [1, 1]} : vector<8x64xf32> to vector<8x32xf32>
    %312 = vector.extract_strided_slice %310 {offsets = [0, 32], sizes = [8, 32], strides = [1, 1]} : vector<8x64xf32> to vector<8x32xf32>
    %313 = vector.extract_strided_slice %305 {offsets = [0, 0], sizes = [8, 8], strides = [1, 1]} : vector<8x32xf32> to vector<8x8xf32>
    %314 = arith.truncf %313 : vector<8x8xf32> to vector<8x8xbf16>
    %315 = vector.extract_strided_slice %311 {offsets = [0, 0], sizes = [8, 8], strides = [1, 1]} : vector<8x32xf32> to vector<8x8xf32>
    %316 = arith.truncf %315 : vector<8x8xf32> to vector<8x8xbf16>
    %cst_131 = arith.constant dense<0.000000e+00> : vector<8x8xf32>
    %317 = tpu.matmul %314, %316, %cst_131 {dimension_numbers = #tpu.dot_dimension_numbers<[1], [1], [0], [0], [0, 0, 1, 0], [], []>} : vector<8x8xbf16>, vector<8x8xbf16>, vector<8x8xf32> -> vector<8x8xf32>
    %cst_132 = arith.constant 0.353553385 : f32
    %318 = vector.broadcast %cst_132 : f32 to vector<8x8xf32>
    %319 = arith.mulf %317, %318 : vector<8x8xf32>
    %320 = arith.addf %319, %11 : vector<8x8xf32>
    %cst_133 = arith.constant dense<0xFF800000> : vector<8xf32>
    %321 = vector.multi_reduction <maximumf>, %320, %cst_133 [1] : vector<8x8xf32> to vector<8xf32>
    %322 = vector.shape_cast %321 : vector<8xf32> to vector<8x1xf32>
    %323 = vector.broadcast %322 : vector<8x1xf32> to vector<8x8xf32>
    %324 = arith.subf %320, %323 : vector<8x8xf32>
    %325 = math.exp %324 : vector<8x8xf32>
    %cst_134 = arith.constant dense<0.000000e+00> : vector<8xf32>
    %326 = vector.multi_reduction <add>, %325, %cst_134 [1] : vector<8x8xf32> to vector<8xf32>
    %327 = vector.shape_cast %326 : vector<8xf32> to vector<8x1xf32>
    %328 = tpu.reciprocal %327 {approx = true} : vector<8x1xf32> -> vector<8x1xf32>
    %329 = vector.broadcast %328 : vector<8x1xf32> to vector<8x8xf32>
    %330 = arith.mulf %325, %329 : vector<8x8xf32>
    %331 = arith.truncf %330 : vector<8x8xf32> to vector<8x8xbf16>
    %332 = vector.extract_strided_slice %312 {offsets = [0, 0], sizes = [8, 8], strides = [1, 1]} : vector<8x32xf32> to vector<8x8xf32>
    %333 = arith.truncf %332 : vector<8x8xf32> to vector<8x8xbf16>
    %cst_135 = arith.constant dense<0.000000e+00> : vector<8x8xf32>
    %334 = tpu.matmul %331, %333, %cst_135 {dimension_numbers = #tpu.dot_dimension_numbers<[1], [0], [0], [1], [0, 0, 1, 1], [], []>} : vector<8x8xbf16>, vector<8x8xbf16>, vector<8x8xf32> -> vector<8x8xf32>
    %c0_136 = arith.constant 0 : index
    %c0_137 = arith.constant 0 : index
    %335 = vector.load %arg38[%c0_136, %c0_137] : memref<8x32xf32, #tpu.memory_space<vmem>>, vector<8x8xf32>
    tpu.vector_store %arg38[%c0_136, %c0_137], %334 {strides = array<i32>} : memref<8x32xf32, #tpu.memory_space<vmem>>, vector<8x8xf32>,
    %336 = vector.extract_strided_slice %305 {offsets = [0, 8], sizes = [8, 8], strides = [1, 1]} : vector<8x32xf32> to vector<8x8xf32>
    %337 = arith.truncf %336 : vector<8x8xf32> to vector<8x8xbf16>
    %338 = vector.extract_strided_slice %311 {offsets = [0, 8], sizes = [8, 8], strides = [1, 1]} : vector<8x32xf32> to vector<8x8xf32>
    %339 = arith.truncf %338 : vector<8x8xf32> to vector<8x8xbf16>
    %cst_138 = arith.constant dense<0.000000e+00> : vector<8x8xf32>
    %340 = tpu.matmul %337, %339, %cst_138 {dimension_numbers = #tpu.dot_dimension_numbers<[1], [1], [0], [0], [0, 0, 1, 0], [], []>} : vector<8x8xbf16>, vector<8x8xbf16>, vector<8x8xf32> -> vector<8x8xf32>
    %cst_139 = arith.constant 0.353553385 : f32
    %341 = vector.broadcast %cst_139 : f32 to vector<8x8xf32>
    %342 = arith.mulf %340, %341 : vector<8x8xf32>
    %343 = arith.addf %342, %11 : vector<8x8xf32>
    %cst_140 = arith.constant dense<0xFF800000> : vector<8xf32>
    %344 = vector.multi_reduction <maximumf>, %343, %cst_140 [1] : vector<8x8xf32> to vector<8xf32>
    %345 = vector.shape_cast %344 : vector<8xf32> to vector<8x1xf32>
    %346 = vector.broadcast %345 : vector<8x1xf32> to vector<8x8xf32>
    %347 = arith.subf %343, %346 : vector<8x8xf32>
    %348 = math.exp %347 : vector<8x8xf32>
    %cst_141 = arith.constant dense<0.000000e+00> : vector<8xf32>
    %349 = vector.multi_reduction <add>, %348, %cst_141 [1] : vector<8x8xf32> to vector<8xf32>
    %350 = vector.shape_cast %349 : vector<8xf32> to vector<8x1xf32>
    %351 = tpu.reciprocal %350 {approx = true} : vector<8x1xf32> -> vector<8x1xf32>
    %352 = vector.broadcast %351 : vector<8x1xf32> to vector<8x8xf32>
    %353 = arith.mulf %348, %352 : vector<8x8xf32>
    %354 = arith.truncf %353 : vector<8x8xf32> to vector<8x8xbf16>
    %355 = vector.extract_strided_slice %312 {offsets = [0, 8], sizes = [8, 8], strides = [1, 1]} : vector<8x32xf32> to vector<8x8xf32>
    %356 = arith.truncf %355 : vector<8x8xf32> to vector<8x8xbf16>
    %cst_142 = arith.constant dense<0.000000e+00> : vector<8x8xf32>
    %357 = tpu.matmul %354, %356, %cst_142 {dimension_numbers = #tpu.dot_dimension_numbers<[1], [0], [0], [1], [0, 0, 1, 1], [], []>} : vector<8x8xbf16>, vector<8x8xbf16>, vector<8x8xf32> -> vector<8x8xf32>
    %c0_143 = arith.constant 0 : index
    %c8_144 = arith.constant 8 : index
    %358 = vector.load %arg38[%c0_143, %c8_144] : memref<8x32xf32, #tpu.memory_space<vmem>>, vector<8x8xf32>
    tpu.vector_store %arg38[%c0_143, %c8_144], %357 {strides = array<i32>} : memref<8x32xf32, #tpu.memory_space<vmem>>, vector<8x8xf32>,
    %359 = vector.extract_strided_slice %305 {offsets = [0, 16], sizes = [8, 8], strides = [1, 1]} : vector<8x32xf32> to vector<8x8xf32>
    %360 = arith.truncf %359 : vector<8x8xf32> to vector<8x8xbf16>
    %361 = vector.extract_strided_slice %311 {offsets = [0, 16], sizes = [8, 8], strides = [1, 1]} : vector<8x32xf32> to vector<8x8xf32>
    %362 = arith.truncf %361 : vector<8x8xf32> to vector<8x8xbf16>
    %cst_145 = arith.constant dense<0.000000e+00> : vector<8x8xf32>
    %363 = tpu.matmul %360, %362, %cst_145 {dimension_numbers = #tpu.dot_dimension_numbers<[1], [1], [0], [0], [0, 0, 1, 0], [], []>} : vector<8x8xbf16>, vector<8x8xbf16>, vector<8x8xf32> -> vector<8x8xf32>
    %cst_146 = arith.constant 0.353553385 : f32
    %364 = vector.broadcast %cst_146 : f32 to vector<8x8xf32>
    %365 = arith.mulf %363, %364 : vector<8x8xf32>
    %366 = arith.addf %365, %11 : vector<8x8xf32>
    %cst_147 = arith.constant dense<0xFF800000> : vector<8xf32>
    %367 = vector.multi_reduction <maximumf>, %366, %cst_147 [1] : vector<8x8xf32> to vector<8xf32>
    %368 = vector.shape_cast %367 : vector<8xf32> to vector<8x1xf32>
    %369 = vector.broadcast %368 : vector<8x1xf32> to vector<8x8xf32>
    %370 = arith.subf %366, %369 : vector<8x8xf32>
    %371 = math.exp %370 : vector<8x8xf32>
    %cst_148 = arith.constant dense<0.000000e+00> : vector<8xf32>
    %372 = vector.multi_reduction <add>, %371, %cst_148 [1] : vector<8x8xf32> to vector<8xf32>
    %373 = vector.shape_cast %372 : vector<8xf32> to vector<8x1xf32>
    %374 = tpu.reciprocal %373 {approx = true} : vector<8x1xf32> -> vector<8x1xf32>
    %375 = vector.broadcast %374 : vector<8x1xf32> to vector<8x8xf32>
    %376 = arith.mulf %371, %375 : vector<8x8xf32>
    %377 = arith.truncf %376 : vector<8x8xf32> to vector<8x8xbf16>
    %378 = vector.extract_strided_slice %312 {offsets = [0, 16], sizes = [8, 8], strides = [1, 1]} : vector<8x32xf32> to vector<8x8xf32>
    %379 = arith.truncf %378 : vector<8x8xf32> to vector<8x8xbf16>
    %cst_149 = arith.constant dense<0.000000e+00> : vector<8x8xf32>
    %380 = tpu.matmul %377, %379, %cst_149 {dimension_numbers = #tpu.dot_dimension_numbers<[1], [0], [0], [1], [0, 0, 1, 1], [], []>} : vector<8x8xbf16>, vector<8x8xbf16>, vector<8x8xf32> -> vector<8x8xf32>
    %c0_150 = arith.constant 0 : index
    %c16_151 = arith.constant 16 : index
    %381 = vector.load %arg38[%c0_150, %c16_151] : memref<8x32xf32, #tpu.memory_space<vmem>>, vector<8x8xf32>
    tpu.vector_store %arg38[%c0_150, %c16_151], %380 {strides = array<i32>} : memref<8x32xf32, #tpu.memory_space<vmem>>, vector<8x8xf32>,
    %382 = vector.extract_strided_slice %305 {offsets = [0, 24], sizes = [8, 8], strides = [1, 1]} : vector<8x32xf32> to vector<8x8xf32>
    %383 = arith.truncf %382 : vector<8x8xf32> to vector<8x8xbf16>
    %384 = vector.extract_strided_slice %311 {offsets = [0, 24], sizes = [8, 8], strides = [1, 1]} : vector<8x32xf32> to vector<8x8xf32>
    %385 = arith.truncf %384 : vector<8x8xf32> to vector<8x8xbf16>
    %cst_152 = arith.constant dense<0.000000e+00> : vector<8x8xf32>
    %386 = tpu.matmul %383, %385, %cst_152 {dimension_numbers = #tpu.dot_dimension_numbers<[1], [1], [0], [0], [0, 0, 1, 0], [], []>} : vector<8x8xbf16>, vector<8x8xbf16>, vector<8x8xf32> -> vector<8x8xf32>
    %cst_153 = arith.constant 0.353553385 : f32
    %387 = vector.broadcast %cst_153 : f32 to vector<8x8xf32>
    %388 = arith.mulf %386, %387 : vector<8x8xf32>
    %389 = arith.addf %388, %11 : vector<8x8xf32>
    %cst_154 = arith.constant dense<0xFF800000> : vector<8xf32>
    %390 = vector.multi_reduction <maximumf>, %389, %cst_154 [1] : vector<8x8xf32> to vector<8xf32>
    %391 = vector.shape_cast %390 : vector<8xf32> to vector<8x1xf32>
    %392 = vector.broadcast %391 : vector<8x1xf32> to vector<8x8xf32>
    %393 = arith.subf %389, %392 : vector<8x8xf32>
    %394 = math.exp %393 : vector<8x8xf32>
    %cst_155 = arith.constant dense<0.000000e+00> : vector<8xf32>
    %395 = vector.multi_reduction <add>, %394, %cst_155 [1] : vector<8x8xf32> to vector<8xf32>
    %396 = vector.shape_cast %395 : vector<8xf32> to vector<8x1xf32>
    %397 = tpu.reciprocal %396 {approx = true} : vector<8x1xf32> -> vector<8x1xf32>
    %398 = vector.broadcast %397 : vector<8x1xf32> to vector<8x8xf32>
    %399 = arith.mulf %394, %398 : vector<8x8xf32>
    %400 = arith.truncf %399 : vector<8x8xf32> to vector<8x8xbf16>
    %401 = vector.extract_strided_slice %312 {offsets = [0, 24], sizes = [8, 8], strides = [1, 1]} : vector<8x32xf32> to vector<8x8xf32>
    %402 = arith.truncf %401 : vector<8x8xf32> to vector<8x8xbf16>
    %cst_156 = arith.constant dense<0.000000e+00> : vector<8x8xf32>
    %403 = tpu.matmul %400, %402, %cst_156 {dimension_numbers = #tpu.dot_dimension_numbers<[1], [0], [0], [1], [0, 0, 1, 1], [], []>} : vector<8x8xbf16>, vector<8x8xbf16>, vector<8x8xf32> -> vector<8x8xf32>
    %c0_157 = arith.constant 0 : index
    %c24_158 = arith.constant 24 : index
    %404 = vector.load %arg38[%c0_157, %c24_158] : memref<8x32xf32, #tpu.memory_space<vmem>>, vector<8x8xf32>
    tpu.vector_store %arg38[%c0_157, %c24_158], %403 {strides = array<i32>} : memref<8x32xf32, #tpu.memory_space<vmem>>, vector<8x8xf32>,
    %c0_159 = arith.constant 0 : index
    %c0_160 = arith.constant 0 : index
    %405 = vector.load %arg38[%c0_159, %c0_160] : memref<8x32xf32, #tpu.memory_space<vmem>>, vector<8x32xf32>
    %406 = arith.truncf %405 : vector<8x32xf32> to vector<8x32xbf16>
    %c0_161 = arith.constant 0 : index
    %c0_162 = arith.constant 0 : index
    %407 = vector.load %arg27[%c0_161, %c0_162] : memref<32x32xbf16, #tpu.memory_space<vmem>>, vector<32x32xbf16>
    %cst_163 = arith.constant dense<0.000000e+00> : vector<8x32xf32>
    %408 = tpu.matmul %406, %407, %cst_163 {dimension_numbers = #tpu.dot_dimension_numbers<[1], [0], [0], [1], [0, 0, 1, 1], [], []>} : vector<8x32xbf16>, vector<32x32xbf16>, vector<8x32xf32> -> vector<8x32xf32>
    %c0_164 = arith.constant 0 : index
    %c0_165 = arith.constant 0 : index
    %409 = vector.load %arg28[%c0_164, %c0_165] : memref<1x32xf32, #tpu.memory_space<vmem>>, vector<1x32xf32>
    %410 = vector.broadcast %409 : vector<1x32xf32> to vector<8x32xf32>
    %411 = arith.addf %408, %410 : vector<8x32xf32>
    %412 = arith.addf %411, %299 : vector<8x32xf32>
    %c0_166 = arith.constant 0 : index
    %c0_167 = arith.constant 0 : index
    %413 = vector.load %arg29[%c0_166, %c0_167] : memref<1x32xf32, #tpu.memory_space<vmem>>, vector<1x32xf32>
    %c0_168 = arith.constant 0 : index
    %c0_169 = arith.constant 0 : index
    %414 = vector.load %arg30[%c0_168, %c0_169] : memref<1x32xf32, #tpu.memory_space<vmem>>, vector<1x32xf32>
    %cst_170 = arith.constant dense<0.000000e+00> : vector<8xf32>
    %415 = vector.multi_reduction <add>, %412, %cst_170 [1] : vector<8x32xf32> to vector<8xf32>
    %416 = vector.shape_cast %415 : vector<8xf32> to vector<8x1xf32>
    %cst_171 = arith.constant 3.200000e+01 : f32
    %417 = vector.broadcast %cst_171 : f32 to vector<8x1xf32>
    %418 = arith.divf %416, %417 : vector<8x1xf32>
    %419 = vector.broadcast %418 : vector<8x1xf32> to vector<8x32xf32>
    %420 = arith.subf %412, %419 : vector<8x32xf32>
    %421 = arith.mulf %420, %420 : vector<8x32xf32>
    %cst_172 = arith.constant dense<0.000000e+00> : vector<8xf32>
    %422 = vector.multi_reduction <add>, %421, %cst_172 [1] : vector<8x32xf32> to vector<8xf32>
    %423 = vector.shape_cast %422 : vector<8xf32> to vector<8x1xf32>
    %cst_173 = arith.constant 3.200000e+01 : f32
    %424 = vector.broadcast %cst_173 : f32 to vector<8x1xf32>
    %425 = arith.divf %423, %424 : vector<8x1xf32>
    %426 = vector.broadcast %418 : vector<8x1xf32> to vector<8x32xf32>
    %427 = arith.subf %412, %426 : vector<8x32xf32>
    %cst_174 = arith.constant 9.99999974E-6 : f32
    %428 = vector.broadcast %cst_174 : f32 to vector<8x1xf32>
    %429 = arith.addf %425, %428 : vector<8x1xf32>
    %430 = math.rsqrt %429 : vector<8x1xf32>
    %431 = vector.broadcast %430 : vector<8x1xf32> to vector<8x32xf32>
    %432 = arith.mulf %427, %431 : vector<8x32xf32>
    %433 = vector.broadcast %413 : vector<1x32xf32> to vector<8x32xf32>
    %434 = arith.mulf %432, %433 : vector<8x32xf32>
    %435 = vector.broadcast %414 : vector<1x32xf32> to vector<8x32xf32>
    %436 = arith.addf %434, %435 : vector<8x32xf32>
    %437 = arith.truncf %436 : vector<8x32xf32> to vector<8x32xbf16>
    %c0_175 = arith.constant 0 : index
    %c0_176 = arith.constant 0 : index
    %438 = vector.load %arg31[%c0_175, %c0_176] : memref<32x64xbf16, #tpu.memory_space<vmem>>, vector<32x64xbf16>
    %cst_177 = arith.constant dense<0.000000e+00> : vector<8x64xf32>
    %439 = tpu.matmul %437, %438, %cst_177 {dimension_numbers = #tpu.dot_dimension_numbers<[1], [0], [0], [1], [0, 0, 1, 1], [], []>} : vector<8x32xbf16>, vector<32x64xbf16>, vector<8x64xf32> -> vector<8x64xf32>
    %c0_178 = arith.constant 0 : index
    %c0_179 = arith.constant 0 : index
    %440 = vector.load %arg32[%c0_178, %c0_179] : memref<1x64xf32, #tpu.memory_space<vmem>>, vector<1x64xf32>
    %441 = vector.broadcast %440 : vector<1x64xf32> to vector<8x64xf32>
    %442 = arith.addf %439, %441 : vector<8x64xf32>
    %cst_180 = arith.constant 0.000000e+00 : f32
    %443 = vector.broadcast %cst_180 : f32 to vector<8x64xf32>
    %444 = arith.maximumf %442, %443 : vector<8x64xf32>
    %445 = arith.truncf %444 : vector<8x64xf32> to vector<8x64xbf16>
    %c0_181 = arith.constant 0 : index
    %c0_182 = arith.constant 0 : index
    %446 = vector.load %arg33[%c0_181, %c0_182] : memref<64x32xbf16, #tpu.memory_space<vmem>>, vector<64x32xbf16>
    %cst_183 = arith.constant dense<0.000000e+00> : vector<8x32xf32>
    %447 = tpu.matmul %445, %446, %cst_183 {dimension_numbers = #tpu.dot_dimension_numbers<[1], [0], [0], [1], [0, 0, 1, 1], [], []>} : vector<8x64xbf16>, vector<64x32xbf16>, vector<8x32xf32> -> vector<8x32xf32>
    %c0_184 = arith.constant 0 : index
    %c0_185 = arith.constant 0 : index
    %448 = vector.load %arg34[%c0_184, %c0_185] : memref<1x32xf32, #tpu.memory_space<vmem>>, vector<1x32xf32>
    %449 = vector.broadcast %448 : vector<1x32xf32> to vector<8x32xf32>
    %450 = arith.addf %447, %449 : vector<8x32xf32>
    %451 = arith.addf %436, %450 : vector<8x32xf32>
    %c0_186 = arith.constant 0 : index
    %c0_187 = arith.constant 0 : index
    %452 = vector.load %arg35[%c0_186, %c0_187] : memref<1x32xf32, #tpu.memory_space<vmem>>, vector<1x32xf32>
    %c0_188 = arith.constant 0 : index
    %c0_189 = arith.constant 0 : index
    %453 = vector.load %arg36[%c0_188, %c0_189] : memref<1x32xf32, #tpu.memory_space<vmem>>, vector<1x32xf32>
    %cst_190 = arith.constant dense<0.000000e+00> : vector<8xf32>
    %454 = vector.multi_reduction <add>, %451, %cst_190 [1] : vector<8x32xf32> to vector<8xf32>
    %455 = vector.shape_cast %454 : vector<8xf32> to vector<8x1xf32>
    %cst_191 = arith.constant 3.200000e+01 : f32
    %456 = vector.broadcast %cst_191 : f32 to vector<8x1xf32>
    %457 = arith.divf %455, %456 : vector<8x1xf32>
    %458 = vector.broadcast %457 : vector<8x1xf32> to vector<8x32xf32>
    %459 = arith.subf %451, %458 : vector<8x32xf32>
    %460 = arith.mulf %459, %459 : vector<8x32xf32>
    %cst_192 = arith.constant dense<0.000000e+00> : vector<8xf32>
    %461 = vector.multi_reduction <add>, %460, %cst_192 [1] : vector<8x32xf32> to vector<8xf32>
    %462 = vector.shape_cast %461 : vector<8xf32> to vector<8x1xf32>
    %cst_193 = arith.constant 3.200000e+01 : f32
    %463 = vector.broadcast %cst_193 : f32 to vector<8x1xf32>
    %464 = arith.divf %462, %463 : vector<8x1xf32>
    %465 = vector.broadcast %457 : vector<8x1xf32> to vector<8x32xf32>
    %466 = arith.subf %451, %465 : vector<8x32xf32>
    %cst_194 = arith.constant 9.99999974E-6 : f32
    %467 = vector.broadcast %cst_194 : f32 to vector<8x1xf32>
    %468 = arith.addf %464, %467 : vector<8x1xf32>
    %469 = math.rsqrt %468 : vector<8x1xf32>
    %470 = vector.broadcast %469 : vector<8x1xf32> to vector<8x32xf32>
    %471 = arith.mulf %466, %470 : vector<8x32xf32>
    %472 = vector.broadcast %452 : vector<1x32xf32> to vector<8x32xf32>
    %473 = arith.mulf %471, %472 : vector<8x32xf32>
    %474 = vector.broadcast %453 : vector<1x32xf32> to vector<8x32xf32>
    %475 = arith.addf %473, %474 : vector<8x32xf32>
    %c0_195 = arith.constant 0 : index
    %c0_196 = arith.constant 0 : index
    %c0_197 = arith.constant 0 : index
    %476 = vector.load %arg37[%c0_195, %c0_196, %c0_197] : memref<1x8x32xf32, #tpu.memory_space<vmem>>, vector<1x8x32xf32>
    %477 = vector.shape_cast %476 : vector<1x8x32xf32> to vector<8x32xf32>
    %478 = vector.shape_cast %475 : vector<8x32xf32> to vector<1x8x32xf32>
    tpu.vector_store %arg37[%c0_195, %c0_196, %c0_197], %478 {strides = array<i32>} : memref<1x8x32xf32, #tpu.memory_space<vmem>>, vector<1x8x32xf32>,
    return
  }
  func.func @transform_0(%arg0: i32, %arg1: i32) -> (i32, i32, i32) {
    %c0_i32 = arith.constant 0 : i32
    %c0_i32_0 = arith.constant 0 : i32
    return %arg0, %arg1, %c0_i32 : i32, i32, i32
  }
  func.func @transform_1(%arg0: i32, %arg1: i32) -> (i32, i32, i32) {
    %c0_i32 = arith.constant 0 : i32
    %c0_i32_0 = arith.constant 0 : i32
    %c0_i32_1 = arith.constant 0 : i32
    return %arg0, %c0_i32, %c0_i32_0 : i32, i32, i32
  }
  func.func @transform_2(%arg0: i32, %arg1: i32) -> (i32, i32, i32) {
    %c0_i32 = arith.constant 0 : i32
    %c0_i32_0 = arith.constant 0 : i32
    %c0_i32_1 = arith.constant 0 : i32
    return %arg0, %c0_i32, %c0_i32_0 : i32, i32, i32
  }
  func.func @transform_3(%arg0: i32, %arg1: i32) -> (i32, i32, i32) {
    %c0_i32 = arith.constant 0 : i32
    %c0_i32_0 = arith.constant 0 : i32
    %c0_i32_1 = arith.constant 0 : i32
    return %arg0, %c0_i32, %c0_i32_0 : i32, i32, i32
  }
  func.func @transform_4(%arg0: i32, %arg1: i32) -> (i32, i32) {
    %c0_i32 = arith.constant 0 : i32
    %c0_i32_0 = arith.constant 0 : i32
    return %arg1, %c0_i32 : i32, i32
  }
  func.func @transform_5(%arg0: i32, %arg1: i32) -> (i32, i32) {
    %c0_i32 = arith.constant 0 : i32
    %c0_i32_0 = arith.constant 0 : i32
    %c0_i32_1 = arith.constant 0 : i32
    return %c0_i32, %c0_i32_0 : i32, i32
  }
  func.func @transform_6(%arg0: i32, %arg1: i32) -> (i32, i32) {
    %c0_i32 = arith.constant 0 : i32
    %c0_i32_0 = arith.constant 0 : i32
    %c0_i32_1 = arith.constant 0 : i32
    return %c0_i32, %c0_i32_0 : i32, i32
  }
  func.func @transform_7(%arg0: i32, %arg1: i32) -> (i32, i32) {
    %c0_i32 = arith.constant 0 : i32
    %c0_i32_0 = arith.constant 0 : i32
    %c0_i32_1 = arith.constant 0 : i32
    return %c0_i32, %c0_i32_0 : i32, i32
  }
  func.func @transform_8(%arg0: i32, %arg1: i32) -> (i32, i32) {
    %c0_i32 = arith.constant 0 : i32
    %c0_i32_0 = arith.constant 0 : i32
    %c0_i32_1 = arith.constant 0 : i32
    return %c0_i32, %c0_i32_0 : i32, i32
  }
  func.func @transform_9(%arg0: i32, %arg1: i32) -> (i32, i32) {
    %c0_i32 = arith.constant 0 : i32
    %c0_i32_0 = arith.constant 0 : i32
    %c0_i32_1 = arith.constant 0 : i32
    return %c0_i32, %c0_i32_0 : i32, i32
  }
  func.func @transform_10(%arg0: i32, %arg1: i32) -> (i32, i32) {
    %c0_i32 = arith.constant 0 : i32
    %c0_i32_0 = arith.constant 0 : i32
    %c0_i32_1 = arith.constant 0 : i32
    return %c0_i32, %c0_i32_0 : i32, i32
  }
  func.func @transform_11(%arg0: i32, %arg1: i32) -> (i32, i32) {
    %c0_i32 = arith.constant 0 : i32
    %c0_i32_0 = arith.constant 0 : i32
    %c0_i32_1 = arith.constant 0 : i32
    return %c0_i32, %c0_i32_0 : i32, i32
  }
  func.func @transform_12(%arg0: i32, %arg1: i32) -> (i32, i32) {
    %c0_i32 = arith.constant 0 : i32
    %c0_i32_0 = arith.constant 0 : i32
    %c0_i32_1 = arith.constant 0 : i32
    return %c0_i32, %c0_i32_0 : i32, i32
  }
  func.func @transform_13(%arg0: i32, %arg1: i32) -> (i32, i32) {
    %c0_i32 = arith.constant 0 : i32
    %c0_i32_0 = arith.constant 0 : i32
    %c0_i32_1 = arith.constant 0 : i32
    return %c0_i32, %c0_i32_0 : i32, i32
  }
  func.func @transform_14(%arg0: i32, %arg1: i32) -> (i32, i32) {
    %c0_i32 = arith.constant 0 : i32
    %c0_i32_0 = arith.constant 0 : i32
    %c0_i32_1 = arith.constant 0 : i32
    return %c0_i32, %c0_i32_0 : i32, i32
  }
  func.func @transform_15(%arg0: i32, %arg1: i32) -> (i32, i32) {
    %c0_i32 = arith.constant 0 : i32
    %c0_i32_0 = arith.constant 0 : i32
    %c0_i32_1 = arith.constant 0 : i32
    return %c0_i32, %c0_i32_0 : i32, i32
  }
  func.func @transform_16(%arg0: i32, %arg1: i32) -> (i32, i32) {
    %c0_i32 = arith.constant 0 : i32
    %c0_i32_0 = arith.constant 0 : i32
    %c0_i32_1 = arith.constant 0 : i32
    return %c0_i32, %c0_i32_0 : i32, i32
  }
  func.func @transform_17(%arg0: i32, %arg1: i32) -> (i32, i32) {
    %c0_i32 = arith.constant 0 : i32
    %c0_i32_0 = arith.constant 0 : i32
    %c0_i32_1 = arith.constant 0 : i32
    return %c0_i32, %c0_i32_0 : i32, i32
  }
  func.func @transform_18(%arg0: i32, %arg1: i32) -> (i32, i32) {
    %c0_i32 = arith.constant 0 : i32
    %c0_i32_0 = arith.constant 0 : i32
    %c0_i32_1 = arith.constant 0 : i32
    return %c0_i32, %c0_i32_0 : i32, i32
  }
  func.func @transform_19(%arg0: i32, %arg1: i32) -> (i32, i32) {
    %c0_i32 = arith.constant 0 : i32
    %c0_i32_0 = arith.constant 0 : i32
    %c0_i32_1 = arith.constant 0 : i32
    return %c0_i32, %c0_i32_0 : i32, i32
  }
  func.func @transform_20(%arg0: i32, %arg1: i32) -> (i32, i32) {
    %c0_i32 = arith.constant 0 : i32
    %c0_i32_0 = arith.constant 0 : i32
    %c0_i32_1 = arith.constant 0 : i32
    return %c0_i32, %c0_i32_0 : i32, i32
  }
  func.func @transform_21(%arg0: i32, %arg1: i32) -> (i32, i32) {
    %c0_i32 = arith.constant 0 : i32
    %c0_i32_0 = arith.constant 0 : i32
    %c0_i32_1 = arith.constant 0 : i32
    return %c0_i32, %c0_i32_0 : i32, i32
  }
  func.func @transform_22(%arg0: i32, %arg1: i32) -> (i32, i32) {
    %c0_i32 = arith.constant 0 : i32
    %c0_i32_0 = arith.constant 0 : i32
    %c0_i32_1 = arith.constant 0 : i32
    return %c0_i32, %c0_i32_0 : i32, i32
  }
  func.func @transform_23(%arg0: i32, %arg1: i32) -> (i32, i32) {
    %c0_i32 = arith.constant 0 : i32
    %c0_i32_0 = arith.constant 0 : i32
    %c0_i32_1 = arith.constant 0 : i32
    return %c0_i32, %c0_i32_0 : i32, i32
  }
  func.func @transform_24(%arg0: i32, %arg1: i32) -> (i32, i32) {
    %c0_i32 = arith.constant 0 : i32
    %c0_i32_0 = arith.constant 0 : i32
    %c0_i32_1 = arith.constant 0 : i32
    return %c0_i32, %c0_i32_0 : i32, i32
  }
  func.func @transform_25(%arg0: i32, %arg1: i32) -> (i32, i32) {
    %c0_i32 = arith.constant 0 : i32
    %c0_i32_0 = arith.constant 0 : i32
    %c0_i32_1 = arith.constant 0 : i32
    return %c0_i32, %c0_i32_0 : i32, i32
  }
  func.func @transform_26(%arg0: i32, %arg1: i32) -> (i32, i32) {
    %c0_i32 = arith.constant 0 : i32
    %c0_i32_0 = arith.constant 0 : i32
    %c0_i32_1 = arith.constant 0 : i32
    return %c0_i32, %c0_i32_0 : i32, i32
  }
  func.func @transform_27(%arg0: i32, %arg1: i32) -> (i32, i32) {
    %c0_i32 = arith.constant 0 : i32
    %c0_i32_0 = arith.constant 0 : i32
    %c0_i32_1 = arith.constant 0 : i32
    return %c0_i32, %c0_i32_0 : i32, i32
  }
  func.func @transform_28(%arg0: i32, %arg1: i32) -> (i32, i32) {
    %c0_i32 = arith.constant 0 : i32
    %c0_i32_0 = arith.constant 0 : i32
    %c0_i32_1 = arith.constant 0 : i32
    return %c0_i32, %c0_i32_0 : i32, i32
  }
  func.func @transform_29(%arg0: i32, %arg1: i32) -> (i32, i32) {
    %c0_i32 = arith.constant 0 : i32
    %c0_i32_0 = arith.constant 0 : i32
    %c0_i32_1 = arith.constant 0 : i32
    return %c0_i32, %c0_i32_0 : i32, i32
  }
  func.func @transform_30(%arg0: i32, %arg1: i32) -> (i32, i32) {
    %c0_i32 = arith.constant 0 : i32
    %c0_i32_0 = arith.constant 0 : i32
    %c0_i32_1 = arith.constant 0 : i32
    return %c0_i32, %c0_i32_0 : i32, i32
  }
  func.func @transform_31(%arg0: i32, %arg1: i32) -> (i32, i32) {
    %c0_i32 = arith.constant 0 : i32
    %c0_i32_0 = arith.constant 0 : i32
    %c0_i32_1 = arith.constant 0 : i32
    return %c0_i32, %c0_i32_0 : i32, i32
  }
  func.func @transform_32(%arg0: i32, %arg1: i32) -> (i32, i32) {
    %c0_i32 = arith.constant 0 : i32
    %c0_i32_0 = arith.constant 0 : i32
    %c0_i32_1 = arith.constant 0 : i32
    return %c0_i32, %c0_i32_0 : i32, i32
  }
  func.func @transform_33(%arg0: i32, %arg1: i32) -> (i32, i32) {
    %c0_i32 = arith.constant 0 : i32
    %c0_i32_0 = arith.constant 0 : i32
    %c0_i32_1 = arith.constant 0 : i32
    return %c0_i32, %c0_i32_0 : i32, i32
  }
  func.func @transform_34(%arg0: i32, %arg1: i32) -> (i32, i32) {
    %c0_i32 = arith.constant 0 : i32
    %c0_i32_0 = arith.constant 0 : i32
    %c0_i32_1 = arith.constant 0 : i32
    return %c0_i32, %c0_i32_0 : i32, i32
  }
  func.func @transform_35(%arg0: i32, %arg1: i32) -> (i32, i32, i32) {
    %c0_i32 = arith.constant 0 : i32
    %c0_i32_0 = arith.constant 0 : i32
    return %arg0, %arg1, %c0_i32 : i32, i32, i32
  }
}

</mosaic_0001>

<bundles_post_ra>
// kernel: decoder_layer_a.1
= control target key start
LH: loop header
LB: loop body
LE: loop exit
PB: predicated region body
PF: predicated region fallthrough
CT: control target
= control target key end

     0   :  { %s5349_s6 = smov 1   ;;  %s5350_s10 = smov 2   ;;  %s6307_s0 = inlined_call_operand.smem [shape: u32[36], index: -1, kind: input, shape index: {}] }
   0x1   :  { %s5423_s5 = sld [smem:[%s6307_s0]]   ;;  %s5351_s14 = smov 3  }
   0x2   :  { %s5428_s9 = sld [smem:[%s6307_s0 + %s5349_s6]]   ;;  %s5352_s18 = smov 4  }
   0x3   :  { %s5433_s13 = sld [smem:[%s6307_s0 + %s5350_s10]]   ;;  %s5353_s22 = smov 5  }
   0x4   :  { %s5438_s17 = sld [smem:[%s6307_s0 + %s5351_s14]]   ;;  %s5354_s26 = smov 6  }
   0x5   :  { %s5443_s21 = sld [smem:[%s6307_s0 + %s5352_s18]]   ;;  %s5355_s30 = smov 7  }
   0x6   :  { %s5448_s25 = sld [smem:[%s6307_s0 + %s5353_s22]]   ;;  %s5356_s4 = smov 8  }
   0x7   :  { %6351 = sst [smem:[#allocation40_spill]] %s5423_s5  ;;  %s5357_s10 = smov 9  }
   0x8   :  { %6352 = sst [smem:[#allocation41_spill]] %s5428_s9  ;;  %s5358_s15 = smov 10  }
   0x9   :  { %6353 = sst [smem:[#allocation42_spill]] %s5433_s13  ;;  %s5359_s20 = smov 11  }
   0xa   :  { %6354 = sst [smem:[#allocation43_spill]] %s5438_s17  ;;  %s5361_s1 = smov 13  }
   0xb   :  { %6355 = sst [smem:[#allocation44_spill]] %s5443_s21  ;;  %s5362_s7 = smov 14  }
   0xc   :  { %6356 = sst [smem:[#allocation45_spill]] %s5448_s25  ;;  %s5364_s22 = smov 16  }
   0xd   :  { %s5453_s29 = sld [smem:[%s6307_s0 + %s5354_s26]]   ;;  %s5360_s26 = smov 12  }
   0xe   :  { %s5458_s3 = sld [smem:[%s6307_s0 + %s5355_s30]]   ;;  %s5365_s28 = smov 17  }
   0xf   :  { %s5463_s8 = sld [smem:[%s6307_s0 + %s5356_s4]]  }
  0x10   :  { %s5468_s14 = sld [smem:[%s6307_s0 + %s5357_s10]]  }
  0x11   :  { %s5473_s19 = sld [smem:[%s6307_s0 + %s5358_s15]]   ;;  %s5363_s15 = smov 15  }
  0x12   :  { %s5478_s24 = sld [smem:[%s6307_s0 + %s5359_s20]]  }
  0x13   :  { %6357 = sst [smem:[#allocation46_spill]] %s5453_s29 }
  0x14   :  { %6358 = sst [smem:[#allocation47_spill]] %s5458_s3 }
  0x15   :  { %6359 = sst [smem:[#allocation48_spill]] %s5463_s8 }
  0x16   :  { %6360 = sst [smem:[#allocation49_spill]] %s5468_s14 }
  0x17   :  { %6361 = sst [smem:[#allocation50_spill]] %s5473_s19 }
  0x18   :  { %6362 = sst [smem:[#allocation51_spill]] %s5478_s24 }
  0x19   :  { %s5483_s30 = sld [smem:[%s6307_s0 + %s5360_s26]]  }
  0x1a   :  { %s5488_s6 = sld [smem:[%s6307_s0 + %s5361_s1]]  }
  0x1b   :  { %s5493_s12 = sld [smem:[%s6307_s0 + %s5362_s7]]   ;;  %s5366_s7 = smov 18  }
  0x1c   :  { %s5498_s20 = sld [smem:[%s6307_s0 + %s5363_s15]]   ;;  %s5367_s15 = smov 19  }
  0x1d   :  { %s5503_s27 = sld [smem:[%s6307_s0 + %s5364_s22]]   ;;  %s5368_s22 = smov 20  }
  0x1e   :  { %s5508_s4 = sld [smem:[%s6307_s0 + %s5365_s28]]   ;;  %s5369_s28 = smov 21  }
  0x1f   :  { %6363 = sst [smem:[#allocation52_spill]] %s5483_s30 }
  0x20   :  { %6364 = sst [smem:[#allocation53_spill]] %s5488_s6 }
  0x21   :  { %6365 = sst [smem:[#allocation54_spill]] %s5493_s12 }
  0x22   :  { %s5513_s17 = sld [smem:[%s6307_s0 + %s5366_s7]]   ;;  %s5370_s7 = smov 22  }
  0x23   :  { %s5518_s30 = sld [smem:[%s6307_s0 + %s5367_s15]]   ;;  %s5371_s15 = smov 23  }
  0x24   :  { %6366 = sst [smem:[#allocation55_spill]] %s5508_s4 }
  0x25   :  { %s5523_s24 = sld [smem:[%s6307_s0 + %s5368_s22]]   ;;  %s5372_s22 = smov 24  }
  0x26   :  { %s5528_s13 = sld [smem:[%s6307_s0 + %s5369_s28]]   ;;  %s5373_s28 = smov 25  }
  0x27   :  { %s5533_s19 = sld [smem:[%s6307_s0 + %s5370_s7]]   ;;  %s5374_s7 = smov 26  }
  0x28   :  { %s5548_s14 = sld [smem:[%s6307_s0 + %s5373_s28]]   ;;  %s5377_s28 = smov 29  }
  0x29   :  { %6367 = sst [smem:[#allocation56_spill]] %s5518_s30 }
  0x2a   :  { %s5538_s30 = sld [smem:[%s6307_s0 + %s5371_s15]]   ;;  %s5375_s15 = smov 27  }
  0x2b   :  { %6368 = sst [smem:[#allocation57_spill]] %s5523_s24 }
  0x2c   :  { %s5543_s24 = sld [smem:[%s6307_s0 + %s5372_s22]]   ;;  %s5376_s22 = smov 28  }
  0x2d   :  { %s5553_s21 = sld [smem:[%s6307_s0 + %s5374_s7]]   ;;  %s5378_s7 = smov 30  }
  0x2e   :  { %s5558_s29 = sld [smem:[%s6307_s0 + %s5375_s15]]   ;;  %s5379_s15 = smov 31  }
  0x2f   :  { %s5563_s8 = sld [smem:[%s6307_s0 + %s5376_s22]]   ;;  %s5380_s22 = smov 32  }
  0x30   :  { %s5568_s9 = sld [smem:[%s6307_s0 + %s5377_s28]]   ;;  %s5381_s28 = smov 33  }
  0x31   :  { %s5573_s3 = sld [smem:[%s6307_s0 + %s5378_s7]]   ;;  %s5382_s7 = smov 34  }
  0x32   :  { %s5593_s25 = sld [smem:[%s6307_s0 + %s5382_s7]]  }
  0x34   :  { %6369 = sst [smem:[#allocation58_spill]] %s5558_s29 }
  0x35   :  { %6370 = sst [smem:[#allocation59_spill]] %s5563_s8 }
  0x36   :  { %6371 = sst [smem:[#allocation60_spill]] %s5568_s9 }
  0x37   :  { %6372 = sst [smem:[#allocation61_spill]] %s5573_s3 }
  0x38   :  { %s5578_s29 = sld [smem:[%s6307_s0 + %s5379_s15]]   ;;  %s5383_s15 = smov 35  }
  0x39   :  { %s5583_s8 = sld [smem:[%s6307_s0 + %s5380_s22]]  }
  0x3a   :  { %s5588_s9 = sld [smem:[%s6307_s0 + %s5381_s28]]  }
  0x3e   :  { %6373 = sst [smem:[#allocation62_spill]] %s5578_s29 }
  0x3f   :  { %6374 = sst [smem:[#allocation63_spill]] %s5583_s8 }
  0x40   :  { %s5598_s29 = sld [smem:[%s6307_s0 + %s5383_s15]]  }
  0x46   :  { %6375 = sst [smem:[#allocation64_spill]] %s5598_s29 }
  0x47   :  { %76 = vsyncpa [#allocation4], 0 }
  0x48   :  { %77 = vsyncpa [#allocation7], 0 }
  0x49   :  { %78 = vsyncpa [#allocation10], 0 }
  0x4a   :  { %79 = vsyncpa [#allocation13], 0 }
  0x4b   :  { %80 = vsyncpa [#allocation16], 0 }
  0x4c   :  { %81 = vsyncpa [#allocation19], 0 }
  0x4d   :  { %82 = vsyncpa [#allocation22], 0 }
  0x4e   :  { %83 = vsyncpa [#allocation25], 0 }
  0x4f   :  { %84 = vsyncpa [#allocation28], 0 }
  0x50   :  { %85 = vsyncpa [#allocation5], 0 }
  0x51   :  { %87 = vsyncpa [#allocation5 + $0x1], 0  ;;  %s5600_s22 = smov 0   ;;  %s5602_s23 = smov 0  }
  0x52   :  { %s5604_s26 = smov 0   ;;  %s5606_s28 = smov 0  }
  0x53   :  { %s5608_s0 = smov 0   ;;  %s5610_s1 = smov 0  }
  0x54 LB: > { %s6376_s6 = sld [smem:[#allocation53_spill]]  ;;  %s6377_s4 = sld [smem:[#allocation55_spill]]  ;;  %s5343_s0 = sphi %s5608_s0, %s6438_s0   ;;  %s5339_s28 = sphi %s5606_s28, %s6441_s28   ;;  %s5335_s26 = sphi %s5604_s26, %s6436_s26   ;;  %s5331_s23 = sphi %s5602_s23, %s6440_s23   ;;  %s5327_s22 = sphi %s5600_s22, %s6439_s22   ;;  %s5347_s1 = sphi %s5610_s1, %s93_s1  }
  0x55   : > { %s6378_s3 = sld [smem:[#allocation61_spill]]  ;;  %s6379_s8 = sld [smem:[#allocation63_spill]] }
  0x56   : > { %s6380_s12 = sld [smem:[#allocation54_spill]]  ;;  %6381 = sst [smem:[#allocation65_spill]] %s5327_s22 }
  0x57   : > { %6382 = sst [smem:[#allocation66_spill]] %s5335_s26  ;;  %s3995_s2 = sadd.s32 4294967295, %s5347_s1  }
  0x58   : > { %6383 = sst [smem:[#allocation67_spill]] %s5343_s0  ;;  %s3996_s7 = sadd.s32 4294967294, %s5347_s1  }
  0x59   : > { %s105_s10 = sadd.s32 1, %s5343_s0  ;;  %s876_s11 = sadd.s32 1, %s5335_s26 }
  0x5a   : > { %p107_p0 = scmp.ge.s32.totalorder %s105_s10, 2  ;;  %p886_p1 = scmp.ne.s32.totalorder %s5335_s26, %s5331_s23 }
  0x5b   : > { %p887_p2 = scmp.eq.s32.totalorder %s3995_s2, 1  ;;  %p892_p3 = scmp.ne.s32.totalorder %s5331_s23, %s5327_s22 }
  0x5c   : > { %s6443_s10 = smov (%p107_p0, %s105_s10), 0  ;;  %p893_p5 = scmp.eq.s32.totalorder %s3996_s7, 1 }
  0x5d   : > { %6384 = sst [smem:[#allocation68_spill]] %s6443_s10  ;;  %p5640_p4 = por %p887_p2, %p886_p1 }
  0x5e   : > { %s871_s16 = ssub.s32 %s5343_s0, %s6443_s10  ;;  %p3997_p6 = scmp.ge.s32.totalorder %s5347_s1, 1 }
  0x5f   : > { %s6385_s15 = scalar_select %p5640_p4, 1, 0 }
  0x60   : > { %p874_p7 = scmp.eq.s32.totalorder %s871_s16, 0  ;;  %p5647_p8 = por %p893_p5, %p892_p3 }
  0x61   : > { %6386 = sst [smem:[#allocation69_spill]] %s6385_s15  ;;  %p900_p9 = scmp.lt.s32.totalorder %s5347_s1, 3 }
  0x62   : > { %s6387_s18 = scalar_select %p5647_p8, 1, 0 }
  0x63   : > { %s5653_s29 = scalar_select %p874_p7, %s5335_s26, %s876_s11  }
  0x64   : > { %6388 = sst [smem:[#allocation70_spill]] %s6387_s18  ;;  %p5655_p10 = pnand %p3997_p6, %p900_p9 }
  0x65   : > { %6389 = sst [smem:[#allocation71_spill]] %s5653_s29  ;;  %p5659_p11 = scmp.eq.s32.totalorder %s3995_s2, 0 }
  0x66   : > { %s6390_s22 = scalar_select %p5655_p10, 1, 0 }
  0x67   : > { %s6391_s15 = scalar_select %p5659_p11, 1, 0 }
  0x68   : > { %p4505_p12 = pneg %p5655_p10  ;;  %s5384_s7 = smov [#allocation6]  }
  0x69   : > { %s957_s16 = sshll.u32 %s5384_s7, 4  ;;  %s5385_s10 = smov [#allocation9]   ;;  %s958_s16 = int_to_ptr.vmem [resolvable:$true] %s957_s16 }
  0x6a   : > { %s981_s0 = sshll.u32 %s5385_s10, 4  ;;  %p5667_p13 = pnand %p5659_p11, %p4505_p12  ;;  %s5671_s0 = int_to_ptr.vmem [resolvable:$true] %s981_s0 }
  0x6b   : > { %s5386_s2 = smov [#allocation12]   ;;  %s4785_s26 = scalar_lea.hbm %s6380_s12, 16 }
  0x6c   : > { %s5673_s29 = sshll.u32 %s5386_s2, 4  ;;  %p4786_p0 = scmp.ne.s32.totalorder %s6380_s12, %s4785_s26  ;;  %s1006_s29 = int_to_ptr.vmem [resolvable:$true] %s5673_s29 }
  0x6d   : > { %p5679_p1 = pneg %p5667_p13  ;;  %p4792_p5 = scmp.lt.u32.totalorder %s4785_s26, %s6380_s12 }
  0x6f   : > { %p4788_p2 = pnand %p5679_p1, %p4786_p0 }
  0x71   : > { %p4789_p3 = pneg %p4788_p2 }
  0x73   : > { %p4794_p6 = pnand %p4792_p5, %p4789_p3 }
  0x75   : > { %4797 = shalt.err (!%p4794_p6)
}
  0x76   : > { %s4798_s10 = scalar_lea.vmem %s958_s16, 16  ;;  %s4805_s7 = scalar_lea.vmem %s958_s16, 32 }
  0x77   : > { %p4799_p7 = scmp.ne.s32.totalorder %s958_s16, %s4798_s10  ;;  %p4806_p8 = scmp.lt.s32.totalorder %s958_s16, %s958_s16 }
  0x78   : > { %p4807_p4 = scmp.lt.s32.totalorder %s4805_s7, %s4798_s10 }
  0x79   : > { %p4801_p9 = pnand %p4799_p7, %p5679_p1 }
  0x7a   : > { %p4808_p11 = por %p4807_p4, %p4806_p8 }
  0x7b   : > { %p4802_p12 = pneg %p4801_p9 }
  0x7d   : > { %p4809_p10 = pnand %p4808_p11, %p4802_p12 }
  0x7f   : > { %4812 = shalt.err (!%p4809_p10)
}
  0x80   : > { %4511 = dma.hbm_to_vmem [thread:$0]  (!%p5667_p13), %s6380_s12, 16, %s958_s16, [#allocation7]  }
  0x81   : > { %s4813_s26 = scalar_lea.hbm %s5503_s27, 16 }
  0x82   : > { %p4814_p0 = scmp.ne.s32.totalorder %s5503_s27, %s4813_s26  ;;  %p4820_p5 = scmp.lt.u32.totalorder %s4813_s26, %s5503_s27 }
  0x84   : > { %p4816_p2 = pnand %p4814_p0, %p5679_p1 }
  0x86   : > { %p4817_p3 = pneg %p4816_p2 }
  0x88   : > { %p4822_p6 = pnand %p4820_p5, %p4817_p3 }
  0x8a   : > { %4825 = shalt.err (!%p4822_p6)
}
  0x8b   : > { %s4826_s2 = scalar_lea.vmem %s5671_s0, 16  ;;  %s4833_s10 = scalar_lea.vmem %s5671_s0, 32 }
  0x8c   : > { %p4827_p4 = scmp.ne.s32.totalorder %s5671_s0, %s4826_s2  ;;  %p4834_p11 = scmp.lt.s32.totalorder %s5671_s0, %s5671_s0 }
  0x8d   : > { %p4835_p7 = scmp.lt.s32.totalorder %s4833_s10, %s4826_s2 }
  0x8e   : > { %p4829_p8 = pnand %p4827_p4, %p5679_p1 }
  0x8f   : > { %p4836_p9 = por %p4835_p7, %p4834_p11 }
  0x90   : > { %p4830_p10 = pneg %p4829_p8 }
  0x92   : > { %p4837_p12 = pnand %p4836_p9, %p4830_p10 }
  0x94   : > { %4840 = shalt.err (!%p4837_p12)
}
  0x95   : > { %4517 = dma.hbm_to_vmem [thread:$0]  (!%p5667_p13), %s5503_s27, 16, %s5671_s0, [#allocation10]  }
  0x96   : > { %s5387_s16 = smov [#allocation15]   ;;  %s4841_s26 = scalar_lea.hbm %s5513_s17, 16 }
  0x97   : > { %s1035_s7 = sshll.u32 %s5387_s16, 4  ;;  %p4842_p0 = scmp.ne.s32.totalorder %s5513_s17, %s4841_s26  ;;  %s1036_s7 = int_to_ptr.vmem [resolvable:$true] %s1035_s7 }
  0x98   : > { %p4848_p5 = scmp.lt.u32.totalorder %s4841_s26, %s5513_s17 }
  0x99   : > { %p4844_p2 = pnand %p4842_p0, %p5679_p1 }
  0x9b   : > { %p4845_p3 = pneg %p4844_p2 }
  0x9d   : > { %p4850_p6 = pnand %p4848_p5, %p4845_p3 }
  0x9f   : > { %4853 = shalt.err (!%p4850_p6)
}
  0xa0   : > { %s4854_s2 = scalar_lea.vmem %s1006_s29, 16  ;;  %s4861_s10 = scalar_lea.vmem %s1006_s29, 32 }
  0xa1   : > { %p4855_p4 = scmp.ne.s32.totalorder %s1006_s29, %s4854_s2  ;;  %p4862_p11 = scmp.lt.s32.totalorder %s1006_s29, %s1006_s29 }
  0xa2   : > { %p4863_p7 = scmp.lt.s32.totalorder %s4861_s10, %s4854_s2 }
  0xa3   : > { %p4857_p8 = pnand %p4855_p4, %p5679_p1 }
  0xa4   : > { %p4864_p9 = por %p4863_p7, %p4862_p11 }
  0xa5   : > { %p4858_p10 = pneg %p4857_p8 }
  0xa7   : > { %p4865_p12 = pnand %p4864_p9, %p4858_p10 }
  0xa9   : > { %4868 = shalt.err (!%p4865_p12)
}
  0xaa   : > { %4523 = dma.hbm_to_vmem [thread:$0]  (!%p5667_p13), %s5513_s17, 16, %s1006_s29, [#allocation13]  }
  0xab   : > { %s4869_s0 = scalar_lea.hbm %s5533_s19, 16 }
  0xac   : > { %p4870_p0 = scmp.ne.s32.totalorder %s5533_s19, %s4869_s0  ;;  %p4876_p5 = scmp.lt.u32.totalorder %s4869_s0, %s5533_s19 }
  0xae   : > { %p4872_p2 = pnand %p4870_p0, %p5679_p1 }
  0xb0   : > { %p4873_p3 = pneg %p4872_p2 }
  0xb2   : > { %p4878_p6 = pnand %p4876_p5, %p4873_p3 }
  0xb4   : > { %4881 = shalt.err (!%p4878_p6)
}
  0xb5   : > { %s4882_s16 = scalar_lea.vmem %s1036_s7, 16  ;;  %s4889_s26 = scalar_lea.vmem %s1036_s7, 32 }
  0xb6   : > { %p4883_p4 = scmp.ne.s32.totalorder %s1036_s7, %s4882_s16  ;;  %p4890_p11 = scmp.lt.s32.totalorder %s1036_s7, %s1036_s7 }
  0xb7   : > { %p4891_p7 = scmp.lt.s32.totalorder %s4889_s26, %s4882_s16 }
  0xb8   : > { %p4885_p8 = pnand %p4883_p4, %p5679_p1 }
  0xb9   : > { %p4892_p9 = por %p4891_p7, %p4890_p11 }
  0xba   : > { %p4886_p10 = pneg %p4885_p8 }
  0xbc   : > { %p4893_p12 = pnand %p4892_p9, %p4886_p10 }
  0xbe   : > { %4896 = shalt.err (!%p4893_p12)
}
  0xbf   : > { %4529 = dma.hbm_to_vmem [thread:$0]  (!%p5667_p13), %s5533_s19, 16, %s1036_s7, [#allocation16]  }
  0xc0   : > { %s5388_s29 = smov [#allocation18]   ;;  %s5389_s10 = smov [#allocation21]  }
  0xc1   : > { %s1059_s2 = sshll.u32 %s5388_s29, 4  ;;  %s1083_s0 = sshll.u32 %s5389_s10, 4  ;;  %s1060_s2 = int_to_ptr.vmem [resolvable:$true] %s1059_s2  ;;  %s1084_s0 = int_to_ptr.vmem [resolvable:$true] %s1083_s0 }
  0xc2   : > { %s4897_s12 = scalar_lea.hbm %s5543_s24, 16 }
  0xc3   : > { %p4898_p0 = scmp.ne.s32.totalorder %s5543_s24, %s4897_s12  ;;  %p4904_p5 = scmp.lt.u32.totalorder %s4897_s12, %s5543_s24 }
  0xc5   : > { %p4900_p2 = pnand %p4898_p0, %p5679_p1 }
  0xc7   : > { %p4901_p3 = pneg %p4900_p2 }
  0xc9   : > { %p4906_p6 = pnand %p4904_p5, %p4901_p3 }
  0xcb   : > { %4909 = shalt.err (!%p4906_p6)
}
  0xcc   : > { %s4910_s16 = scalar_lea.vmem %s1060_s2, 16  ;;  %s4917_s7 = scalar_lea.vmem %s1060_s2, 32 }
  0xcd   : > { %p4911_p4 = scmp.ne.s32.totalorder %s1060_s2, %s4910_s16  ;;  %p4918_p11 = scmp.lt.s32.totalorder %s1060_s2, %s1060_s2 }
  0xce   : > { %p4919_p7 = scmp.lt.s32.totalorder %s4917_s7, %s4910_s16 }
  0xcf   : > { %p4913_p8 = pnand %p4911_p4, %p5679_p1 }
  0xd0   : > { %p4920_p9 = por %p4919_p7, %p4918_p11 }
  0xd1   : > { %p4914_p10 = pneg %p4913_p8 }
  0xd3   : > { %p4921_p12 = pnand %p4920_p9, %p4914_p10 }
  0xd5   : > { %4924 = shalt.err (!%p4921_p12)
}
  0xd6   : > { %4535 = dma.hbm_to_vmem [thread:$0]  (!%p5667_p13), %s5543_s24, 16, %s1060_s2, [#allocation19]  }
  0xd7   : > { %s4925_s12 = scalar_lea.hbm %s5553_s21, 16 }
  0xd8   : > { %p4926_p0 = scmp.ne.s32.totalorder %s5553_s21, %s4925_s12  ;;  %p4932_p5 = scmp.lt.u32.totalorder %s4925_s12, %s5553_s21 }
  0xda   : > { %p4928_p2 = pnand %p4926_p0, %p5679_p1 }
  0xdc   : > { %p4929_p3 = pneg %p4928_p2 }
  0xde   : > { %p4934_p6 = pnand %p4932_p5, %p4929_p3 }
  0xe0   : > { %4937 = shalt.err (!%p4934_p6)
}
  0xe1   : > { %s4938_s26 = scalar_lea.vmem %s1084_s0, 16  ;;  %s4945_s29 = scalar_lea.vmem %s1084_s0, 32 }
  0xe2   : > { %p4939_p4 = scmp.ne.s32.totalorder %s1084_s0, %s4938_s26  ;;  %p4946_p11 = scmp.lt.s32.totalorder %s1084_s0, %s1084_s0 }
  0xe3   : > { %p4947_p7 = scmp.lt.s32.totalorder %s4945_s29, %s4938_s26 }
  0xe4   : > { %p4941_p8 = pnand %p4939_p4, %p5679_p1 }
  0xe5   : > { %p4948_p9 = por %p4947_p7, %p4946_p11 }
  0xe6   : > { %p4942_p10 = pneg %p4941_p8 }
  0xe8   : > { %p4949_p12 = pnand %p4948_p9, %p4942_p10 }
  0xea   : > { %4952 = shalt.err (!%p4949_p12)
}
  0xeb   : > { %4541 = dma.hbm_to_vmem [thread:$0]  (!%p5667_p13), %s5553_s21, 16, %s1084_s0, [#allocation22]  }
  0xec   : > { %s5390_s2 = smov [#allocation24]   ;;  %s4953_s16 = scalar_lea.hbm %s6379_s8, 16 }
  0xed   : > { %s1117_s10 = sshll.u32 %s5390_s2, 4  ;;  %p4954_p0 = scmp.ne.s32.totalorder %s6379_s8, %s4953_s16  ;;  %s1118_s10 = int_to_ptr.vmem [resolvable:$true] %s1117_s10 }
  0xee   : > { %p4960_p5 = scmp.lt.u32.totalorder %s4953_s16, %s6379_s8 }
  0xef   : > { %p4956_p2 = pnand %p4954_p0, %p5679_p1 }
  0xf1   : > { %p4957_p3 = pneg %p4956_p2 }
  0xf3   : > { %p4962_p6 = pnand %p4960_p5, %p4957_p3 }
  0xf5   : > { %4965 = shalt.err (!%p4962_p6)
}
  0xf6   : > { %s4966_s7 = scalar_lea.vmem %s1118_s10, 16  ;;  %s4973_s12 = scalar_lea.vmem %s1118_s10, 32 }
  0xf7   : > { %p4967_p4 = scmp.ne.s32.totalorder %s1118_s10, %s4966_s7  ;;  %p4974_p11 = scmp.lt.s32.totalorder %s1118_s10, %s1118_s10 }
  0xf8   : > { %p4975_p7 = scmp.lt.s32.totalorder %s4973_s12, %s4966_s7 }
  0xf9   : > { %p4969_p8 = pnand %p4967_p4, %p5679_p1 }
  0xfa   : > { %p4976_p9 = por %p4975_p7, %p4974_p11 }
  0xfb   : > { %p4970_p10 = pneg %p4969_p8 }
  0xfd   : > { %p4977_p12 = pnand %p4976_p9, %p4970_p10 }
  0xff   : > { %4980 = shalt.err (!%p4977_p12)
}
 0x100   : > { %4547 = dma.hbm_to_vmem [thread:$0]  (!%p5667_p13), %s6379_s8, 16, %s1118_s10, [#allocation25]  }
 0x101   : > { %s5391_s0 = smov [#allocation3]   ;;  %s4981_s29 = scalar_lea.hbm %s6376_s6, 256 }
 0x102   : > { %s943_s26 = sshll.u32 %s5391_s0, 4  ;;  %p4982_p0 = scmp.ne.s32.totalorder %s6376_s6, %s4981_s29  ;;  %s944_s26 = int_to_ptr.vmem [resolvable:$true] %s943_s26 }
 0x103   : > { %p4988_p5 = scmp.lt.u32.totalorder %s4981_s29, %s6376_s6 }
 0x104   : > { %p4984_p2 = pnand %p4982_p0, %p5679_p1 }
 0x106   : > { %p4985_p3 = pneg %p4984_p2 }
 0x108   : > { %p4990_p6 = pnand %p4988_p5, %p4985_p3 }
 0x10a   : > { %4993 = shalt.err (!%p4990_p6)
}
 0x10b   : > { %s4994_s2 = scalar_lea.vmem %s944_s26, 256  ;;  %p5002_p11 = scmp.lt.s32.totalorder %s944_s26, %s944_s26 }
 0x10c   : > { %p4995_p4 = scmp.ne.s32.totalorder %s944_s26, %s4994_s2  ;;  %p5003_p7 = scmp.lt.s32.totalorder %s4994_s2, %s4994_s2 }
 0x10e   : > { %p4997_p8 = pnand %p4995_p4, %p5679_p1  ;;  %p5004_p9 = por %p5003_p7, %p5002_p11 }
 0x110   : > { %p4998_p10 = pneg %p4997_p8 }
 0x112   : > { %p5005_p12 = pnand %p5004_p9, %p4998_p10 }
 0x114   : > { %5008 = shalt.err (!%p5005_p12)
}
 0x115   : > { %s5392_s10 = smov 64   ;;  %s5393_s16 = smov 4  }
 0x116   : > { %4508 = dma.hbm_to_vmem [thread:$0]  (!%p5667_p13), %s6376_s6, 256, %s944_s26, [#allocation4], %s5392_s10, %s5392_s10, %s5393_s16  }
 0x117   : > { %s5394_s7 = smov [#allocation8]   ;;  %s5395_s0 = smov [#allocation11]  }
 0x118   : > { %s967_s12 = sshll.u32 %s5394_s7, 4  ;;  %s991_s29 = sshll.u32 %s5395_s0, 4  ;;  %s968_s12 = int_to_ptr.vmem [resolvable:$true] %s967_s12  ;;  %s992_s29 = int_to_ptr.vmem [resolvable:$true] %s991_s29 }
 0x119   : > { %s5009_s2 = scalar_lea.hbm %s5498_s20, 256 }
 0x11a   : > { %p5010_p0 = scmp.ne.s32.totalorder %s5498_s20, %s5009_s2  ;;  %p5016_p5 = scmp.lt.u32.totalorder %s5009_s2, %s5498_s20 }
 0x11c   : > { %p5012_p2 = pnand %p5010_p0, %p5679_p1 }
 0x11e   : > { %p5013_p3 = pneg %p5012_p2 }
 0x120   : > { %p5018_p6 = pnand %p5016_p5, %p5013_p3 }
 0x122   : > { %5021 = shalt.err (!%p5018_p6)
}
 0x123   : > { %s5022_s8 = scalar_lea.vmem %s968_s12, 256  ;;  %p5030_p11 = scmp.lt.s32.totalorder %s968_s12, %s968_s12 }
 0x124   : > { %p5023_p4 = scmp.ne.s32.totalorder %s968_s12, %s5022_s8  ;;  %p5031_p7 = scmp.lt.s32.totalorder %s5022_s8, %s5022_s8 }
 0x126   : > { %p5025_p8 = pnand %p5023_p4, %p5679_p1  ;;  %p5032_p9 = por %p5031_p7, %p5030_p11 }
 0x128   : > { %p5026_p10 = pneg %p5025_p8 }
 0x12a   : > { %p5033_p12 = pnand %p5032_p9, %p5026_p10 }
 0x12c   : > { %5036 = shalt.err (!%p5033_p12)
}
 0x12d   : > { %4514 = dma.hbm_to_vmem [thread:$0]  (!%p5667_p13), %s5498_s20, 256, %s968_s12, [#allocation7], %s5392_s10, %s5392_s10, %s5393_s16  }
 0x12e   : > { %s5037_s26 = scalar_lea.hbm %s6377_s4, 256 }
 0x12f   : > { %p5038_p0 = scmp.ne.s32.totalorder %s6377_s4, %s5037_s26  ;;  %p5044_p5 = scmp.lt.u32.totalorder %s5037_s26, %s6377_s4 }
 0x131   : > { %p5040_p2 = pnand %p5038_p0, %p5679_p1 }
 0x133   : > { %p5041_p3 = pneg %p5040_p2 }
 0x135   : > { %p5046_p6 = pnand %p5044_p5, %p5041_p3 }
 0x137   : > { %5049 = shalt.err (!%p5046_p6)
}
 0x138   : > { %s5050_s8 = scalar_lea.vmem %s992_s29, 256  ;;  %p5058_p11 = scmp.lt.s32.totalorder %s992_s29, %s992_s29 }
 0x139   : > { %p5051_p4 = scmp.ne.s32.totalorder %s992_s29, %s5050_s8  ;;  %p5059_p7 = scmp.lt.s32.totalorder %s5050_s8, %s5050_s8 }
 0x13b   : > { %p5053_p8 = pnand %p5051_p4, %p5679_p1  ;;  %p5060_p9 = por %p5059_p7, %p5058_p11 }
 0x13d   : > { %p5054_p10 = pneg %p5053_p8 }
 0x13f   : > { %p5061_p12 = pnand %p5060_p9, %p5054_p10 }
 0x141   : > { %5064 = shalt.err (!%p5061_p12)
}
 0x142   : > { %4520 = dma.hbm_to_vmem [thread:$0]  (!%p5667_p13), %s6377_s4, 256, %s992_s29, [#allocation10], %s5392_s10, %s5392_s10, %s5393_s16  }
 0x143   : > { %s5396_s7 = smov [#allocation14]   ;;  %s5397_s0 = smov [#allocation17]  }
 0x144   : > { %s1021_s12 = sshll.u32 %s5396_s7, 4  ;;  %s1045_s2 = sshll.u32 %s5397_s0, 4  ;;  %s1022_s12 = int_to_ptr.vmem [resolvable:$true] %s1021_s12  ;;  %s1046_s2 = int_to_ptr.vmem [resolvable:$true] %s1045_s2 }
 0x145   : > { %s5065_s26 = scalar_lea.hbm %s5528_s13, 256 }
 0x146   : > { %p5066_p0 = scmp.ne.s32.totalorder %s5528_s13, %s5065_s26  ;;  %p5072_p5 = scmp.lt.u32.totalorder %s5065_s26, %s5528_s13 }
 0x148   : > { %p5068_p2 = pnand %p5066_p0, %p5679_p1 }
 0x14a   : > { %p5069_p3 = pneg %p5068_p2 }
 0x14c   : > { %p5074_p6 = pnand %p5072_p5, %p5069_p3 }
 0x14e   : > { %5077 = shalt.err (!%p5074_p6)
}
 0x14f   : > { %s5078_s8 = scalar_lea.vmem %s1022_s12, 256  ;;  %p5086_p11 = scmp.lt.s32.totalorder %s1022_s12, %s1022_s12 }
 0x150   : > { %p5079_p4 = scmp.ne.s32.totalorder %s1022_s12, %s5078_s8  ;;  %p5087_p7 = scmp.lt.s32.totalorder %s5078_s8, %s5078_s8 }
 0x152   : > { %p5081_p8 = pnand %p5079_p4, %p5679_p1  ;;  %p5088_p9 = por %p5087_p7, %p5086_p11 }
 0x154   : > { %p5082_p10 = pneg %p5081_p8 }
 0x156   : > { %p5089_p12 = pnand %p5088_p9, %p5082_p10 }
 0x158   : > { %5092 = shalt.err (!%p5089_p12)
}
 0x159   : > { %4526 = dma.hbm_to_vmem [thread:$0]  (!%p5667_p13), %s5528_s13, 256, %s1022_s12, [#allocation13], %s5392_s10, %s5392_s10, %s5393_s16  }
 0x15a   : > { %s5093_s29 = scalar_lea.hbm %s5538_s30, 256 }
 0x15b   : > { %p5094_p0 = scmp.ne.s32.totalorder %s5538_s30, %s5093_s29  ;;  %p5100_p5 = scmp.lt.u32.totalorder %s5093_s29, %s5538_s30 }
 0x15d   : > { %p5096_p2 = pnand %p5094_p0, %p5679_p1 }
 0x15f   : > { %p5097_p3 = pneg %p5096_p2 }
 0x161   : > { %p5102_p6 = pnand %p5100_p5, %p5097_p3 }
 0x163   : > { %5105 = shalt.err (!%p5102_p6)
}
 0x164   : > { %s5106_s7 = scalar_lea.vmem %s1046_s2, 256  ;;  %p5114_p11 = scmp.lt.s32.totalorder %s1046_s2, %s1046_s2 }
 0x165   : > { %p5107_p4 = scmp.ne.s32.totalorder %s1046_s2, %s5106_s7  ;;  %p5115_p7 = scmp.lt.s32.totalorder %s5106_s7, %s5106_s7 }
 0x167   : > { %p5109_p8 = pnand %p5107_p4, %p5679_p1  ;;  %p5116_p9 = por %p5115_p7, %p5114_p11 }
 0x169   : > { %p5110_p10 = pneg %p5109_p8 }
 0x16b   : > { %p5117_p12 = pnand %p5116_p9, %p5110_p10 }
 0x16d   : > { %5120 = shalt.err (!%p5117_p12)
}
 0x16e   : > { %4532 = dma.hbm_to_vmem [thread:$0]  (!%p5667_p13), %s5538_s30, 256, %s1046_s2, [#allocation16], %s5392_s10, %s5392_s10, %s5393_s16  }
 0x16f   : > { %s5398_s12 = smov [#allocation20]   ;;  %s5399_s26 = smov [#allocation23]  }
 0x170   : > { %s1069_s0 = sshll.u32 %s5398_s12, 4  ;;  %s1103_s8 = sshll.u32 %s5399_s26, 4  ;;  %s1070_s0 = int_to_ptr.vmem [resolvable:$true] %s1069_s0  ;;  %s1104_s8 = int_to_ptr.vmem [resolvable:$true] %s1103_s8 }
 0x171   : > { %s5121_s29 = scalar_lea.hbm %s5548_s14, 256 }
 0x172   : > { %p5122_p0 = scmp.ne.s32.totalorder %s5548_s14, %s5121_s29  ;;  %p5128_p5 = scmp.lt.u32.totalorder %s5121_s29, %s5548_s14 }
 0x174   : > { %p5124_p2 = pnand %p5122_p0, %p5679_p1 }
 0x176   : > { %p5125_p3 = pneg %p5124_p2 }
 0x178   : > { %p5130_p6 = pnand %p5128_p5, %p5125_p3 }
 0x17a   : > { %5133 = shalt.err (!%p5130_p6)
}
 0x17b   : > { %s5134_s7 = scalar_lea.vmem %s1070_s0, 256  ;;  %p5142_p11 = scmp.lt.s32.totalorder %s1070_s0, %s1070_s0 }
 0x17c   : > { %p5135_p4 = scmp.ne.s32.totalorder %s1070_s0, %s5134_s7  ;;  %p5143_p7 = scmp.lt.s32.totalorder %s5134_s7, %s5134_s7 }
 0x17e   : > { %p5137_p8 = pnand %p5135_p4, %p5679_p1  ;;  %p5144_p9 = por %p5143_p7, %p5142_p11 }
 0x180   : > { %p5138_p10 = pneg %p5137_p8 }
 0x182   : > { %p5145_p12 = pnand %p5144_p9, %p5138_p10 }
 0x184   : > { %5148 = shalt.err (!%p5145_p12)
}
 0x185   : > { %4538 = dma.hbm_to_vmem [thread:$0]  (!%p5667_p13), %s5548_s14, 256, %s1070_s0, [#allocation19], %s5392_s10, %s5392_s10, %s5393_s16  }
 0x186   : > { %s5149_s2 = scalar_lea.hbm %s6378_s3, 16 }
 0x187   : > { %p5150_p0 = scmp.ne.s32.totalorder %s6378_s3, %s5149_s2  ;;  %p5156_p5 = scmp.lt.u32.totalorder %s5149_s2, %s6378_s3 }
 0x189   : > { %p5152_p2 = pnand %p5150_p0, %p5679_p1 }
 0x18b   : > { %p5153_p3 = pneg %p5152_p2 }
 0x18d   : > { %p5158_p6 = pnand %p5156_p5, %p5153_p3 }
 0x18f   : > { %5161 = shalt.err (!%p5158_p6)
}
 0x190   : > { %s5162_s12 = scalar_lea.vmem %s1104_s8, 16  ;;  %s5169_s26 = scalar_lea.vmem %s1104_s8, 32 }
 0x191   : > { %p5163_p4 = scmp.ne.s32.totalorder %s1104_s8, %s5162_s12  ;;  %p5170_p11 = scmp.lt.s32.totalorder %s1104_s8, %s1104_s8 }
 0x192   : > { %p5171_p7 = scmp.lt.s32.totalorder %s5169_s26, %s5162_s12 }
 0x193   : > { %p5165_p8 = pnand %p5163_p4, %p5679_p1 }
 0x194   : > { %p5172_p9 = por %p5171_p7, %p5170_p11 }
 0x195   : > { %p5166_p10 = pneg %p5165_p8 }
 0x197   : > { %p5173_p12 = pnand %p5172_p9, %p5166_p10 }
 0x199   : > { %5176 = shalt.err (!%p5173_p12)
}
 0x19a   : > { %4544 = dma.hbm_to_vmem [thread:$0]  (!%p5667_p13), %s6378_s3, 16, %s1104_s8, [#allocation22]  }
 0x19b   : > { %s5400_s10 = smov [#allocation26]   ;;  %s5401_s0 = smov [#allocation27]  }
 0x19c   : > { %s1128_s16 = sshll.u32 %s5400_s10, 4  ;;  %s1139_s29 = sshll.u32 %s5401_s0, 4  ;;  %s1129_s16 = int_to_ptr.vmem [resolvable:$true] %s1128_s16  ;;  %s1140_s29 = int_to_ptr.vmem [resolvable:$true] %s1139_s29 }
 0x19d   : > { %s5177_s7 = scalar_lea.hbm %s5588_s9, 16 }
 0x19e   : > { %p5178_p0 = scmp.ne.s32.totalorder %s5588_s9, %s5177_s7  ;;  %p5184_p5 = scmp.lt.u32.totalorder %s5177_s7, %s5588_s9 }
 0x1a0   : > { %p5180_p2 = pnand %p5178_p0, %p5679_p1 }
 0x1a2   : > { %p5181_p3 = pneg %p5180_p2 }
 0x1a4   : > { %p5186_p6 = pnand %p5184_p5, %p5181_p3 }
 0x1a6   : > { %5189 = shalt.err (!%p5186_p6)
}
 0x1a7   : > { %s5190_s2 = scalar_lea.vmem %s1129_s16, 16  ;;  %s5197_s8 = scalar_lea.vmem %s1129_s16, 32 }
 0x1a8   : > { %p5191_p4 = scmp.ne.s32.totalorder %s1129_s16, %s5190_s2  ;;  %p5198_p11 = scmp.lt.s32.totalorder %s1129_s16, %s1129_s16 }
 0x1a9   : > { %p5199_p7 = scmp.lt.s32.totalorder %s5197_s8, %s5190_s2 }
 0x1aa   : > { %p5193_p8 = pnand %p5191_p4, %p5679_p1 }
 0x1ab   : > { %p5200_p9 = por %p5199_p7, %p5198_p11 }
 0x1ac   : > { %p5194_p10 = pneg %p5193_p8 }
 0x1ae   : > { %p5201_p12 = pnand %p5200_p9, %p5194_p10 }
 0x1b0   : > { %5204 = shalt.err (!%p5201_p12)
}
 0x1b1   : > { %4550 = dma.hbm_to_vmem [thread:$0]  (!%p5667_p13), %s5588_s9, 16, %s1129_s16, [#allocation25]  }
 0x1b2   : > { %s5205_s12 = scalar_lea.hbm %s5593_s25, 16 }
 0x1b3   : > { %p5206_p0 = scmp.ne.s32.totalorder %s5593_s25, %s5205_s12  ;;  %p5212_p5 = scmp.lt.u32.totalorder %s5205_s12, %s5593_s25 }
 0x1b5   : > { %p5208_p2 = pnand %p5206_p0, %p5679_p1 }
 0x1b7   : > { %p5209_p3 = pneg %p5208_p2 }
 0x1b9   : > { %p5214_p6 = pnand %p5212_p5, %p5209_p3 }
 0x1bb   : > { %5217 = shalt.err (!%p5214_p6)
}
 0x1bc   : > { %s5218_s26 = scalar_lea.vmem %s1140_s29, 16  ;;  %s5225_s10 = scalar_lea.vmem %s1140_s29, 32 }
 0x1bd   : > { %p5219_p4 = scmp.ne.s32.totalorder %s1140_s29, %s5218_s26  ;;  %p5226_p11 = scmp.lt.s32.totalorder %s1140_s29, %s1140_s29 }
 0x1be   : > { %p5227_p7 = scmp.lt.s32.totalorder %s5225_s10, %s5218_s26 }
 0x1bf   : > { %p5221_p8 = pnand %p5219_p4, %p5679_p1 }
 0x1c0   : > { %p5228_p9 = por %p5227_p7, %p5226_p11 }
 0x1c1   : > { %p5222_p10 = pneg %p5221_p8 }
 0x1c3   : > { %p5229_p12 = pnand %p5228_p9, %p5222_p10 }
 0x1c5   : > { %5232 = shalt.err (!%p5229_p12)
}
 0x1c6   : > { %4553 = dma.hbm_to_vmem [thread:$0]  (!%p5667_p13), %s5593_s25, 16, %s1140_s29, [#allocation28]  }
 0x1c7   : > { %p6394_p0 = scmp.ne.s32.totalorder %s6390_s22, 0 }
 0x1c8   : > { %p6395_p2 = scmp.ne.s32.totalorder (!%p6394_p0), %s6391_s15, 0 }
 0x1c9   : > { %1183 = sbr.rel (%p6394_p0) target bundleno = 6570 (0x19aa), region = 160 }
 0x1d0   : > { %5286 = dma.done.wait (%p6395_p2), [#allocation4], 256  }
 0x1d1   : > { %5288 = vsyncadd (%p6395_p2), [#allocation4], 4294967040 }
 0x1d2   : > { %5290 = dma.done.wait (%p6395_p2), [#allocation7], 272  }
 0x1d3   : > { %5292 = vsyncadd (%p6395_p2), [#allocation7], 4294967024 }
 0x1d4   : > { %5294 = dma.done.wait (%p6395_p2), [#allocation10], 272  }
 0x1d5   : > { %5296 = vsyncadd (%p6395_p2), [#allocation10], 4294967024 }
 0x1d6   : > { %5298 = dma.done.wait (%p6395_p2), [#allocation13], 272  }
 0x1d7   : > { %5300 = vsyncadd (%p6395_p2), [#allocation13], 4294967024 }
 0x1d8   : > { %5302 = dma.done.wait (%p6395_p2), [#allocation16], 272  }
 0x1d9   : > { %5304 = vsyncadd (%p6395_p2), [#allocation16], 4294967024 }
 0x1da   : > { %5306 = dma.done.wait (%p6395_p2), [#allocation19], 272  }
 0x1db   : > { %5308 = vsyncadd (%p6395_p2), [#allocation19], 4294967024 }
 0x1dc   : > { %5310 = dma.done.wait (%p6395_p2), [#allocation22], 32  }
 0x1dd   : > { %5312 = vsyncadd (%p6395_p2), [#allocation22], 4294967264 }
 0x1de   : > { %5314 = dma.done.wait (%p6395_p2), [#allocation25], 32  }
 0x1df   : > { %5316 = vsyncadd (%p6395_p2), [#allocation25], 4294967264 }
 0x1e0   : > { %5318 = dma.done.wait (%p6395_p2), [#allocation28], 16  }
 0x1e1   : > { %5320 = vsyncadd (%p6395_p2), [#allocation28], 4294967280  ;;  %s6396_s5 = sld [smem:[#allocation40_spill]]  ;;  %s6397_s22 = sld [smem:[#allocation45_spill]]  ;;  %v5402_v0 = vmov 0.0   ;;  %vm5403_vm0 = vmmov 0   ;;  %v1382_v33 = vlaneseq }
 0x1e2   : > { %p1349_p13 = scmp.lt.s32.totalorder %s5339_s28, 1  ;;  %s6399_s11 = sld [smem:[#allocation47_spill]]  ;;  %4203 = vmatprep.subr.bf16.mxu1 %v5402_v0  ;;  %4207 = vmatprep.mubr.msk.bf16.mxu1 %vm5403_vm0, %v5402_v0  ;;  %vm1413_vm1 = vcmask 261120   ;;  %vm1525_vm2 = vcmask 64512   ;;  %vm1593_vm4 = vcmask 1043456   ;;  %vm1756_vm5 = vcmask 130112  }
 0x1e3   : > { %s6400_s16 = sld [smem:[#allocation41_spill]]  ;;  %4219 = vmatprep.subr.bf16.mxu0 %v5402_v0  ;;  %4221 = vmatprep.mubr.msk.bf16.mxu0 %vm5403_vm0, %v5402_v0  ;;  %s6401_s2 = sld [smem:[#allocation48_spill]]  ;;  %v1383_v34 = vshrl.u32 %v1382_v33, 7  ;;  %v1387_v35 = vand.u32 127, %v1382_v33  ;;  %vm1875_vm6 = vcmask 195712   ;;  %vm1994_vm7 = vcmask 261312  }
 0x1e4   : > { %s1350_s0 = scalar_select %p1349_p13, %s5339_s28, 1  ;;  %vm3593_vm8 = vcmask 523264  }
 0x1e5   : > { %s6402_s8 = sld [smem:[#allocation46_spill]]  ;;  %s6343_s12 = smov 112   ;;  %vm1388_vm3 = vcmp.le.s32.totalorder %v1387_v35, %v1383_v34 }
 0x1e6   : > { %s5912_s15 = sshll.u32 %s1350_s0, 3  ;;  %s6345_s26 = smov 120  }
 0x1e7   : > { %s6398_s18 = smov %s6397_s22  ;;  %s1355_s29 = scalar_lea.vmem %s6396_s5, %s5912_s15  ;;  %v4704_v1 = vld [vmem:[%s6397_s22] sm:$0xff]  }
 0x1e8   : > { %v4705_v2 = vld [vmem:[%s6398_s18 + $0x8] sm:$0xff]   ;;  %4204 = vmatpush3.bf16.msra.mxu1 %v4704_v1  ;;  %v5918_v3 = vld [vmem:[%s1355_s29] sm:$0xff]  ;;  %s6341_s10 = smov 104   ;;  %s6403_s22 = sld [smem:[#allocation44_spill]] }
 0x1e9   : > { %4205 = vmatprep.subr.bf16.mxu1 %v5402_v0  ;;  %v4706_v4 = vld [vmem:[%s6399_s11] sm:$0xff]   ;;  %v1389_v5 = vpack.c.bf16 %v5918_v3, %v5918_v3  ;;  %s1359_s7 = scalar_lea.vmem %s6400_s16, %s5912_s15  ;;  %v4707_v6 = vld [vmem:[%s6399_s11 + $0x8] sm:$0xff]   ;;  %s6338_s0 = smov 96  }
 0x1ea   : > { %v1374_v7 = vld [vmem:[%s1359_s7] sm:$0xff]  ;;  %s6328_s29 = smov 80   ;;  %s6332_s7 = smov 72  }
 0x1eb   : > { %v1375_v8 = vpack.c.bf16 %v1374_v7, %v1374_v7  ;;  %v4042_v13 = vld [vmem:[%s6401_s2] ss:$0 sm:$0xff]  ;;  %s6340_s2 = smov 88   ;;  %s6417_s3 = sld [smem:[#allocation56_spill]] }
 0x1ec   : > { %4206 = vmatpush3.bf16.msra.mxu1 %v4705_v2  ;;  %v4038_v14 = vld [vmem:[%s6402_s8] ss:$0 sm:$0xff]  ;;  %s6405_s8 = sld [smem:[#allocation49_spill]] }
 0x1ed   : > { %4211 = vmatprep.subr.bf16.mxu1 %v5402_v0  ;;  %s6418_s4 = sld [smem:[#allocation57_spill]] }
 0x1ee   : > { %s6404_s16 = smov %s6403_s22  ;;  %v5971_v36 = vld [vmem:[%s6403_s22] sm:$0xff]  ;;  %s6330_s22 = smov 8  }
 0x1ef   : > { %4208 = vmatmul.mubr.msk.bf16.vlgmr.msra.gmra.mrb[0].mxu1 %vm1413_vm1, %v1389_v5 }
 0x1f0   : > { %4212 = vmatpush3.bf16.msra.mxu1 %v4706_v4  ;;  %4215 = vmatprep.mubr.msk.bf16.mxu1 %vm5403_vm0, %v5402_v0 }
 0x1f1   : > { %4213 = vmatprep.subr.bf16.mxu1 %v5402_v0 }
 0x1f4   : > { %4214 = vmatpush3.bf16.msra.mxu1 %v4707_v6 }
 0x1f5   : > { %4225 = vmatprep.subr.bf16.mxu1 %v5402_v0 }
 0x1f7   : > { %4216 = vmatmul.mubr.msk.bf16.vlgmr.msra.gmra.mrb[4].mxu1 %vm1413_vm1, %v1375_v8 }
 0x1f8   : > { %4227 = vmatprep.mubr.msk.bf16.mxu1 %vm5403_vm0, %v5402_v0 }
 0x2c2   : > { %v1451_v9 = vpop.f32.mrb[0].mxu1 }
 0x2c3   : > { %v4209_v10 = vpop.f32.mrb[1].mxu1  ;;  %v1452_v19 = vadd.f32 %v4038_v14, %v1451_v9 }
 0x2c4   : > { %v1454_v11 = vpop.f32.mrb[2].mxu1 }
 0x2c5   : > { %v4210_v12 = vpop.f32.mrb[3].mxu1  ;;  %v1523_v23 = vpack.c.bf16 %v1452_v19, %v1452_v19 }
 0x2ca   : > { %v1517_v15 = vpop.f32.mrb[4].mxu1 }
 0x2cb   : > { %v1518_v16 = vadd.f32 %v4042_v13, %v1517_v15  ;;  %v4217_v17 = vpop.f32.mrb[5].mxu1 }
 0x2cc   : > { %v1520_v18 = vpop.f32.mrb[6].mxu1 }
 0x2cd   : > { %v5938_v20 = vpack.c.bf16 %v1518_v16, %v1518_v16  ;;  %v4218_v21 = vpop.f32.mrb[7].mxu1 }
 0x2cf   : > { %1760 = vrot.lane.b32.xlu1 %v5938_v20, %s6343_s12  ;;  %1641 = vrot.lane.b32.xlu0 %v5938_v20, %s6345_s26  ;;  %v1530_v22 = vsel %vm1525_vm2, %v5938_v20, 0 }
 0x2d0   : > { %4220 = vmatpush3.bf16.xpose.msra.mxu0 %v1530_v22 }
 0x2d1   : > { %4231 = vmatprep.subr.bf16.mxu0 %v5402_v0 }
 0x2d3   : > { %1758 = vrot.lane.b32.xlu1 %v1523_v23, %s6343_s12  ;;  %1639 = vrot.lane.b32.xlu0 %v1523_v23, %s6345_s26 }
 0x2d7   : > { %1877 = vrot.lane.b32.xlu1 %v1523_v23, %s6341_s10  ;;  %1879 = vrot.lane.b32.xlu0 %v5938_v20, %s6341_s10 }
 0x2d8   : > { %4222 = vmatmul.mubr.msk.bf16.vlgmr.msra.gmra.mrb[0].mxu0 %vm1525_vm2, %v1523_v23 }
 0x2d9   : > { %4233 = vmatprep.mubr.msk.bf16.mxu0 %vm5403_vm0, %v5402_v0 }
 0x341   : > { %v1642_v24 = vpop.permute.xlu0 %1641  ;;  %v1761_v26 = vpop.permute.xlu1 %1760 }
 0x342   : > { %v1647_v25 = vsel %vm1525_vm2, %v1642_v24, 0  ;;  %v1766_v28 = vsel %vm1525_vm2, %v1761_v26, 0 }
 0x343   : > { %4232 = vmatpush3.bf16.xpose.msra.mxu0 %v1647_v25 }
 0x344   : > { %4243 = vmatprep.subr.bf16.mxu0 %v5402_v0 }
 0x345   : > { %v1640_v27 = vpop.permute.xlu0 %1639  ;;  %v1759_v30 = vpop.permute.xlu1 %1758 }
 0x349   : > { %v1880_v29 = vpop.permute.xlu0 %1879  ;;  %v1878_v32 = vpop.permute.xlu1 %1877 }
 0x34a   : > { %4234 = vmatmul.mubr.msk.bf16.vlgmr.msra.gmra.mrb[4].mxu0 %vm1525_vm2, %v1640_v27  ;;  %v1885_v31 = vsel %vm1525_vm2, %v1880_v29, 0 }
 0x34b   : > { %4244 = vmatpush3.bf16.xpose.msra.mxu0 %v1766_v28  ;;  %4245 = vmatprep.mubr.msk.bf16.mxu0 %vm5403_vm0, %v5402_v0 }
 0x34c   : > { %4255 = vmatprep.subr.bf16.mxu0 %v5402_v0 }
 0x352   : > { %4246 = vmatmul.mubr.msk.bf16.vlgmr.msra.gmra.mrb[8].mxu0 %vm1525_vm2, %v1759_v30 }
 0x353   : > { %4256 = vmatpush3.bf16.xpose.msra.mxu0 %v1885_v31  ;;  %4257 = vmatprep.mubr.msk.bf16.mxu0 %vm5403_vm0, %v5402_v0 }
 0x354   : > { %4267 = vmatprep.subr.bf16.mxu0 %v5402_v0 }
 0x35a   : > { %4258 = vmatmul.mubr.msk.bf16.vlgmr.msra.gmra.mrb[12].mxu0 %vm1525_vm2, %v1878_v32 }
 0x35b   : > { %4271 = vmatprep.mubr.msk.bf16.mxu0 %vm5403_vm0, %v5402_v0 }
 0x3ab   : > { %v1566_v37 = vpop.f32.mrb[0].mxu0 }
 0x3ac   : > { %v1572_v38 = vmul.f32 0.35355338, %v1566_v37  ;;  %v4223_v39 = vpop.f32.mrb[1].mxu0 }
 0x3ad   : > { %v1569_v40 = vpop.f32.mrb[2].mxu0 }
 0x3ae   : > { %v1573_v41 = vadd.f32 %v1572_v38, %v5971_v36  ;;  %v4224_v42 = vpop.f32.mrb[3].mxu0 }
 0x3b0   : > { %v1574_v43 = vsel %vm1388_vm3, %v1573_v41, -1e+09 }
 0x3b1   : > { %v1575_v44 = vsel %vm1525_vm2, %v1574_v43, -inf }
 0x3b2   : > { %1576 = vmax.xlane.f32.xlu0 %v1575_v44 }
 0x41d   : > { %v1683_v45 = vpop.f32.mrb[4].mxu0 }
 0x41e   : > { %v1689_v46 = vmul.f32 0.35355338, %v1683_v45  ;;  %v4235_v47 = vpop.f32.mrb[5].mxu0 }
 0x41f   : > { %v1686_v48 = vpop.f32.mrb[6].mxu0 }
 0x420   : > { %v1690_v49 = vadd.f32 %v1689_v46, %v5971_v36  ;;  %v4236_v50 = vpop.f32.mrb[7].mxu0 }
 0x422   : > { %v1691_v51 = vsel %vm1388_vm3, %v1690_v49, -1e+09 }
 0x423   : > { %v1692_v52 = vsel %vm1525_vm2, %v1691_v51, -inf }
 0x424   : > { %1693 = vmax.xlane.f32.xlu1 %v1692_v52 }
 0x425   : > { %v1802_v53 = vpop.f32.mrb[8].mxu0 }
 0x426   : > { %v1808_v54 = vmul.f32 0.35355338, %v1802_v53  ;;  %v4247_v55 = vpop.f32.mrb[9].mxu0 }
 0x427   : > { %v1805_v56 = vpop.f32.mrb[10].mxu0 }
 0x428   : > { %v1809_v57 = vadd.f32 %v1808_v54, %v5971_v36  ;;  %v4248_v58 = vpop.f32.mrb[11].mxu0 }
 0x42a   : > { %v1810_v59 = vsel %vm1388_vm3, %v1809_v57, -1e+09 }
 0x42b   : > { %v1811_v60 = vsel %vm1525_vm2, %v1810_v59, -inf }
 0x42c   : > { %1812 = vmax.xlane.f32.xlu0 %v1811_v60  ;;  %v4708_v60 = vld [vmem:[%s6405_s8] sm:$0xff]  }
 0x42d   : > { %v1921_v61 = vpop.f32.mrb[12].mxu0  ;;  %4268 = vmatpush3.bf16.msra.mxu0 %v4708_v60 }
 0x42e   : > { %v1927_v62 = vmul.f32 0.35355338, %v1921_v61  ;;  %v4259_v63 = vpop.f32.mrb[13].mxu0  ;;  %v4709_v61 = vld [vmem:[%s6405_s8 + $0x8] sm:$0xff]   ;;  %4269 = vmatprep.subr.bf16.mxu0 %v5402_v0 }
 0x42f   : > { %v1924_v1 = vpop.f32.mrb[14].mxu0 }
 0x430   : > { %v1928_v2 = vadd.f32 %v1927_v62, %v5971_v36  ;;  %v4260_v4 = vpop.f32.mrb[15].mxu0 }
 0x431   : > { %4270 = vmatpush3.bf16.msra.mxu0 %v4709_v61 }
 0x432   : > { %v1929_v5 = vsel %vm1388_vm3, %v1928_v2, -1e+09  ;;  %4283 = vmatprep.subr.bf16.mxu0 %v5402_v0 }
 0x433   : > { %v1930_v6 = vsel %vm1525_vm2, %v1929_v5, -inf }
 0x434   : > { %1931 = vmax.xlane.f32.xlu0 %v1930_v6 }
 0x43f   : > { %v1577_v7 = vpop.xlane.xlu0 %1576 }
 0x440   : > { %v1578_v8 = vsub.f32 %v1574_v43, %v1577_v7 }
 0x442   : > { %v1579_v9 = vmul.f32 1.442695, %v1578_v8 }
 0x444   : > { %4728 = vpow2.f32 %v1579_v9 }
 0x44e   : > { %v4729_v10 = vpop.eup %4728 }
 0x44f   : > { %v1581_v11 = vsel %vm1525_vm2, %v4729_v10, 0.0 }
 0x450   : > { %1582 = vadd.xlane.f32.xlu1 %v1581_v11 }
 0x461   : > { %1588 = vrot.lane.b32.xlu1 %v5938_v20, %s6338_s0  ;;  %s6409_s0 = sld [smem:[#allocation52_spill]] }
 0x4b1   : > { %v1694_v12 = vpop.xlane.xlu1 %1693 }
 0x4b2   : > { %v1695_v13 = vsub.f32 %v1691_v51, %v1694_v12 }
 0x4b4   : > { %v1696_v14 = vmul.f32 1.442695, %v1695_v13 }
 0x4b6   : > { %4730 = vpow2.f32 %v1696_v14 }
 0x4b9   : > { %v1813_v15 = vpop.xlane.xlu0 %1812 }
 0x4ba   : > { %v1814_v16 = vsub.f32 %v1810_v59, %v1813_v15 }
 0x4bc   : > { %v1815_v17 = vmul.f32 1.442695, %v1814_v16 }
 0x4be   : > { %4732 = vpow2.f32 %v1815_v17 }
 0x4c0   : > { %v4731_v18 = vpop.eup %4730 }
 0x4c1   : > { %v1932_v19 = vpop.xlane.xlu0 %1931  ;;  %v1698_v21 = vsel %vm1525_vm2, %v4731_v18, 0.0 }
 0x4c2   : > { %v1933_v22 = vsub.f32 %v1929_v5, %v1932_v19  ;;  %1699 = vadd.xlane.f32.xlu0 %v1698_v21 }
 0x4c4   : > { %v1934_v23 = vmul.f32 1.442695, %v1933_v22 }
 0x4c6   : > { %4734 = vpow2.f32 %v1934_v23 }
 0x4c8   : > { %v4733_v24 = vpop.eup %4732 }
 0x4c9   : > { %v1817_v25 = vsel %vm1525_vm2, %v4733_v24, 0.0 }
 0x4ca   : > { %1818 = vadd.xlane.f32.xlu1 %v1817_v25 }
 0x4d0   : > { %v4735_v26 = vpop.eup %4734 }
 0x4d1   : > { %v1936_v27 = vsel %vm1525_vm2, %v4735_v26, 0.0 }
 0x4d2   : > { %1937 = vadd.xlane.f32.xlu0 %v1936_v27  ;;  %v4710_v27 = vld [vmem:[#allocation8] sm:$0xff]  }
 0x4db   : > { %1823 = vrot.lane.b32.xlu1 %v5938_v20, %s6328_s29  ;;  %s6336_s29 = smov 16  }
 0x4dd   : > { %v1583_v28 = vpop.xlane.xlu1 %1582 }
 0x4de   : > { %4736 = vrcp.f32 %v1583_v28  ;;  %v4711_v28 = vld [vmem:[#allocation8 + $0x8] sm:$0xff]  }
 0x4df   : > { %1942 = vrot.lane.b32.xlu1 %v5938_v20, %s6332_s7  ;;  %s6406_s7 = sld [smem:[#allocation50_spill]] }
 0x4e1   : > { %v1589_v29 = vpop.permute.xlu1 %1588 }
 0x4e2   : > { %v1595_v30 = vsel %vm1593_vm4, %v1589_v29, 0 }
 0x4e3   : > { %4226 = vmatpush3.bf16.msra.mxu1 %v1595_v30  ;;  %v4712_v30 = vld [vmem:[#allocation3] sm:$0xff]  }
 0x4e4   : > { %4237 = vmatprep.subr.bf16.mxu1 %v5402_v0 }
 0x4e5   : > { %v4054_v13 = vld [vmem:[%s6406_s7] ss:$0 sm:$0xff] }
 0x4e8   : > { %v4737_v31 = vpop.eup %4736  ;;  %1704 = vrot.lane.b32.xlu0 %v5938_v20, %s6340_s2 }
 0x4e9   : > { %v1585_v32 = vmul.f32 %v4737_v31, %v4729_v10  ;;  %v4713_v31 = vld [vmem:[#allocation3 + $0x8] sm:$0xff]  }
 0x4eb   : > { %v1586_v33 = vpack.c.bf16 %v1585_v32, %v1585_v32 }
 0x4ed   : > { %4228 = vmatmul.mubr.msk.bf16.vlgmr.msra.gmra.mrb[8].mxu1 %vm1525_vm2, %v1586_v33 }
 0x4ee   : > { %4239 = vmatprep.mubr.msk.bf16.mxu1 %vm5403_vm0, %v5402_v0 }
 0x54f   : > { %v1700_v34 = vpop.xlane.xlu0 %1699 }
 0x550   : > { %4738 = vrcp.f32 %v1700_v34 }
 0x557   : > { %v1819_v35 = vpop.xlane.xlu1 %1818 }
 0x558   : > { %4740 = vrcp.f32 %v1819_v35 }
 0x55a   : > { %v4739_v37 = vpop.eup %4738 }
 0x55b   : > { %v1702_v39 = vmul.f32 %v4739_v37, %v4731_v18  ;;  %v1824_v42 = vpop.permute.xlu1 %1823 }
 0x55c   : > { %v1829_v44 = vsel %vm1593_vm4, %v1824_v42, 0 }
 0x55d   : > { %v1703_v20 = vpack.c.bf16 %v1702_v39, %v1702_v39  ;;  %v4059_v39 = vld [vmem:[%s6409_s0] ss:$0 sm:$0xff]  ;;  %s6410_s0 = smov 96  }
 0x55f   : > { %v1938_v38 = vpop.xlane.xlu0 %1937  ;;  %v1943_v46 = vpop.permute.xlu1 %1942 }
 0x560   : > { %4742 = vrcp.f32 %v1938_v38  ;;  %v1948_v49 = vsel %vm1593_vm4, %v1943_v46, 0 }
 0x562   : > { %v4741_v43 = vpop.eup %4740 }
 0x563   : > { %v1705_v40 = vpop.permute.xlu0 %1704  ;;  %v1821_v45 = vmul.f32 %v4741_v43, %v4733_v24 }
 0x564   : > { %v1710_v41 = vsel %vm1593_vm4, %v1705_v40, 0 }
 0x565   : > { %4238 = vmatpush3.bf16.msra.mxu1 %v1710_v41  ;;  %v1822_v47 = vpack.c.bf16 %v1821_v45, %v1821_v45 }
 0x566   : > { %4249 = vmatprep.subr.bf16.mxu1 %v5402_v0 }
 0x568   : > { %4240 = vmatmul.mubr.msk.bf16.vlgmr.msra.gmra.mrb[12].mxu1 %vm1525_vm2, %v1703_v20  ;;  %v4064_v20 = vld [vmem:[#allocation9] ss:$0 sm:$0xff] }
 0x569   : > { %4250 = vmatpush3.bf16.msra.mxu1 %v1829_v44  ;;  %4251 = vmatprep.mubr.msk.bf16.mxu1 %vm5403_vm0, %v5402_v0 }
 0x56a   : > { %4261 = vmatprep.subr.bf16.mxu1 %v5402_v0  ;;  %v4743_v48 = vpop.eup %4742 }
 0x56b   : > { %v1940_v50 = vmul.f32 %v4743_v48, %v4735_v26 }
 0x56d   : > { %v1941_v51 = vpack.c.bf16 %v1940_v50, %v1940_v50  ;;  %v4060_v50 = vld [vmem:[#allocation6] ss:$0 sm:$0xff] }
 0x570   : > { %4252 = vmatmul.mubr.msk.bf16.vlgmr.msra.gmra.mrb[16].mxu1 %vm1525_vm2, %v1822_v47 }
 0x571   : > { %4262 = vmatpush3.bf16.msra.mxu1 %v1948_v49  ;;  %4263 = vmatprep.mubr.msk.bf16.mxu1 %vm5403_vm0, %v5402_v0 }
 0x572   : > { %4275 = vmatprep.subr.bf16.mxu1 %v5402_v0 }
 0x578   : > { %4264 = vmatmul.mubr.msk.bf16.vlgmr.msra.gmra.mrb[20].mxu1 %vm1525_vm2, %v1941_v51 }
 0x579   : > { %4279 = vmatprep.mubr.msk.bf16.mxu1 %vm5403_vm0, %v5402_v0  ;;  %4276 = vmatpush3.bf16.msra.mxu1 %v4712_v30 }
 0x57a   : > { %4277 = vmatprep.subr.bf16.mxu1 %v5402_v0 }
 0x57d   : > { %4278 = vmatpush3.bf16.msra.mxu1 %v4713_v31 }
 0x57e   : > { %4291 = vmatprep.subr.bf16.mxu1 %v5402_v0 }
 0x5c0   : > { %v1631_v52 = vpop.f32.mrb[8].mxu1 }
 0x5c1   : > { %1637 = vst.msk [vmem:[#allocation2] sm:$0xff] %vm1525_vm2, %v1631_v52  ;;  %v4229_v53 = vpop.f32.mrb[9].mxu1 }
 0x5c2   : > { %v1634_v54 = vpop.f32.mrb[10].mxu1 }
 0x5c3   : > { %v4230_v55 = vpop.f32.mrb[11].mxu1 }
 0x63b   : > { %v1746_v56 = vpop.f32.mrb[12].mxu1 }
 0x63c   : > { %1753 = vrot.lane.b32.xlu0 %v1746_v56, %s6330_s22  ;;  %v4241_v57 = vpop.f32.mrb[13].mxu1  ;;  %s6334_s22 = smov 24  }
 0x63d   : > { %v1749_v58 = vpop.f32.mrb[14].mxu1 }
 0x63e   : > { %v4242_v59 = vpop.f32.mrb[15].mxu1 }
 0x643   : > { %v1865_v62 = vpop.f32.mrb[16].mxu1 }
 0x644   : > { %1872 = vrot.lane.b32.xlu1 %v1865_v62, %s6336_s29  ;;  %v4253_v63 = vpop.f32.mrb[17].mxu1  ;;  %s6408_s29 = sld [smem:[#allocation51_spill]] }
 0x645   : > { %v1868_v1 = vpop.f32.mrb[18].mxu1 }
 0x646   : > { %v4254_v2 = vpop.f32.mrb[19].mxu1 }
 0x64a   : > { %v4058_v37 = vld [vmem:[%s6408_s29] ss:$0 sm:$0xff]  ;;  %s6411_s29 = smov 72  }
 0x64b   : > { %v1984_v4 = vpop.f32.mrb[20].mxu1 }
 0x64c   : > { %1991 = vrot.lane.b32.xlu0 %v1984_v4, %s6334_s22  ;;  %v4265_v5 = vpop.f32.mrb[21].mxu1  ;;  %s6407_s22 = sld [smem:[#allocation42_spill]] }
 0x64d   : > { %v1987_v6 = vpop.f32.mrb[22].mxu1 }
 0x64e   : > { %v4266_v7 = vpop.f32.mrb[23].mxu1 }
 0x652   : > { %s1363_s7 = scalar_lea.vmem %s6407_s22, %s5912_s15  ;;  %s6412_s22 = smov 80  }
 0x653   : > { %v1376_v29 = vld [vmem:[%s1363_s7] sm:$0xff]  ;;  %s6413_s7 = smov 8  }
 0x6ae   : > { %v1754_v8 = vpop.permute.xlu0 %1753 }
 0x6af   : > { %1757 = vst.msk [vmem:[#allocation2] sm:$0xff] %vm1756_vm5, %v1754_v8 }
 0x6b6   : > { %v1873_v9 = vpop.permute.xlu1 %1872 }
 0x6b7   : > { %1876 = vst.msk [vmem:[#allocation2] sm:$0xff] %vm1875_vm6, %v1873_v9 }
 0x6be   : > { %v1992_v10 = vpop.permute.xlu0 %1991 }
 0x6bf   : > { %1995 = vst.msk [vmem:[#allocation2] sm:$0xff] %vm1994_vm7, %v1992_v10 }
 0x6c6   : > { %v1996_v11 = vld [vmem:[#allocation2] sm:$0xff] }
 0x6c7   : > { %v1997_v12 = vpack.c.bf16 %v1996_v11, %v1996_v11 }
 0x6c9   : > { %4272 = vmatmul.mubr.msk.bf16.vlgmr.msra.gmra.mrb[16].mxu0 %vm1413_vm1, %v1997_v12 }
 0x6ca   : > { %4287 = vmatprep.mubr.msk.bf16.mxu0 %vm5403_vm0, %v5402_v0  ;;  %4284 = vmatpush3.bf16.msra.mxu0 %v4710_v27 }
 0x6cb   : > { %4285 = vmatprep.subr.bf16.mxu0 %v5402_v0 }
 0x6ce   : > { %4286 = vmatpush3.bf16.msra.mxu0 %v4711_v28 }
 0x6cf   : > { %4297 = vmatprep.subr.bf16.mxu0 %v5402_v0 }
 0x79c   : > { %v2058_v14 = vpop.f32.mrb[16].mxu0 }
 0x79d   : > { %v2059_v15 = vadd.f32 %v4054_v13, %v2058_v14  ;;  %v4273_v16 = vpop.f32.mrb[17].mxu0 }
 0x79e   : > { %v2061_v17 = vpop.f32.mrb[18].mxu0 }
 0x79f   : > { %v4274_v18 = vpop.f32.mrb[19].mxu0  ;;  %v2064_v19 = vadd.f32 %v2059_v15, %v5918_v3  ;;  %v1377_v3 = vpack.c.bf16 %v1376_v29, %v1376_v29 }
 0x7a1   : > { %v2067_v21 = vsel %vm1413_vm1, %v2064_v19, 0.0  ;;  %4288 = vmatmul.mubr.msk.bf16.vlgmr.msra.gmra.mrb[20].mxu0 %vm1413_vm1, %v1377_v3 }
 0x7a2   : > { %2068 = vadd.xlane.f32.xlu1 %v2067_v21  ;;  %4299 = vmatprep.mubr.msk.bf16.mxu0 %vm5403_vm0, %v5402_v0 }
 0x82f   : > { %v2069_v22 = vpop.xlane.xlu1 %2068 }
 0x830   : > { %v2071_v23 = vmul.f32 0.03125, %v2069_v22 }
 0x832   : > { %v2072_v24 = vsub.f32 %v2064_v19, %v2071_v23 }
 0x834   : > { %v2073_v25 = vmul.f32 %v2072_v24, %v2072_v24 }
 0x836   : > { %v2074_v26 = vsel %vm1413_vm1, %v2073_v25, 0.0 }
 0x837   : > { %2075 = vadd.xlane.f32.xlu0 %v2074_v26 }
 0x874   : > { %v2222_v43 = vpop.f32.mrb[20].mxu0 }
 0x875   : > { %v2223_v44 = vadd.f32 %v4064_v20, %v2222_v43  ;;  %v4289_v45 = vpop.f32.mrb[21].mxu0 }
 0x876   : > { %v2225_v46 = vpop.f32.mrb[22].mxu0 }
 0x877   : > { %v6053_v47 = vpack.c.bf16 %v2223_v44, %v2223_v44  ;;  %v4290_v48 = vpop.f32.mrb[23].mxu0 }
 0x879   : > { %2343 = vrot.lane.b32.xlu0 %v6053_v47, %s6345_s26  ;;  %v2234_v49 = vsel %vm1525_vm2, %v6053_v47, 0 }
 0x8c4   : > { %v2076_v32 = vpop.xlane.xlu0 %2075 }
 0x8c5   : > { %v2077_v33 = vmul.f32 0.03125, %v2076_v32 }
 0x8c7   : > { %v2078_v34 = vadd.f32 1e-05, %v2077_v33 }
 0x8c9   : > { %4744 = vrsqrt.f32 %v2078_v34 }
 0x8d3   : > { %v4745_v35 = vpop.eup %4744 }
 0x8d4   : > { %v2080_v38 = vmul.f32 %v4745_v35, %v2072_v24 }
 0x8d6   : > { %v2087_v40 = vmul.f32 %v4058_v37, %v2080_v38 }
 0x8d8   : > { %v6046_v41 = vadd.f32 %v4059_v39, %v2087_v40 }
 0x8da   : > { %v2095_v42 = vpack.c.bf16 %v6046_v41, %v6046_v41 }
 0x8dc   : > { %4280 = vmatmul.mubr.msk.bf16.vlgmr.msra.gmra.mrb[24].mxu1 %vm1413_vm1, %v2095_v42 }
 0x8dd   : > { %4293 = vmatprep.mubr.msk.bf16.mxu1 %vm5403_vm0, %v5402_v0  ;;  %4292 = vmatpush3.bf16.xpose.msra.mxu1 %v2234_v49 }
 0x8de   : > { %4303 = vmatprep.subr.bf16.mxu1 %v5402_v0 }
 0x8eb   : > { %v2344_v54 = vpop.permute.xlu0 %2343 }
 0x8ec   : > { %v2349_v58 = vsel %vm1525_vm2, %v2344_v54, 0 }
 0x9af   : > { %v2156_v51 = vpop.f32.mrb[24].mxu1 }
 0x9b0   : > { %v2157_v52 = vadd.f32 %v4060_v50, %v2156_v51  ;;  %v4281_v53 = vpop.f32.mrb[25].mxu1 }
 0x9b1   : > { %v2159_v55 = vpop.f32.mrb[26].mxu1 }
 0x9b2   : > { %v2228_v56 = vpack.c.bf16 %v2157_v52, %v2157_v52  ;;  %v4282_v57 = vpop.f32.mrb[27].mxu1 }
 0x9b4   : > { %2458 = vrot.lane.b32.xlu0 %v2228_v56, %s6343_s12  ;;  %2341 = vrot.lane.b32.xlu1 %v2228_v56, %s6345_s26 }
 0x9b5   : > { %4294 = vmatmul.mubr.msk.bf16.vlgmr.msra.gmra.mrb[28].mxu1 %vm1525_vm2, %v2228_v56 }
 0x9b6   : > { %4304 = vmatpush3.bf16.xpose.msra.mxu1 %v2349_v58  ;;  %4305 = vmatprep.mubr.msk.bf16.mxu1 %vm5403_vm0, %v5402_v0 }
 0x9b7   : > { %4315 = vmatprep.subr.bf16.mxu1 %v5402_v0 }
 0x9b8   : > { %2575 = vrot.lane.b32.xlu0 %v2228_v56, %s6341_s10  ;;  %2460 = vrot.lane.b32.xlu1 %v6053_v47, %s6343_s12  ;;  %s6416_s12 = sld [smem:[#allocation43_spill]] }
 0x9bc   : > { %2577 = vrot.lane.b32.xlu1 %v6053_v47, %s6341_s10  ;;  %s6415_s10 = smov 24  }
 0x9be   : > { %s1367_s26 = scalar_lea.vmem %s6416_s12, %s5912_s15  ;;  %s6421_s15 = smov 104  }
 0x9bf   : > { %s6422_s12 = smov 88  }
 0xa26   : > { %v2342_v59 = vpop.permute.xlu1 %2341  ;;  %v2459_v63 = vpop.permute.xlu0 %2458 }
 0xa27   : > { %4306 = vmatmul.mubr.msk.bf16.vlgmr.msra.gmra.mrb[32].mxu1 %vm1525_vm2, %v2342_v59 }
 0xa28   : > { %4317 = vmatprep.mubr.msk.bf16.mxu1 %vm5403_vm0, %v5402_v0 }
 0xa2a   : > { %v2461_v60 = vpop.permute.xlu1 %2460  ;;  %v2576_v2 = vpop.permute.xlu0 %2575 }
 0xa2b   : > { %v2466_v61 = vsel %vm1525_vm2, %v2461_v60, 0 }
 0xa2c   : > { %4316 = vmatpush3.bf16.xpose.msra.mxu1 %v2466_v61 }
 0xa2d   : > { %4327 = vmatprep.subr.bf16.mxu1 %v5402_v0 }
 0xa2e   : > { %v2578_v62 = vpop.permute.xlu1 %2577 }
 0xa2f   : > { %v2583_v1 = vsel %vm1525_vm2, %v2578_v62, 0 }
 0xa33   : > { %4318 = vmatmul.mubr.msk.bf16.vlgmr.msra.gmra.mrb[36].mxu1 %vm1525_vm2, %v2459_v63 }
 0xa34   : > { %4328 = vmatpush3.bf16.xpose.msra.mxu1 %v2583_v1  ;;  %4329 = vmatprep.mubr.msk.bf16.mxu1 %vm5403_vm0, %v5402_v0 }
 0xa35   : > { %4339 = vmatprep.subr.bf16.mxu1 %v5402_v0 }
 0xa3b   : > { %4330 = vmatmul.mubr.msk.bf16.vlgmr.msra.gmra.mrb[40].mxu1 %vm1525_vm2, %v2576_v2 }
 0xa3c   : > { %4343 = vmatprep.mubr.msk.bf16.mxu1 %vm5403_vm0, %v5402_v0 }
 0xa88   : > { %v2270_v4 = vpop.f32.mrb[28].mxu1 }
 0xa89   : > { %v2276_v5 = vmul.f32 0.35355338, %v2270_v4  ;;  %v4295_v6 = vpop.f32.mrb[29].mxu1 }
 0xa8a   : > { %v2273_v7 = vpop.f32.mrb[30].mxu1 }
 0xa8b   : > { %v4296_v8 = vpop.f32.mrb[31].mxu1  ;;  %v2277_v9 = vadd.f32 %v2276_v5, %v5971_v36 }
 0xa8d   : > { %v2278_v10 = vsel %vm1525_vm2, %v2277_v9, -inf }
 0xa8e   : > { %2279 = vmax.xlane.f32.xlu1 %v2278_v10 }
 0xafa   : > { %v2385_v11 = vpop.f32.mrb[32].mxu1 }
 0xafb   : > { %v2391_v12 = vmul.f32 0.35355338, %v2385_v11  ;;  %v4307_v13 = vpop.f32.mrb[33].mxu1 }
 0xafc   : > { %v2388_v14 = vpop.f32.mrb[34].mxu1 }
 0xafd   : > { %v4308_v15 = vpop.f32.mrb[35].mxu1  ;;  %v2392_v16 = vadd.f32 %v2391_v12, %v5971_v36 }
 0xaff   : > { %v2393_v17 = vsel %vm1525_vm2, %v2392_v16, -inf }
 0xb00   : > { %2394 = vmax.xlane.f32.xlu0 %v2393_v17 }
 0xb06   : > { %v2502_v18 = vpop.f32.mrb[36].mxu1 }
 0xb07   : > { %v2508_v19 = vmul.f32 0.35355338, %v2502_v18  ;;  %v4319_v21 = vpop.f32.mrb[37].mxu1 }
 0xb08   : > { %v2505_v22 = vpop.f32.mrb[38].mxu1 }
 0xb09   : > { %v4320_v23 = vpop.f32.mrb[39].mxu1  ;;  %v2509_v24 = vadd.f32 %v2508_v19, %v5971_v36 }
 0xb0b   : > { %v2510_v25 = vsel %vm1525_vm2, %v2509_v24, -inf }
 0xb0c   : > { %2511 = vmax.xlane.f32.xlu0 %v2510_v25  ;;  %v4715_v25 = vld [vmem:[#allocation11 + $0x8] sm:$0xff]  }
 0xb0e   : > { %v2619_v26 = vpop.f32.mrb[40].mxu1 }
 0xb0f   : > { %v2625_v27 = vmul.f32 0.35355338, %v2619_v26  ;;  %v4331_v28 = vpop.f32.mrb[41].mxu1 }
 0xb10   : > { %v2622_v29 = vpop.f32.mrb[42].mxu1 }
 0xb11   : > { %v4332_v3 = vpop.f32.mrb[43].mxu1  ;;  %v2626_v30 = vadd.f32 %v2625_v27, %v5971_v36 }
 0xb13   : > { %v2627_v31 = vsel %vm1525_vm2, %v2626_v30, -inf }
 0xb14   : > { %2628 = vmax.xlane.f32.xlu1 %v2627_v31 }
 0xb1b   : > { %v2280_v32 = vpop.xlane.xlu1 %2279 }
 0xb1c   : > { %v2281_v33 = vsub.f32 %v2277_v9, %v2280_v32 }
 0xb1e   : > { %v2282_v34 = vmul.f32 1.442695, %v2281_v33 }
 0xb20   : > { %4746 = vpow2.f32 %v2282_v34 }
 0xb2a   : > { %v4747_v35 = vpop.eup %4746 }
 0xb2b   : > { %v2284_v37 = vsel %vm1525_vm2, %v4747_v35, 0.0 }
 0xb2c   : > { %2285 = vadd.xlane.f32.xlu0 %v2284_v37 }
 0xb8d   : > { %v2395_v38 = vpop.xlane.xlu0 %2394 }
 0xb8e   : > { %v2396_v39 = vsub.f32 %v2392_v16, %v2395_v38 }
 0xb90   : > { %v2397_v40 = vmul.f32 1.442695, %v2396_v39  ;;  %v4076_v39 = vld [vmem:[#allocation12] ss:$0 sm:$0xff] }
 0xb92   : > { %4748 = vpow2.f32 %v2397_v40 }
 0xb99   : > { %v2512_v42 = vpop.xlane.xlu0 %2511 }
 0xb9a   : > { %v2513_v20 = vsub.f32 %v2509_v24, %v2512_v42  ;;  %v4714_v24 = vld [vmem:[#allocation11] sm:$0xff]  }
 0xb9b   : > { %4340 = vmatpush3.bf16.msra.mxu1 %v4714_v24 }
 0xb9c   : > { %v4749_v43 = vpop.eup %4748  ;;  %v2514_v44 = vmul.f32 1.442695, %v2513_v20  ;;  %4341 = vmatprep.subr.bf16.mxu1 %v5402_v0 }
 0xb9d   : > { %v2399_v45 = vsel %vm1525_vm2, %v4749_v43, 0.0 }
 0xb9e   : > { %4750 = vpow2.f32 %v2514_v44  ;;  %2400 = vadd.xlane.f32.xlu1 %v2399_v45 }
 0xb9f   : > { %4342 = vmatpush3.bf16.msra.mxu1 %v4715_v25 }
 0xba0   : > { %4355 = vmatprep.subr.bf16.mxu1 %v5402_v0 }
 0xba1   : > { %v2629_v49 = vpop.xlane.xlu1 %2628 }
 0xba2   : > { %v2630_v50 = vsub.f32 %v2626_v30, %v2629_v49 }
 0xba4   : > { %v2631_v51 = vmul.f32 1.442695, %v2630_v50 }
 0xba6   : > { %4752 = vpow2.f32 %v2631_v51 }
 0xba8   : > { %v4751_v46 = vpop.eup %4750 }
 0xba9   : > { %v2516_v48 = vsel %vm1525_vm2, %v4751_v46, 0.0 }
 0xbaa   : > { %2517 = vadd.xlane.f32.xlu0 %v2516_v48 }
 0xbaf   : > { %2405 = vrot.lane.b32.xlu1 %v6053_v47, %s6340_s2  ;;  %s6414_s2 = smov 16  }
 0xbb0   : > { %v4753_v52 = vpop.eup %4752 }
 0xbb1   : > { %v2633_v53 = vsel %vm1525_vm2, %v4753_v52, 0.0 }
 0xbb9   : > { %v2286_v54 = vpop.xlane.xlu0 %2285 }
 0xbba   : > { %4754 = vrcp.f32 %v2286_v54  ;;  %v4717_v54 = vld [vmem:[#allocation17 + $0x8] sm:$0xff]  }
 0xbc0   : > { %2291 = vrot.lane.b32.xlu0 %v6053_v47, %s6410_s0 }
 0xbc4   : > { %2639 = vrot.lane.b32.xlu0 %v6053_v47, %s6411_s29  ;;  %v4755_v56 = vpop.eup %4754 }
 0xbc5   : > { %v2288_v58 = vmul.f32 %v4755_v56, %v4747_v35  ;;  %v4718_v56 = vld [vmem:[#allocation14] sm:$0xff]  }
 0xbc7   : > { %v2289_v62 = vpack.c.bf16 %v2288_v58, %v2288_v58 }
 0xbd3   : > { %2634 = vadd.xlane.f32.xlu1 %v2633_v53  ;;  %v4716_v53 = vld [vmem:[#allocation17] sm:$0xff]  }
 0xbe4   : > { %2522 = vrot.lane.b32.xlu1 %v6053_v47, %s6412_s22 }
 0xc2b   : > { %v2401_v55 = vpop.xlane.xlu1 %2400 }
 0xc2c   : > { %4756 = vrcp.f32 %v2401_v55  ;;  %v1378_v55 = vld [vmem:[%s1367_s26] sm:$0xff]  ;;  %s6423_s26 = sld [smem:[#allocation60_spill]] }
 0xc2f   : > { %v2406_v61 = vpop.permute.xlu1 %2405 }
 0xc30   : > { %v2411_v1 = vsel %vm1593_vm4, %v2406_v61, 0 }
 0xc36   : > { %v4757_v63 = vpop.eup %4756 }
 0xc37   : > { %v2518_v57 = vpop.xlane.xlu0 %2517  ;;  %v2403_v47 = vmul.f32 %v4757_v63, %v4749_v43 }
 0xc38   : > { %4758 = vrcp.f32 %v2518_v57  ;;  %v4719_v57 = vld [vmem:[#allocation14 + $0x8] sm:$0xff]  }
 0xc39   : > { %v2404_v2 = vpack.c.bf16 %v2403_v47, %v2403_v47 }
 0xc3b   : > { %v2292_v59 = vpop.permute.xlu0 %2291 }
 0xc3c   : > { %v2297_v60 = vsel %vm1593_vm4, %v2292_v59, 0 }
 0xc3d   : > { %4298 = vmatpush3.bf16.msra.mxu0 %v2297_v60 }
 0xc3e   : > { %4309 = vmatprep.subr.bf16.mxu0 %v5402_v0 }
 0xc3f   : > { %v2640_v9 = vpop.permute.xlu0 %2639 }
 0xc40   : > { %4300 = vmatmul.mubr.msk.bf16.vlgmr.msra.gmra.mrb[24].mxu0 %vm1525_vm2, %v2289_v62  ;;  %v2645_v11 = vsel %vm1593_vm4, %v2640_v9, 0  ;;  %v4080_v62 = vld [vmem:[%s6417_s3] ss:$0 sm:$0xff]  ;;  %s6419_s3 = smov 120  }
 0xc41   : > { %4310 = vmatpush3.bf16.msra.mxu0 %v2411_v1  ;;  %4311 = vmatprep.mubr.msk.bf16.mxu0 %vm5403_vm0, %v5402_v0  ;;  %v4081_v1 = vld [vmem:[%s6418_s4] ss:$0 sm:$0xff]  ;;  %s6420_s4 = smov 112  }
 0xc42   : > { %4321 = vmatprep.subr.bf16.mxu0 %v5402_v0  ;;  %v4759_v4 = vpop.eup %4758 }
 0xc43   : > { %v2520_v6 = vmul.f32 %v4759_v4, %v4751_v46 }
 0xc45   : > { %v2521_v10 = vpack.c.bf16 %v2520_v6, %v2520_v6 }
 0xc48   : > { %4312 = vmatmul.mubr.msk.bf16.vlgmr.msra.gmra.mrb[28].mxu0 %vm1525_vm2, %v2404_v2 }
 0xc49   : > { %4323 = vmatprep.mubr.msk.bf16.mxu0 %vm5403_vm0, %v5402_v0 }
 0xc60   : > { %v2635_v5 = vpop.xlane.xlu1 %2634 }
 0xc61   : > { %4760 = vrcp.f32 %v2635_v5  ;;  %v4086_v5 = vld [vmem:[#allocation18] ss:$0 sm:$0xff] }
 0xc64   : > { %v2523_v7 = vpop.permute.xlu1 %2522 }
 0xc65   : > { %v2528_v8 = vsel %vm1593_vm4, %v2523_v7, 0 }
 0xc66   : > { %4322 = vmatpush3.bf16.msra.mxu0 %v2528_v8 }
 0xc67   : > { %4333 = vmatprep.subr.bf16.mxu0 %v5402_v0 }
 0xc69   : > { %4324 = vmatmul.mubr.msk.bf16.vlgmr.msra.gmra.mrb[32].mxu0 %vm1525_vm2, %v2521_v10 }
 0xc6a   : > { %4334 = vmatpush3.bf16.msra.mxu0 %v2645_v11  ;;  %4335 = vmatprep.mubr.msk.bf16.mxu0 %vm5403_vm0, %v5402_v0 }
 0xc6b   : > { %v4761_v12 = vpop.eup %4760  ;;  %4347 = vmatprep.subr.bf16.mxu0 %v5402_v0 }
 0xc6c   : > { %v2637_v13 = vmul.f32 %v4761_v12, %v4753_v52 }
 0xc6e   : > { %v2638_v14 = vpack.c.bf16 %v2637_v13, %v2637_v13  ;;  %v4082_v13 = vld [vmem:[#allocation15] ss:$0 sm:$0xff] }
 0xc71   : > { %4336 = vmatmul.mubr.msk.bf16.vlgmr.msra.gmra.mrb[36].mxu0 %vm1525_vm2, %v2638_v14 }
 0xc72   : > { %4351 = vmatprep.mubr.msk.bf16.mxu0 %vm5403_vm0, %v5402_v0  ;;  %4348 = vmatpush3.bf16.msra.mxu0 %v4718_v56  ;;  %v4784_v56 = vld [vmem:[%s6404_s16] sm:$0xff] }
 0xc73   : > { %4349 = vmatprep.subr.bf16.mxu0 %v5402_v0 }
 0xc76   : > { %4350 = vmatpush3.bf16.msra.mxu0 %v4719_v57 }
 0xc77   : > { %4363 = vmatprep.subr.bf16.mxu0 %v5402_v0 }
 0xd13   : > { %v2333_v15 = vpop.f32.mrb[24].mxu0 }
 0xd14   : > { %2339 = vst.msk [vmem:[#allocation2] sm:$0xff] %vm1525_vm2, %v2333_v15  ;;  %v4301_v16 = vpop.f32.mrb[25].mxu0 }
 0xd15   : > { %v2336_v17 = vpop.f32.mrb[26].mxu0 }
 0xd16   : > { %v4302_v18 = vpop.f32.mrb[27].mxu0 }
 0xd1b   : > { %v2447_v19 = vpop.f32.mrb[28].mxu0 }
 0xd1c   : > { %2454 = vrot.lane.b32.xlu1 %v2447_v19, %s6413_s7  ;;  %v4313_v21 = vpop.f32.mrb[29].mxu0 }
 0xd1d   : > { %v2450_v22 = vpop.f32.mrb[30].mxu0 }
 0xd1e   : > { %v4314_v23 = vpop.f32.mrb[31].mxu0 }
 0xd3c   : > { %v2564_v26 = vpop.f32.mrb[32].mxu0 }
 0xd3d   : > { %2571 = vrot.lane.b32.xlu0 %v2564_v26, %s6414_s2  ;;  %v4325_v27 = vpop.f32.mrb[33].mxu0 }
 0xd3e   : > { %v2567_v28 = vpop.f32.mrb[34].mxu0 }
 0xd3f   : > { %v4326_v29 = vpop.f32.mrb[35].mxu0 }
 0xd44   : > { %v2681_v3 = vpop.f32.mrb[36].mxu0 }
 0xd45   : > { %2688 = vrot.lane.b32.xlu1 %v2681_v3, %s6415_s10  ;;  %v4337_v30 = vpop.f32.mrb[37].mxu0 }
 0xd46   : > { %v2684_v31 = vpop.f32.mrb[38].mxu0 }
 0xd47   : > { %v4338_v32 = vpop.f32.mrb[39].mxu0 }
 0xd8e   : > { %v2455_v33 = vpop.permute.xlu1 %2454 }
 0xd8f   : > { %2457 = vst.msk [vmem:[#allocation2] sm:$0xff] %vm1756_vm5, %v2455_v33 }
 0xdaf   : > { %v2572_v34 = vpop.permute.xlu0 %2571 }
 0xdb0   : > { %2574 = vst.msk [vmem:[#allocation2] sm:$0xff] %vm1875_vm6, %v2572_v34 }
 0xdb7   : > { %v2689_v35 = vpop.permute.xlu1 %2688 }
 0xdb8   : > { %2691 = vst.msk [vmem:[#allocation2] sm:$0xff] %vm1994_vm7, %v2689_v35 }
 0xdbf   : > { %v2692_v37 = vld [vmem:[#allocation2] sm:$0xff] }
 0xdc0   : > { %v2693_v38 = vpack.c.bf16 %v2692_v37, %v2692_v37 }
 0xdc2   : > { %4344 = vmatmul.mubr.msk.bf16.vlgmr.msra.gmra.mrb[44].mxu1 %vm1413_vm1, %v2693_v38 }
 0xdc3   : > { %4359 = vmatprep.mubr.msk.bf16.mxu1 %vm5403_vm0, %v5402_v0  ;;  %4356 = vmatpush3.bf16.msra.mxu1 %v4716_v53 }
 0xdc4   : > { %4357 = vmatprep.subr.bf16.mxu1 %v5402_v0 }
 0xdc7   : > { %4358 = vmatpush3.bf16.msra.mxu1 %v4717_v54 }
 0xdc8   : > { %4369 = vmatprep.subr.bf16.mxu1 %v5402_v0 }
 0xe95   : > { %v2754_v40 = vpop.f32.mrb[44].mxu1 }
 0xe96   : > { %v2755_v42 = vadd.f32 %v4076_v39, %v2754_v40  ;;  %v4345_v20 = vpop.f32.mrb[45].mxu1 }
 0xe97   : > { %v2757_v43 = vpop.f32.mrb[46].mxu1 }
 0xe98   : > { %v4346_v44 = vpop.f32.mrb[47].mxu1  ;;  %v2760_v45 = vadd.f32 %v2755_v42, %v6046_v41  ;;  %v1379_v41 = vpack.c.bf16 %v1378_v55, %v1378_v55 }
 0xe9a   : > { %v2763_v46 = vsel %vm1413_vm1, %v2760_v45, 0.0  ;;  %4360 = vmatmul.mubr.msk.bf16.vlgmr.msra.gmra.mrb[48].mxu1 %vm1413_vm1, %v1379_v41 }
 0xe9b   : > { %2764 = vadd.xlane.f32.xlu0 %v2763_v46  ;;  %4371 = vmatprep.mubr.msk.bf16.mxu1 %vm5403_vm0, %v5402_v0 }
 0xf28   : > { %v2765_v48 = vpop.xlane.xlu0 %2764 }
 0xf29   : > { %v2766_v49 = vmul.f32 0.03125, %v2765_v48 }
 0xf2b   : > { %v2767_v50 = vsub.f32 %v2760_v45, %v2766_v49 }
 0xf2d   : > { %v2768_v51 = vmul.f32 %v2767_v50, %v2767_v50 }
 0xf2f   : > { %v2769_v52 = vsel %vm1413_vm1, %v2768_v51, 0.0 }
 0xf30   : > { %2770 = vadd.xlane.f32.xlu1 %v2769_v52 }
 0xf6d   : > { %v2917_v6 = vpop.f32.mrb[48].mxu1 }
 0xf6e   : > { %v2918_v7 = vadd.f32 %v4086_v5, %v2917_v6  ;;  %v4361_v8 = vpop.f32.mrb[49].mxu1 }
 0xf6f   : > { %v2920_v9 = vpop.f32.mrb[50].mxu1 }
 0xf70   : > { %v6158_v10 = vpack.c.bf16 %v2918_v7, %v2918_v7  ;;  %v4362_v11 = vpop.f32.mrb[51].mxu1 }
 0xf72   : > { %3038 = vrot.lane.b32.xlu0 %v6158_v10, %s6419_s3  ;;  %v2929_v12 = vsel %vm1525_vm2, %v6158_v10, 0 }
 0xf76   : > { %3155 = vrot.lane.b32.xlu0 %v6158_v10, %s6420_s4 }
 0xf7a   : > { %3272 = vrot.lane.b32.xlu0 %v6158_v10, %s6421_s15 }
 0xfbd   : > { %v2771_v58 = vpop.xlane.xlu1 %2770 }
 0xfbe   : > { %v2772_v59 = vmul.f32 0.03125, %v2771_v58 }
 0xfc0   : > { %v2773_v60 = vadd.f32 1e-05, %v2772_v59 }
 0xfc2   : > { %4762 = vrsqrt.f32 %v2773_v60 }
 0xfcc   : > { %v4763_v61 = vpop.eup %4762 }
 0xfcd   : > { %v2775_v63 = vmul.f32 %v4763_v61, %v2767_v50 }
 0xfcf   : > { %v2782_v47 = vmul.f32 %v4080_v62, %v2775_v63 }
 0xfd1   : > { %v6151_v2 = vadd.f32 %v4081_v1, %v2782_v47 }
 0xfd3   : > { %v2790_v4 = vpack.c.bf16 %v6151_v2, %v6151_v2 }
 0xfd5   : > { %4352 = vmatmul.mubr.msk.bf16.vlgmr.msra.gmra.mrb[40].mxu0 %vm1413_vm1, %v2790_v4 }
 0xfd6   : > { %4365 = vmatprep.mubr.msk.bf16.mxu0 %vm5403_vm0, %v5402_v0  ;;  %4364 = vmatpush3.bf16.xpose.msra.mxu0 %v2929_v12 }
 0xfd7   : > { %4375 = vmatprep.subr.bf16.mxu0 %v5402_v0 }
 0xfe4   : > { %v3039_v18 = vpop.permute.xlu0 %3038 }
 0xfe5   : > { %v3044_v22 = vsel %vm1525_vm2, %v3039_v18, 0 }
 0xfe8   : > { %v3156_v23 = vpop.permute.xlu0 %3155 }
 0xfe9   : > { %v3161_v25 = vsel %vm1525_vm2, %v3156_v23, 0 }
 0xfec   : > { %v3273_v26 = vpop.permute.xlu0 %3272 }
 0xfed   : > { %v3278_v28 = vsel %vm1525_vm2, %v3273_v26, 0 }
0x10a8   : > { %v2851_v14 = vpop.f32.mrb[40].mxu0 }
0x10a9   : > { %v2852_v15 = vadd.f32 %v4082_v13, %v2851_v14  ;;  %v4353_v16 = vpop.f32.mrb[41].mxu0 }
0x10aa   : > { %v2854_v17 = vpop.f32.mrb[42].mxu0 }
0x10ab   : > { %v2923_v19 = vpack.c.bf16 %v2852_v15, %v2852_v15  ;;  %v4354_v21 = vpop.f32.mrb[43].mxu0 }
0x10ad   : > { %3036 = vrot.lane.b32.xlu1 %v2923_v19, %s6419_s3  ;;  %4366 = vmatmul.mubr.msk.bf16.vlgmr.msra.gmra.mrb[44].mxu0 %vm1525_vm2, %v2923_v19  ;;  %s1346_s3 = sand.u32 1, %s5331_s23  }
0x10ae   : > { %4376 = vmatpush3.bf16.xpose.msra.mxu0 %v3044_v22  ;;  %4377 = vmatprep.mubr.msk.bf16.mxu0 %vm5403_vm0, %v5402_v0 }
0x10af   : > { %4387 = vmatprep.subr.bf16.mxu0 %v5402_v0 }
0x10b1   : > { %3153 = vrot.lane.b32.xlu1 %v2923_v19, %s6420_s4  ;;  %s4033_s4 = sshll.u32 %s1346_s3, 3 }
0x10b5   : > { %3270 = vrot.lane.b32.xlu1 %v2923_v19, %s6421_s15  ;;  %s6430_s15 = sld [smem:[#allocation69_spill]] }
0x10bb   : > { %p6431_p3 = scmp.ne.s32.totalorder %s6430_s15, 0 }
0x111f   : > { %v3037_v24 = vpop.permute.xlu1 %3036 }
0x1120   : > { %4378 = vmatmul.mubr.msk.bf16.vlgmr.msra.gmra.mrb[48].mxu0 %vm1525_vm2, %v3037_v24 }
0x1121   : > { %4388 = vmatpush3.bf16.xpose.msra.mxu0 %v3161_v25  ;;  %4389 = vmatprep.mubr.msk.bf16.mxu0 %vm5403_vm0, %v5402_v0 }
0x1122   : > { %4399 = vmatprep.subr.bf16.mxu0 %v5402_v0 }
0x1123   : > { %v3154_v27 = vpop.permute.xlu1 %3153 }
0x1127   : > { %v3271_v29 = vpop.permute.xlu1 %3270 }
0x1128   : > { %4390 = vmatmul.mubr.msk.bf16.vlgmr.msra.gmra.mrb[52].mxu0 %vm1525_vm2, %v3154_v27 }
0x1129   : > { %4400 = vmatpush3.bf16.xpose.msra.mxu0 %v3278_v28  ;;  %4401 = vmatprep.mubr.msk.bf16.mxu0 %vm5403_vm0, %v5402_v0 }
0x112a   : > { %4411 = vmatprep.subr.bf16.mxu0 %v5402_v0 }
0x1130   : > { %4402 = vmatmul.mubr.msk.bf16.vlgmr.msra.gmra.mrb[56].mxu0 %vm1525_vm2, %v3271_v29 }
0x1131   : > { %4415 = vmatprep.mubr.msk.bf16.mxu0 %vm5403_vm0, %v5402_v0 }
0x1180   : > { %v2965_v3 = vpop.f32.mrb[44].mxu0 }
0x1181   : > { %v2971_v30 = vmul.f32 0.35355338, %v2965_v3  ;;  %v4367_v31 = vpop.f32.mrb[45].mxu0 }
0x1182   : > { %v2968_v32 = vpop.f32.mrb[46].mxu0 }
0x1183   : > { %v4368_v33 = vpop.f32.mrb[47].mxu0  ;;  %v2972_v34 = vadd.f32 %v2971_v30, %v5971_v36 }
0x1185   : > { %v2973_v35 = vsel %vm1525_vm2, %v2972_v34, -inf }
0x1186   : > { %2974 = vmax.xlane.f32.xlu0 %v2973_v35 }
0x11f3   : > { %v3080_v37 = vpop.f32.mrb[48].mxu0 }
0x11f4   : > { %v3086_v38 = vmul.f32 0.35355338, %v3080_v37  ;;  %v4379_v39 = vpop.f32.mrb[49].mxu0 }
0x11f5   : > { %v3083_v40 = vpop.f32.mrb[50].mxu0 }
0x11f6   : > { %v4380_v42 = vpop.f32.mrb[51].mxu0  ;;  %v3087_v20 = vadd.f32 %v3086_v38, %v5971_v36 }
0x11f8   : > { %v3088_v43 = vsel %vm1525_vm2, %v3087_v20, -inf }
0x11f9   : > { %3089 = vmax.xlane.f32.xlu1 %v3088_v43 }
0x11fb   : > { %v3197_v44 = vpop.f32.mrb[52].mxu0 }
0x11fc   : > { %v3203_v45 = vmul.f32 0.35355338, %v3197_v44  ;;  %v4391_v46 = vpop.f32.mrb[53].mxu0 }
0x11fd   : > { %v3200_v48 = vpop.f32.mrb[54].mxu0 }
0x11fe   : > { %v4392_v49 = vpop.f32.mrb[55].mxu0  ;;  %v3204_v50 = vadd.f32 %v3203_v45, %v5971_v36 }
0x1200   : > { %v3205_v51 = vsel %vm1525_vm2, %v3204_v50, -inf }
0x1201   : > { %3206 = vmax.xlane.f32.xlu0 %v3205_v51  ;;  %v4721_v51 = vld [vmem:[#allocation20 + $0x8] sm:$0xff]  }
0x1203   : > { %v3314_v52 = vpop.f32.mrb[56].mxu0 }
0x1204   : > { %v3320_v53 = vmul.f32 0.35355338, %v3314_v52  ;;  %v4403_v54 = vpop.f32.mrb[57].mxu0 }
0x1205   : > { %v3317_v55 = vpop.f32.mrb[58].mxu0 }
0x1206   : > { %v4404_v41 = vpop.f32.mrb[59].mxu0  ;;  %v3321_v57 = vadd.f32 %v4784_v56, %v3320_v53 }
0x1208   : > { %v3322_v58 = vsel %vm1525_vm2, %v3321_v57, -inf }
0x1209   : > { %3323 = vmax.xlane.f32.xlu0 %v3322_v58 }
0x1213   : > { %v2975_v59 = vpop.xlane.xlu0 %2974 }
0x1214   : > { %v2976_v60 = vsub.f32 %v2972_v34, %v2975_v59 }
0x1216   : > { %v2977_v61 = vmul.f32 1.442695, %v2976_v60 }
0x1218   : > { %4764 = vpow2.f32 %v2977_v61 }
0x1222   : > { %v4765_v62 = vpop.eup %4764 }
0x1223   : > { %v2979_v36 = vsel %vm1525_vm2, %v4765_v62, 0.0 }
0x1224   : > { %2980 = vadd.xlane.f32.xlu1 %v2979_v36 }
0x1235   : > { %2986 = vrot.lane.b32.xlu1 %v6158_v10, %s6410_s0  ;;  %s6426_s0 = sld [smem:[#allocation58_spill]] }
0x1286   : > { %v3090_v63 = vpop.xlane.xlu1 %3089 }
0x1287   : > { %v3091_v1 = vsub.f32 %v3087_v20, %v3090_v63  ;;  %v4098_v63 = vld [vmem:[#allocation21] ss:$0 sm:$0xff] }
0x1289   : > { %v3092_v47 = vmul.f32 1.442695, %v3091_v1 }
0x128b   : > { %4766 = vpow2.f32 %v3092_v47 }
0x128e   : > { %v3207_v4 = vpop.xlane.xlu0 %3206 }
0x128f   : > { %v3208_v5 = vsub.f32 %v3204_v50, %v3207_v4  ;;  %v4720_v50 = vld [vmem:[#allocation20] sm:$0xff]  }
0x1290   : > { %4412 = vmatpush3.bf16.msra.mxu0 %v4720_v50 }
0x1291   : > { %v3209_v6 = vmul.f32 1.442695, %v3208_v5  ;;  %4413 = vmatprep.subr.bf16.mxu0 %v5402_v0 }
0x1293   : > { %4768 = vpow2.f32 %v3209_v6 }
0x1294   : > { %4414 = vmatpush3.bf16.msra.mxu0 %v4721_v51 }
0x1295   : > { %v4767_v7 = vpop.eup %4766  ;;  %4427 = vmatprep.subr.bf16.mxu0 %v5402_v0 }
0x1296   : > { %v3324_v8 = vpop.xlane.xlu0 %3323  ;;  %v3094_v9 = vsel %vm1525_vm2, %v4767_v7, 0.0 }
0x1297   : > { %v3325_v11 = vsub.f32 %v3321_v57, %v3324_v8  ;;  %3095 = vadd.xlane.f32.xlu0 %v3094_v9 }
0x1299   : > { %v3326_v12 = vmul.f32 1.442695, %v3325_v11 }
0x129b   : > { %4770 = vpow2.f32 %v3326_v12 }
0x129d   : > { %v4769_v13 = vpop.eup %4768 }
0x129e   : > { %v3211_v14 = vsel %vm1525_vm2, %v4769_v13, 0.0 }
0x129f   : > { %3212 = vadd.xlane.f32.xlu1 %v3211_v14 }
0x12a5   : > { %v4771_v15 = vpop.eup %4770 }
0x12a6   : > { %v3328_v16 = vsel %vm1525_vm2, %v4771_v15, 0.0 }
0x12a7   : > { %3329 = vadd.xlane.f32.xlu0 %v3328_v16 }
0x12b0   : > { %3217 = vrot.lane.b32.xlu1 %v6158_v10, %s6412_s22  ;;  %s6428_s22 = sld [smem:[#allocation64_spill]] }
0x12b1   : > { %v2981_v17 = vpop.xlane.xlu1 %2980 }
0x12b2   : > { %4772 = vrcp.f32 %v2981_v17 }
0x12b4   : > { %3334 = vrot.lane.b32.xlu1 %v6158_v10, %s6411_s29  ;;  %s6427_s29 = sld [smem:[#allocation59_spill]] }
0x12b5   : > { %v2987_v18 = vpop.permute.xlu1 %2986 }
0x12b6   : > { %v2992_v19 = vsel %vm1593_vm4, %v2987_v18, 0 }
0x12b7   : > { %4370 = vmatpush3.bf16.msra.mxu1 %v2992_v19 }
0x12b8   : > { %4381 = vmatprep.subr.bf16.mxu1 %v5402_v0 }
0x12bc   : > { %v4773_v21 = vpop.eup %4772 }
0x12bd   : > { %v2983_v22 = vmul.f32 %v4773_v21, %v4765_v62  ;;  %3100 = vrot.lane.b32.xlu0 %v6158_v10, %s6422_s12  ;;  %s4117_s12 = sshll.u32 %s5339_s28, 7  ;;  %s5414_s28 = smov [#allocation29]  }
0x12bf   : > { %v2984_v23 = vpack.c.bf16 %v2983_v22, %v2983_v22 }
0x12c1   : > { %4372 = vmatmul.mubr.msk.bf16.vlgmr.msra.gmra.mrb[52].mxu1 %vm1525_vm2, %v2984_v23  ;;  %v4102_v23 = vld [vmem:[%s6426_s0] ss:$0 sm:$0xff] }
0x12c2   : > { %4383 = vmatprep.mubr.msk.bf16.mxu1 %vm5403_vm0, %v5402_v0 }
0x1324   : > { %v3096_v24 = vpop.xlane.xlu0 %3095 }
0x1325   : > { %4774 = vrcp.f32 %v3096_v24 }
0x132c   : > { %v3213_v25 = vpop.xlane.xlu1 %3212 }
0x132d   : > { %4776 = vrcp.f32 %v3213_v25  ;;  %v4103_v25 = vld [vmem:[%s6427_s29] ss:$0 sm:$0xff]  ;;  %s6263_s29 = scalar_lea.hbm %s6428_s22, %s4117_s12 }
0x132f   : > { %v4775_v26 = vpop.eup %4774 }
0x1330   : > { %v3098_v28 = vmul.f32 %v4775_v26, %v4767_v7  ;;  %v3218_v30 = vpop.permute.xlu1 %3217 }
0x1331   : > { %v3223_v32 = vsel %vm1593_vm4, %v3218_v30, 0  ;;  %v4104_v30 = vld [vmem:[#allocation23] ss:$0 sm:$0xff] }
0x1332   : > { %v3099_v10 = vpack.c.bf16 %v3098_v28, %v3098_v28 }
0x1334   : > { %v3330_v27 = vpop.xlane.xlu0 %3329  ;;  %v3335_v34 = vpop.permute.xlu1 %3334 }
0x1335   : > { %4778 = vrcp.f32 %v3330_v27  ;;  %v3340_v38 = vsel %vm1593_vm4, %v3335_v34, 0 }
0x1337   : > { %v4777_v31 = vpop.eup %4776 }
0x1338   : > { %v3101_v29 = vpop.permute.xlu0 %3100  ;;  %v3215_v33 = vmul.f32 %v4777_v31, %v4769_v13 }
0x1339   : > { %v3106_v3 = vsel %vm1593_vm4, %v3101_v29, 0 }
0x133a   : > { %4382 = vmatpush3.bf16.msra.mxu1 %v3106_v3  ;;  %v3216_v35 = vpack.c.bf16 %v3215_v33, %v3215_v33 }
0x133b   : > { %4393 = vmatprep.subr.bf16.mxu1 %v5402_v0 }
0x133d   : > { %4384 = vmatmul.mubr.msk.bf16.vlgmr.msra.gmra.mrb[56].mxu1 %vm1525_vm2, %v3099_v10 }
0x133e   : > { %4394 = vmatpush3.bf16.msra.mxu1 %v3223_v32  ;;  %4395 = vmatprep.mubr.msk.bf16.mxu1 %vm5403_vm0, %v5402_v0 }
0x133f   : > { %4405 = vmatprep.subr.bf16.mxu1 %v5402_v0  ;;  %v4779_v37 = vpop.eup %4778 }
0x1340   : > { %v3332_v39 = vmul.f32 %v4779_v37, %v4771_v15  ;;  %v4722_v15 = vld [vmem:[%s6423_s26] sm:$0xff]  }
0x1342   : > { %v3333_v40 = vpack.c.bf16 %v3332_v39, %v3332_v39 }
0x1345   : > { %4396 = vmatmul.mubr.msk.bf16.vlgmr.msra.gmra.mrb[60].mxu1 %vm1525_vm2, %v3216_v35 }
0x1346   : > { %4406 = vmatpush3.bf16.msra.mxu1 %v3340_v38  ;;  %4407 = vmatprep.mubr.msk.bf16.mxu1 %vm5403_vm0, %v5402_v0  ;;  %v4108_v38 = vld [vmem:[#allocation24] ss:$0 sm:$0xff] }
0x1347   : > { %4419 = vmatprep.subr.bf16.mxu1 %v5402_v0 }
0x134d   : > { %4408 = vmatmul.mubr.msk.bf16.vlgmr.msra.gmra.mrb[64].mxu1 %vm1525_vm2, %v3333_v40 }
0x134e   : > { %4423 = vmatprep.mubr.msk.bf16.mxu1 %vm5403_vm0, %v5402_v0  ;;  %4420 = vmatpush3.bf16.msra.mxu1 %v4722_v15 }
0x134f   : > { %4421 = vmatprep.subr.bf16.mxu1 %v5402_v0 }
0x1394   : > { %v3028_v42 = vpop.f32.mrb[52].mxu1 }
0x1395   : > { %3034 = vst.msk [vmem:[#allocation2] sm:$0xff] %vm1525_vm2, %v3028_v42  ;;  %v4373_v20 = vpop.f32.mrb[53].mxu1 }
0x1396   : > { %v3031_v43 = vpop.f32.mrb[54].mxu1 }
0x1397   : > { %v4374_v44 = vpop.f32.mrb[55].mxu1 }
0x1410   : > { %v3142_v45 = vpop.f32.mrb[56].mxu1 }
0x1411   : > { %3149 = vrot.lane.b32.xlu0 %v3142_v45, %s6413_s7  ;;  %v4385_v46 = vpop.f32.mrb[57].mxu1  ;;  %s6429_s7 = smov %s6428_s22 }
0x1412   : > { %v3145_v48 = vpop.f32.mrb[58].mxu1 }
0x1413   : > { %v4386_v49 = vpop.f32.mrb[59].mxu1 }
0x1418   : > { %v3259_v52 = vpop.f32.mrb[60].mxu1 }
0x1419   : > { %3266 = vrot.lane.b32.xlu1 %v3259_v52, %s6414_s2  ;;  %v4397_v53 = vpop.f32.mrb[61].mxu1  ;;  %s6425_s2 = sld [smem:[#allocation62_spill]] }
0x141a   : > { %v3262_v54 = vpop.f32.mrb[62].mxu1 }
0x141b   : > { %v4398_v55 = vpop.f32.mrb[63].mxu1 }
0x141c   : > { %v4114_v55 = vld [vmem:[#allocation26] ss:$0 sm:$0xff] }
0x141f   : > { %v4725_v17 = vld [vmem:[%s6425_s2 + $0x8] sm:$0xff]   ;;  %v4726_v29 = vld [vmem:[%s6425_s2 + $0x10] sm:$0xff]   ;;  %v4727_v3 = vld [vmem:[%s6425_s2 + $0x18] sm:$0xff]  }
0x1420   : > { %v3376_v41 = vpop.f32.mrb[64].mxu1 }
0x1421   : > { %3383 = vrot.lane.b32.xlu0 %v3376_v41, %s6415_s10  ;;  %v4409_v56 = vpop.f32.mrb[65].mxu1  ;;  %s6424_s10 = smov %s6423_s26  ;;  %s1348_s26 = scalar_lea.vmem [#allocation29], %s4033_s4 }
0x1422   : > { %v3379_v57 = vpop.f32.mrb[66].mxu1  ;;  %v4723_v16 = vld [vmem:[%s6424_s10 + $0x8] sm:$0xff]   ;;  %v4115_v56 = vld [vmem:[#allocation27] ss:$0 sm:$0xff]  ;;  %s3683_s0 = sshll.u32 %s1348_s26, 4  ;;  %s5237_s4 = sshll.u32 %s5414_s28, 4  ;;  %s6265_s0 = int_to_ptr.vmem [resolvable:$true] %s3683_s0  ;;  %s5238_s4 = int_to_ptr.vmem [resolvable:$false] %s5237_s4 }
0x1423   : > { %v4410_v58 = vpop.f32.mrb[67].mxu1  ;;  %4422 = vmatpush3.bf16.msra.mxu1 %v4723_v16  ;;  %s5233_s5 = scalar_lea.vmem %s6265_s0, 128  ;;  %s5239_s6 = scalar_lea.vmem %s5238_s4, 256 }
0x1424   : > { %p5234_p1 = scmp.ne.s32.totalorder %s6265_s0, %s5233_s5  ;;  %p5240_p4 = scmp.lt.s32.totalorder %s6265_s0, %s5238_s4 }
0x1425   : > { %p5241_p8 = scmp.lt.s32.totalorder %s5239_s6, %s5233_s5 }
0x1426   : > { %p5235_p5 = pnand %p5234_p1, %p6431_p3 }
0x1427   : > { %p5242_p10 = por %p5241_p8, %p5240_p4 }
0x1428   : > { %p5236_p6 = pneg %p5235_p5 }
0x142a   : > { %p5243_p11 = pnand %p5242_p10, %p5236_p6 }
0x1483   : > { %v3150_v59 = vpop.permute.xlu0 %3149 }
0x1484   : > { %3152 = vst.msk [vmem:[#allocation2] sm:$0xff] %vm1756_vm5, %v3150_v59 }
0x148b   : > { %v3267_v60 = vpop.permute.xlu1 %3266 }
0x148c   : > { %3269 = vst.msk [vmem:[#allocation2] sm:$0xff] %vm1875_vm6, %v3267_v60 }
0x1493   : > { %v3384_v61 = vpop.permute.xlu0 %3383 }
0x1494   : > { %3386 = vst.msk [vmem:[#allocation2] sm:$0xff] %vm1994_vm7, %v3384_v61 }
0x149b   : > { %v3387_v62 = vld [vmem:[#allocation2] sm:$0xff] }
0x149c   : > { %v3388_v36 = vpack.c.bf16 %v3387_v62, %v3387_v62 }
0x149e   : > { %4416 = vmatmul.mubr.msk.bf16.vlgmr.msra.gmra.mrb[60].mxu0 %vm1413_vm1, %v3388_v36 }
0x149f   : > { %4435 = vmatprep.mubr.msk.bf16.mxu0 %vm5403_vm0, %v5402_v0 }
0x1571   : > { %v3449_v1 = vpop.f32.mrb[60].mxu0 }
0x1572   : > { %v3450_v47 = vadd.f32 %v4098_v63, %v3449_v1  ;;  %v4417_v4 = vpop.f32.mrb[61].mxu0 }
0x1573   : > { %v3452_v5 = vpop.f32.mrb[62].mxu0 }
0x1574   : > { %v4418_v6 = vpop.f32.mrb[63].mxu0  ;;  %v3455_v7 = vadd.f32 %v3450_v47, %v6151_v2  ;;  %v4724_v2 = vld [vmem:[%s6425_s2] sm:$0xff]   ;;  %s3669_s2 = scalar_lea.sflag [#allocation5], %s1346_s3 }
0x1575   : > { %4428 = vmatpush3.bf16.msra.mxu0 %v4724_v2 }
0x1576   : > { %v3458_v8 = vsel %vm1413_vm1, %v3455_v7, 0.0  ;;  %4429 = vmatprep.subr.bf16.mxu0 %v5402_v0 }
0x1577   : > { %3459 = vadd.xlane.f32.xlu1 %v3458_v8 }
0x1579   : > { %4430 = vmatpush3.bf16.msra.mxu0 %v4725_v17 }
0x157a   : > { %4431 = vmatprep.subr.bf16.mxu0 %v5402_v0 }
0x157d   : > { %4432 = vmatpush3.bf16.msra.mxu0 %v4726_v29 }
0x157e   : > { %4433 = vmatprep.subr.bf16.mxu0 %v5402_v0 }
0x1581   : > { %4434 = vmatpush3.bf16.msra.mxu0 %v4727_v3 }
0x1604   : > { %v3460_v9 = vpop.xlane.xlu1 %3459 }
0x1605   : > { %v3461_v11 = vmul.f32 0.03125, %v3460_v9 }
0x1607   : > { %v3462_v12 = vsub.f32 %v3455_v7, %v3461_v11 }
0x1609   : > { %v3463_v13 = vmul.f32 %v3462_v12, %v3462_v12 }
0x160b   : > { %v3464_v14 = vsel %vm1413_vm1, %v3463_v13, 0.0 }
0x160c   : > { %3465 = vadd.xlane.f32.xlu0 %v3464_v14 }
0x1699   : > { %v3466_v18 = vpop.xlane.xlu0 %3465 }
0x169a   : > { %v3467_v19 = vmul.f32 0.03125, %v3466_v18 }
0x169c   : > { %v3468_v21 = vadd.f32 1e-05, %v3467_v19 }
0x169e   : > { %4780 = vrsqrt.f32 %v3468_v21 }
0x16a8   : > { %v4781_v22 = vpop.eup %4780 }
0x16a9   : > { %v3470_v24 = vmul.f32 %v4781_v22, %v3462_v12 }
0x16ab   : > { %v3477_v26 = vmul.f32 %v4102_v23, %v3470_v24 }
0x16ad   : > { %v3484_v27 = vadd.f32 %v4103_v25, %v3477_v26 }
0x16af   : > { %v3485_v28 = vpack.c.bf16 %v3484_v27, %v3484_v27 }
0x16b1   : > { %4424 = vmatmul.mubr.msk.bf16.vlgmr.msra.gmra.mrb[68].mxu1 %vm1413_vm1, %v3485_v28 }
0x1784   : > { %v3546_v10 = vpop.f32.mrb[68].mxu1 }
0x1785   : > { %v3547_v31 = vadd.f32 %v4104_v30, %v3546_v10  ;;  %v4425_v32 = vpop.f32.mrb[69].mxu1 }
0x1786   : > { %v3549_v33 = vpop.f32.mrb[70].mxu1 }
0x1787   : > { %v3552_v34 = vmax.f32 %v3547_v31, 0.0  ;;  %v4426_v35 = vpop.f32.mrb[71].mxu1 }
0x1789   : > { %v3553_v37 = vpack.c.bf16 %v3552_v34, %v3552_v34 }
0x178b   : > { %4436 = vmatmul.mubr.msk.bf16.vlgmr.msra.gmra.mrb[64].mxu0 %vm3593_vm8, %v3553_v37 }
0x185e   : > { %v3631_v39 = vpop.f32.mrb[64].mxu0 }
0x185f   : > { %v3632_v40 = vadd.f32 %v4108_v38, %v3631_v39  ;;  %v4437_v42 = vpop.f32.mrb[65].mxu0 }
0x1860   : > { %v3634_v20 = vpop.f32.mrb[66].mxu0 }
0x1861   : > { %v4438_v43 = vpop.f32.mrb[67].mxu0  ;;  %v3637_v0 = vadd.f32 %v3632_v40, %v3484_v27 }
0x1863   : > { %v3640_v44 = vsel %vm1413_vm1, %v3637_v0, 0.0 }
0x1864   : > { %3641 = vadd.xlane.f32.xlu0 %v3640_v44 }
0x18f1   : > { %v3642_v45 = vpop.xlane.xlu0 %3641 }
0x18f2   : > { %v3643_v46 = vmul.f32 0.03125, %v3642_v45 }
0x18f4   : > { %v3644_v48 = vsub.f32 %v3637_v0, %v3643_v46 }
0x18f6   : > { %v3645_v49 = vmul.f32 %v3644_v48, %v3644_v48 }
0x18f8   : > { %v3646_v50 = vsel %vm1413_vm1, %v3645_v49, 0.0 }
0x18f9   : > { %3647 = vadd.xlane.f32.xlu1 %v3646_v50 }
0x1986   : > { %v3648_v51 = vpop.xlane.xlu1 %3647 }
0x1987   : > { %v3649_v52 = vmul.f32 0.03125, %v3648_v51 }
0x1989   : > { %v3650_v53 = vadd.f32 1e-05, %v3649_v52 }
0x198b   : > { %4782 = vrsqrt.f32 %v3650_v53 }
0x1995   : > { %v4783_v54 = vpop.eup %4782 }
0x1996   : > { %v3652_v41 = vmul.f32 %v4783_v54, %v3644_v48 }
0x1998   : > { %v3659_v57 = vmul.f32 %v4114_v55, %v3652_v41 }
0x199a   : > { %v3666_v58 = vadd.f32 %v4115_v56, %v3659_v57 }
0x199c   : > { %3667 = vst.msk [vmem:[%s1348_s26] sm:$0xff] %vm1413_vm1, %v3666_v58 }
0x199d   : > { %5246 = shalt.err (!%p5243_p11)
}
0x199e   : > { %s5247_s22 = scalar_lea.hbm %s6263_s29, 128  ;;  %s5251_s3 = scalar_lea.hbm %s6429_s7, 256 }
0x199f   : > { %p5248_p7 = scmp.ne.s32.totalorder %s6263_s29, %s5247_s22  ;;  %p5252_p0 = scmp.lt.u32.totalorder %s6263_s29, %s6429_s7 }
0x19a0   : > { %p5253_p2 = scmp.lt.u32.totalorder %s5251_s3, %s5247_s22  ;;  %p5255_p1 = scmp.lt.u32.totalorder %s5247_s22, %s6263_s29 }
0x19a1   : > { %p5249_p9 = pnand %p5248_p7, %p6431_p3 }
0x19a2   : > { %p5254_p13 = por %p5253_p2, %p5252_p0 }
0x19a3   : > { %p5250_p12 = pneg %p5249_p9 }
0x19a4   : > { %p5256_p5 = por %p5255_p1, %p5254_p13 }
0x19a6   : > { %p5257_p6 = pnand %p5256_p5, %p5250_p12 }
0x19a8   : > { %5260 = shalt.err (!%p5257_p6)
}
0x19a9   : > { %4503 = dma.vmem_to_hbm [thread:$0]  (%p6431_p3), %s6265_s0, 128, %s6263_s29, %s3669_s2  }
0x19aa PF: > { %s6432_s5 = sld [smem:[#allocation65_spill]]  ;;  %s6433_s6 = sld [smem:[#allocation70_spill]] }
0x19ab   : > { %p4590_p4 = scmp.ge.s32.totalorder %s5347_s1, 2 }
0x19b0   : > { %s3695_s12 = sand.u32 1, %s6432_s5   ;;  %p6434_p8 = scmp.ne.s32.totalorder %s6433_s6, 0 }
0x19b1   : > { %s3696_s26 = scalar_lea.sflag [#allocation5], %s3695_s12 }
0x19b2   : > { %p4555_p10 = pnand %p4590_p4, %p6434_p8 }
0x19b4   : > { %5322 = dma.done.wait (!%p4555_p10), %s3696_s26, 128  }
0x19b5   : > { %5324 = vsyncadd (!%p4555_p10), %s3696_s26, 4294967168  ;;  %s93_s1 = sadd.s32 1, %s5347_s1   ;;  %s6435_s28 = sld [smem:[#allocation66_spill]] }
0x19b6   : > { %p90_p11 = scmp.ge.s32.totalorder %s93_s1, 4   ;;  %s6436_s26 = sld [smem:[#allocation71_spill]] }
0x19b7   : > { %s6437_s15 = sld [smem:[#allocation67_spill]]  ;;  %s6438_s0 = sld [smem:[#allocation68_spill]] }
0x19b8   : > { %s6439_s22 = smov %s5331_s23  ;;  %92 = sbr.rel (!%p90_p11) target bundleno = 84 (0x54), region = 307 }
0x19bb   : > { %s6440_s23 = smov %s6435_s28 }
0x19bd   : > { %s6441_s28 = smov %s6437_s15 }
0x19bf   :  { %3701 = vsyncpa [#allocation4], 1 }
0x19c0   :  { %3703 = vsyncpa [#allocation4 + $0x1], 1 }
0x19c1   :  { %3704 = vsyncpa [#allocation7], 1 }
0x19c2   :  { %3705 = vsyncpa [#allocation10], 1 }
0x19c3   :  { %3706 = vsyncpa [#allocation13], 1 }
0x19c4   :  { %3707 = vsyncpa [#allocation16], 1 }
0x19c5   :  { %3708 = vsyncpa [#allocation19], 1 }
0x19c6   :  { %3709 = vsyncpa [#allocation22], 1 }
0x19c7   :  { %3710 = vsyncpa [#allocation25], 1 }
0x19c8   :  { %3711 = vsyncpa [#allocation28], 1 }
0x19c9   :  { %3712 = vsyncpa [#allocation5], 1 }
0x19ca   :  { %3714 = vsyncpa [#allocation5 + $0x1], 1 }

</bundles_post_ra>
